<compile_context>
chip_gen: v7x
topology: tpu7x:2x2x1
jax: 0.10.0
libtpu: 0.0.40
codegen_flags: <defaults>
</compile_context>

<pallas_src>
import functools
import math

import jax
import jax.numpy as jnp
from jax.experimental import pallas as pl
from jax.experimental.pallas import tpu as pltpu


def _round_up(x, m):
    return (x + m - 1) // m * m


def _mask_prop_kernel(q_ref, mem_ref, flo_ref, msk_ref, vmask_ref, out_ref,
                      mem_sc, msk_sc, corr_sc, *,
                      P, R, W, HW, LPAD, PP, inv_sqrt_c):
    """One batch element per grid step; flat lane-dense (HW) spatial layout.

    q_ref    : (1, CP, HW)    f32   feat_query   (channel dim zero-padded to 8k)
    mem_ref  : (1, CP, HW)    f32   feat_mem
    flo_ref  : (1, PPAD, HW)  f32   flow prior, rows >= PP zero (resident block)
    msk_ref  : (1, OPAD, HW)  bf16  downsampled 0/1 mask, rows >= obj zero
    vmask_ref: (PPAD, HW)     f32   per-displacement validity, rows >= PP zero
    out_ref  : (1, OPAD, HW)  f32
    mem_sc   : (CP, PADW)     f32   zero-haloed copy of mem along the flat axis
    msk_sc   : (OPAD, PADW)   f32   zero-haloed copy of the mask
    corr_sc  : (PPAD, HW)     f32   correlation rows (pad rows = -1e30)
    """
    cp = q_ref.shape[1]
    opad = out_ref.shape[1]
    PPAD = corr_sc.shape[0]
    PADW = mem_sc.shape[1]

    # --- stage mem / mask into zero-haloed scratch (lane-aligned stores) -----
    mem_sc[...] = jnp.zeros((cp, PADW), jnp.float32)
    mem_sc[:, pl.ds(LPAD, HW)] = mem_ref[0]
    msk_sc[...] = jnp.zeros((opad, PADW), jnp.float32)
    msk_sc[:, pl.ds(LPAD, HW)] = msk_ref[0].astype(jnp.float32)

    q = q_ref[0]              # (CP, HW)
    vmask = vmask_ref[...]    # (PPAD, HW)
    flo = flo_ref[0]          # (PPAD, HW)

    # --- pass 1: masked correlation for each of the PP displacements ---------
    # Invalid (out-of-image) displacements must contribute corr == 0 to the
    # softmax (zero-padded correlation sampler), so multiply by the validity.
    corr_sc[...] = jnp.full((PPAD, HW), -1e30, jnp.float32)
    for p in range(PP):
        dy = p // P - R
        dx = p % P - R
        s = dy * W + dx                               # static flat-axis shift
        mem_s = mem_sc[:, pl.ds(LPAD + s, HW)]        # (CP, HW) shifted mem
        corr_sc[p:p + 1, :] = (
            jnp.sum(q * mem_s, axis=0, keepdims=True) * inv_sqrt_c
        ) * vmask[p:p + 1, :]

    # --- softmax over displacements + flow prior, fully vectorized -----------
    corr = corr_sc[...]                               # (PPAD, HW)
    m = jnp.max(corr, axis=0, keepdims=True)          # (1, HW)
    e = jnp.exp(corr - m)                             # pad rows -> exactly 0
    l = jnp.sum(e, axis=0, keepdims=True)             # (1, HW)
    wgt = (e * (1.0 / l) + flo * inv_sqrt_c) * vmask  # (PPAD, HW)

    # --- pass 2: aggregate shifted masks with the per-displacement weights ---
    acc = jnp.zeros((opad, HW), jnp.float32)
    for p in range(PP):
        dy = p // P - R
        dx = p % P - R
        s = dy * W + dx
        acc = acc + wgt[p:p + 1, :] * msk_sc[:, pl.ds(LPAD + s, HW)]
    out_ref[0] = acc


def mask_propagation_forward(feat_mem, feat_query, msk_mem, feat_flo, *, D=4, R=2):
    """Training-mode MaskPropagation.forward with len(feat_mem) == 1."""
    assert len(feat_mem) == 1 and len(msk_mem) == 1
    q = feat_query.astype(jnp.float32)
    mem = feat_mem[0].astype(jnp.float32)
    b, c, h, w = q.shape
    P = 2 * R + 1
    PP = P * P
    HW = h * w
    PPAD = _round_up(PP, 8)

    # pad channel dim to a sublane multiple (no-op when already aligned)
    CP = _round_up(c, 8)
    if CP != c:
        q = jnp.pad(q, ((0, 0), (0, CP - c), (0, 0), (0, 0)))
        mem = jnp.pad(mem, ((0, 0), (0, CP - c), (0, 0), (0, 0)))

    # downsampled 0/1 mask -> bf16 (exact), pad object dim to a sublane multiple
    msk_ds = msk_mem[0][:, :, ::D, ::D].astype(jnp.bfloat16)     # (B, O, H, W)
    obj = msk_ds.shape[1]
    OPAD = _round_up(obj, 8)
    if OPAD != obj:
        msk_ds = jnp.pad(msk_ds, ((0, 0), (0, OPAD - obj), (0, 0), (0, 0)))

    q_f = q.reshape(b, CP, HW)
    mem_f = mem.reshape(b, CP, HW)
    msk_f = msk_ds.reshape(b, OPAD, HW)

    flo = feat_flo.astype(jnp.float32).reshape(feat_flo.shape[0], PP, HW)
    flo_b = flo.shape[0]                                         # 1 (shared) or b
    flo_f = jnp.pad(flo, ((0, 0), (0, PPAD - PP), (0, 0)))       # (flo_b, PPAD, HW)

    # per-displacement validity over the flat spatial axis (kills x wrap-around
    # and y out-of-range reads of the flat shift); padded rows are zero.
    yy = jnp.arange(h)[:, None]
    xx = jnp.arange(w)[None, :]
    vrows = []
    for p in range(PP):
        dy = p // P - R
        dx = p % P - R
        valid = (yy + dy >= 0) & (yy + dy < h) & (xx + dx >= 0) & (xx + dx < w)
        vrows.append(valid.reshape(HW))
    vmask = jnp.stack(vrows, axis=0).astype(jnp.float32)
    vmask = jnp.pad(vmask, ((0, PPAD - PP), (0, 0)))             # (PPAD, HW)

    # halo along the flat axis; rounded to 128 so halo staging stays lane-aligned
    S = R * w + R
    LPAD = _round_up(max(S, 1), 128)
    PADW = LPAD + HW + LPAD

    kernel = functools.partial(
        _mask_prop_kernel, P=P, R=R, W=w, HW=HW, LPAD=LPAD, PP=PP,
        inv_sqrt_c=1.0 / math.sqrt(c))

    # rough VMEM budget: double-buffered per-batch blocks + resident blocks +
    # haloed scratch, clamped to a range safe on v5e/v6e/v7x.
    blk_bytes = (2 * (2 * CP * HW * 4)          # q + mem (double-buffered)
                 + 2 * (OPAD * HW * 2)          # mask bf16 (double-buffered)
                 + 2 * (OPAD * HW * 4)          # out (double-buffered)
                 + 2 * PPAD * HW * 4)           # flo + vmask (resident)
    scr_bytes = 4 * (CP * PADW + OPAD * PADW + PPAD * HW)
    vmem_limit = min(64 * 1024 * 1024,
                     max(32 * 1024 * 1024, blk_bytes + scr_bytes + (4 << 20)))

    flo_idx = (lambda i: (0, 0, 0)) if flo_b == 1 else (lambda i: (i, 0, 0))

    out = pl.pallas_call(
        kernel,
        out_shape=jax.ShapeDtypeStruct((b, OPAD, HW), jnp.float32),
        grid=(b,),
        in_specs=[
            pl.BlockSpec((1, CP, HW), lambda i: (i, 0, 0)),      # feat_query
            pl.BlockSpec((1, CP, HW), lambda i: (i, 0, 0)),      # feat_mem
            pl.BlockSpec((1, PPAD, HW), flo_idx),                # feat_flo (resident)
            pl.BlockSpec((1, OPAD, HW), lambda i: (i, 0, 0)),    # mask (bf16)
            pl.BlockSpec((PPAD, HW), lambda i: (0, 0)),          # validity (resident)
        ],
        out_specs=pl.BlockSpec((1, OPAD, HW), lambda i: (i, 0, 0)),
        scratch_shapes=[
            pltpu.VMEM((CP, PADW), jnp.float32),
            pltpu.VMEM((OPAD, PADW), jnp.float32),
            pltpu.VMEM((PPAD, HW), jnp.float32),
        ],
        compiler_params=pltpu.CompilerParams(
            dimension_semantics=("parallel",),
            vmem_limit_bytes=vmem_limit,
        ),
    )(q_f, mem_f, flo_f, msk_f, vmask)

    return out[:, :obj].reshape(b, obj, h, w)


def _reference_forward(feat_mem, feat_query, msk_mem, feat_flo, *, D, R):
    """Pure-JAX reference mirroring the PyTorch training branch."""
    q = feat_query.astype(jnp.float32)
    mem = feat_mem[0].astype(jnp.float32)
    b, c, h, w = q.shape
    P = 2 * R + 1
    PP = P * P
    inv = 1.0 / math.sqrt(c)

    memp = jnp.pad(mem, ((0, 0), (0, 0), (R, R), (R, R)))
    corr = jnp.stack(
        [jnp.sum(q * memp[:, :, p // P:p // P + h, p % P:p % P + w], axis=1)
         for p in range(PP)],
        axis=1,
    ) * inv                                                        # (B, PP, H, W)
    att = jax.nn.softmax(corr, axis=1) + feat_flo.astype(jnp.float32) * inv

    msk_ds = msk_mem[0].astype(jnp.float32)[:, :, ::D, ::D]
    mskp = jnp.pad(msk_ds, ((0, 0), (0, 0), (R, R), (R, R)))
    msk_unf = jnp.stack(
        [mskp[:, :, p // P:p // P + h, p % P:p % P + w] for p in range(PP)],
        axis=2,
    )                                                              # (B, O, PP, H, W)
    out = jnp.sum(att[:, None] * msk_unf, axis=2)                  # (B, O, H, W)
    return out


if __name__ == "__main__":
    key = jax.random.PRNGKey(0)
    b, c, h, w = 2, 8, 16, 16
    D, R = 4, 2
    P = 2 * R + 1
    PP = P * P
    obj = 4

    k1, k2, k3, k4 = jax.random.split(key, 4)
    feat_query = jax.random.normal(k1, (b, c, h, w), jnp.float32)
    feat_mem = [jax.random.normal(k2, (b, c, h, w), jnp.float32)]
    msk_mem = [(jax.random.uniform(k3, (b, obj, h * D, w * D)) > 0.5).astype(jnp.float32)]
    feat_flo = jax.random.normal(k4, (1, PP, h, w), jnp.float32)

    out = mask_propagation_forward(feat_mem, feat_query, msk_mem, feat_flo, D=D, R=R)
    out = jax.block_until_ready(out)

    ref = _reference_forward(feat_mem, feat_query, msk_mem, feat_flo, D=D, R=R)
    assert out.shape == (b, obj, h, w), out.shape
    max_err = float(jnp.max(jnp.abs(out - ref)))
    if max_err < 5e-4:
        print("KERNEL_OK")
    else:
        print(f"MISMATCH max_err={max_err}")
</pallas_src>

<mosaic_0001>
module attributes {stable_mosaic.version = 11 : i64} {
  func.func @_mask_prop_kernel(%arg0: i32, %arg1: memref<1x8x256xf32, #tpu.memory_space<vmem>>, %arg2: memref<1x8x256xf32, #tpu.memory_space<vmem>>, %arg3: memref<1x32x256xf32, #tpu.memory_space<vmem>>, %arg4: memref<1x8x256xbf16, #tpu.memory_space<vmem>>, %arg5: memref<32x256xf32, #tpu.memory_space<vmem>>, %arg6: memref<1x8x256xf32, #tpu.memory_space<vmem>>, %arg7: memref<8x512xf32, #tpu.memory_space<vmem>>, %arg8: memref<8x512xf32, #tpu.memory_space<vmem>>, %arg9: memref<32x256xf32, #tpu.memory_space<vmem>>) attributes {dimension_semantics = [#tpu.dimension_semantics<parallel>], iteration_bounds = array<i64: 2>, scalar_prefetch = 0 : i64, scratch_operands = 3 : i64, tpu.core_type = #tpu.core_type<tc>, window_params = [{transform_indices = @transform_0, window_bounds = array<i64: 1, 8, 256>}, {transform_indices = @transform_1, window_bounds = array<i64: 1, 8, 256>}, {pipeline_mode = #tpu.pipeline_mode<synchronous>, transform_indices = @transform_2, window_bounds = array<i64: 1, 32, 256>}, {transform_indices = @transform_3, window_bounds = array<i64: 1, 8, 256>}, {pipeline_mode = #tpu.pipeline_mode<synchronous>, transform_indices = @transform_4, window_bounds = array<i64: 32, 256>}, {transform_indices = @transform_5, window_bounds = array<i64: 1, 8, 256>}]} {
    %cst = arith.constant 0.000000e+00 : f32
    %0 = vector.broadcast %cst : f32 to vector<8x512xf32>
    %c0 = arith.constant 0 : index
    %c0_0 = arith.constant 0 : index
    %1 = vector.load %arg7[%c0, %c0_0] : memref<8x512xf32, #tpu.memory_space<vmem>>, vector<8x512xf32>
    tpu.vector_store %arg7[%c0, %c0_0], %0 {strides = array<i32>} : memref<8x512xf32, #tpu.memory_space<vmem>>, vector<8x512xf32>,
    %c0_1 = arith.constant 0 : index
    %c0_2 = arith.constant 0 : index
    %c0_3 = arith.constant 0 : index
    %2 = vector.load %arg2[%c0_1, %c0_2, %c0_3] : memref<1x8x256xf32, #tpu.memory_space<vmem>>, vector<1x8x256xf32>
    %3 = vector.shape_cast %2 : vector<1x8x256xf32> to vector<8x256xf32>
    %c0_4 = arith.constant 0 : index
    %c128 = arith.constant 128 : index
    %4 = vector.load %arg7[%c0_4, %c128] : memref<8x512xf32, #tpu.memory_space<vmem>>, vector<8x256xf32>
    tpu.vector_store %arg7[%c0_4, %c128], %3 {strides = array<i32>} : memref<8x512xf32, #tpu.memory_space<vmem>>, vector<8x256xf32>,
    %cst_5 = arith.constant 0.000000e+00 : f32
    %5 = vector.broadcast %cst_5 : f32 to vector<8x512xf32>
    %c0_6 = arith.constant 0 : index
    %c0_7 = arith.constant 0 : index
    %6 = vector.load %arg8[%c0_6, %c0_7] : memref<8x512xf32, #tpu.memory_space<vmem>>, vector<8x512xf32>
    tpu.vector_store %arg8[%c0_6, %c0_7], %5 {strides = array<i32>} : memref<8x512xf32, #tpu.memory_space<vmem>>, vector<8x512xf32>,
    %c0_8 = arith.constant 0 : index
    %c0_9 = arith.constant 0 : index
    %c0_10 = arith.constant 0 : index
    %7 = vector.load %arg4[%c0_8, %c0_9, %c0_10] : memref<1x8x256xbf16, #tpu.memory_space<vmem>>, vector<1x8x256xbf16>
    %8 = vector.shape_cast %7 : vector<1x8x256xbf16> to vector<8x256xbf16>
    %9 = arith.extf %8 : vector<8x256xbf16> to vector<8x256xf32>
    %c0_11 = arith.constant 0 : index
    %c128_12 = arith.constant 128 : index
    %10 = vector.load %arg8[%c0_11, %c128_12] : memref<8x512xf32, #tpu.memory_space<vmem>>, vector<8x256xf32>
    tpu.vector_store %arg8[%c0_11, %c128_12], %9 {strides = array<i32>} : memref<8x512xf32, #tpu.memory_space<vmem>>, vector<8x256xf32>,
    %c0_13 = arith.constant 0 : index
    %c0_14 = arith.constant 0 : index
    %c0_15 = arith.constant 0 : index
    %11 = vector.load %arg1[%c0_13, %c0_14, %c0_15] : memref<1x8x256xf32, #tpu.memory_space<vmem>>, vector<1x8x256xf32>
    %12 = vector.shape_cast %11 : vector<1x8x256xf32> to vector<8x256xf32>
    %c0_16 = arith.constant 0 : index
    %c0_17 = arith.constant 0 : index
    %13 = vector.load %arg5[%c0_16, %c0_17] : memref<32x256xf32, #tpu.memory_space<vmem>>, vector<32x256xf32>
    %c0_18 = arith.constant 0 : index
    %c0_19 = arith.constant 0 : index
    %c0_20 = arith.constant 0 : index
    %14 = vector.load %arg3[%c0_18, %c0_19, %c0_20] : memref<1x32x256xf32, #tpu.memory_space<vmem>>, vector<1x32x256xf32>
    %15 = vector.shape_cast %14 : vector<1x32x256xf32> to vector<32x256xf32>
    %cst_21 = arith.constant -1.000000e+30 : f32
    %16 = vector.broadcast %cst_21 : f32 to vector<32x256xf32>
    %c0_22 = arith.constant 0 : index
    %c0_23 = arith.constant 0 : index
    %17 = vector.load %arg9[%c0_22, %c0_23] : memref<32x256xf32, #tpu.memory_space<vmem>>, vector<32x256xf32>
    tpu.vector_store %arg9[%c0_22, %c0_23], %16 {strides = array<i32>} : memref<32x256xf32, #tpu.memory_space<vmem>>, vector<32x256xf32>,
    %c0_24 = arith.constant 0 : index
    %c94 = arith.constant 94 : index
    %18 = vector.load %arg7[%c0_24, %c94] : memref<8x512xf32, #tpu.memory_space<vmem>>, vector<8x256xf32>
    %19 = arith.mulf %12, %18 : vector<8x256xf32>
    %cst_25 = arith.constant dense<0.000000e+00> : vector<256xf32>
    %20 = vector.multi_reduction <add>, %19, %cst_25 [0] : vector<8x256xf32> to vector<256xf32>
    %21 = vector.shape_cast %20 : vector<256xf32> to vector<1x256xf32>
    %cst_26 = arith.constant 0.353553385 : f32
    %22 = vector.broadcast %cst_26 : f32 to vector<1x256xf32>
    %23 = arith.mulf %21, %22 : vector<1x256xf32>
    %24 = vector.extract_strided_slice %13 {offsets = [0, 0], sizes = [1, 256], strides = [1, 1]} : vector<32x256xf32> to vector<1x256xf32>
    %25 = arith.mulf %23, %24 : vector<1x256xf32>
    %c0_27 = arith.constant 0 : index
    %c0_28 = arith.constant 0 : index
    %26 = vector.load %arg9[%c0_27, %c0_28] : memref<32x256xf32, #tpu.memory_space<vmem>>, vector<1x256xf32>
    tpu.vector_store %arg9[%c0_27, %c0_28], %25 {strides = array<i32>} : memref<32x256xf32, #tpu.memory_space<vmem>>, vector<1x256xf32>,
    %c0_29 = arith.constant 0 : index
    %c95 = arith.constant 95 : index
    %27 = vector.load %arg7[%c0_29, %c95] : memref<8x512xf32, #tpu.memory_space<vmem>>, vector<8x256xf32>
    %28 = arith.mulf %12, %27 : vector<8x256xf32>
    %cst_30 = arith.constant dense<0.000000e+00> : vector<256xf32>
    %29 = vector.multi_reduction <add>, %28, %cst_30 [0] : vector<8x256xf32> to vector<256xf32>
    %30 = vector.shape_cast %29 : vector<256xf32> to vector<1x256xf32>
    %cst_31 = arith.constant 0.353553385 : f32
    %31 = vector.broadcast %cst_31 : f32 to vector<1x256xf32>
    %32 = arith.mulf %30, %31 : vector<1x256xf32>
    %33 = vector.extract_strided_slice %13 {offsets = [1, 0], sizes = [1, 256], strides = [1, 1]} : vector<32x256xf32> to vector<1x256xf32>
    %34 = arith.mulf %32, %33 : vector<1x256xf32>
    %c1 = arith.constant 1 : index
    %c0_32 = arith.constant 0 : index
    %35 = vector.load %arg9[%c1, %c0_32] : memref<32x256xf32, #tpu.memory_space<vmem>>, vector<1x256xf32>
    tpu.vector_store %arg9[%c1, %c0_32], %34 {strides = array<i32>} : memref<32x256xf32, #tpu.memory_space<vmem>>, vector<1x256xf32>,
    %c0_33 = arith.constant 0 : index
    %c96 = arith.constant 96 : index
    %36 = vector.load %arg7[%c0_33, %c96] : memref<8x512xf32, #tpu.memory_space<vmem>>, vector<8x256xf32>
    %37 = arith.mulf %12, %36 : vector<8x256xf32>
    %cst_34 = arith.constant dense<0.000000e+00> : vector<256xf32>
    %38 = vector.multi_reduction <add>, %37, %cst_34 [0] : vector<8x256xf32> to vector<256xf32>
    %39 = vector.shape_cast %38 : vector<256xf32> to vector<1x256xf32>
    %cst_35 = arith.constant 0.353553385 : f32
    %40 = vector.broadcast %cst_35 : f32 to vector<1x256xf32>
    %41 = arith.mulf %39, %40 : vector<1x256xf32>
    %42 = vector.extract_strided_slice %13 {offsets = [2, 0], sizes = [1, 256], strides = [1, 1]} : vector<32x256xf32> to vector<1x256xf32>
    %43 = arith.mulf %41, %42 : vector<1x256xf32>
    %c2 = arith.constant 2 : index
    %c0_36 = arith.constant 0 : index
    %44 = vector.load %arg9[%c2, %c0_36] : memref<32x256xf32, #tpu.memory_space<vmem>>, vector<1x256xf32>
    tpu.vector_store %arg9[%c2, %c0_36], %43 {strides = array<i32>} : memref<32x256xf32, #tpu.memory_space<vmem>>, vector<1x256xf32>,
    %c0_37 = arith.constant 0 : index
    %c97 = arith.constant 97 : index
    %45 = vector.load %arg7[%c0_37, %c97] : memref<8x512xf32, #tpu.memory_space<vmem>>, vector<8x256xf32>
    %46 = arith.mulf %12, %45 : vector<8x256xf32>
    %cst_38 = arith.constant dense<0.000000e+00> : vector<256xf32>
    %47 = vector.multi_reduction <add>, %46, %cst_38 [0] : vector<8x256xf32> to vector<256xf32>
    %48 = vector.shape_cast %47 : vector<256xf32> to vector<1x256xf32>
    %cst_39 = arith.constant 0.353553385 : f32
    %49 = vector.broadcast %cst_39 : f32 to vector<1x256xf32>
    %50 = arith.mulf %48, %49 : vector<1x256xf32>
    %51 = vector.extract_strided_slice %13 {offsets = [3, 0], sizes = [1, 256], strides = [1, 1]} : vector<32x256xf32> to vector<1x256xf32>
    %52 = arith.mulf %50, %51 : vector<1x256xf32>
    %c3 = arith.constant 3 : index
    %c0_40 = arith.constant 0 : index
    %53 = vector.load %arg9[%c3, %c0_40] : memref<32x256xf32, #tpu.memory_space<vmem>>, vector<1x256xf32>
    tpu.vector_store %arg9[%c3, %c0_40], %52 {strides = array<i32>} : memref<32x256xf32, #tpu.memory_space<vmem>>, vector<1x256xf32>,
    %c0_41 = arith.constant 0 : index
    %c98 = arith.constant 98 : index
    %54 = vector.load %arg7[%c0_41, %c98] : memref<8x512xf32, #tpu.memory_space<vmem>>, vector<8x256xf32>
    %55 = arith.mulf %12, %54 : vector<8x256xf32>
    %cst_42 = arith.constant dense<0.000000e+00> : vector<256xf32>
    %56 = vector.multi_reduction <add>, %55, %cst_42 [0] : vector<8x256xf32> to vector<256xf32>
    %57 = vector.shape_cast %56 : vector<256xf32> to vector<1x256xf32>
    %cst_43 = arith.constant 0.353553385 : f32
    %58 = vector.broadcast %cst_43 : f32 to vector<1x256xf32>
    %59 = arith.mulf %57, %58 : vector<1x256xf32>
    %60 = vector.extract_strided_slice %13 {offsets = [4, 0], sizes = [1, 256], strides = [1, 1]} : vector<32x256xf32> to vector<1x256xf32>
    %61 = arith.mulf %59, %60 : vector<1x256xf32>
    %c4 = arith.constant 4 : index
    %c0_44 = arith.constant 0 : index
    %62 = vector.load %arg9[%c4, %c0_44] : memref<32x256xf32, #tpu.memory_space<vmem>>, vector<1x256xf32>
    tpu.vector_store %arg9[%c4, %c0_44], %61 {strides = array<i32>} : memref<32x256xf32, #tpu.memory_space<vmem>>, vector<1x256xf32>,
    %c0_45 = arith.constant 0 : index
    %c110 = arith.constant 110 : index
    %63 = vector.load %arg7[%c0_45, %c110] : memref<8x512xf32, #tpu.memory_space<vmem>>, vector<8x256xf32>
    %64 = arith.mulf %12, %63 : vector<8x256xf32>
    %cst_46 = arith.constant dense<0.000000e+00> : vector<256xf32>
    %65 = vector.multi_reduction <add>, %64, %cst_46 [0] : vector<8x256xf32> to vector<256xf32>
    %66 = vector.shape_cast %65 : vector<256xf32> to vector<1x256xf32>
    %cst_47 = arith.constant 0.353553385 : f32
    %67 = vector.broadcast %cst_47 : f32 to vector<1x256xf32>
    %68 = arith.mulf %66, %67 : vector<1x256xf32>
    %69 = vector.extract_strided_slice %13 {offsets = [5, 0], sizes = [1, 256], strides = [1, 1]} : vector<32x256xf32> to vector<1x256xf32>
    %70 = arith.mulf %68, %69 : vector<1x256xf32>
    %c5 = arith.constant 5 : index
    %c0_48 = arith.constant 0 : index
    %71 = vector.load %arg9[%c5, %c0_48] : memref<32x256xf32, #tpu.memory_space<vmem>>, vector<1x256xf32>
    tpu.vector_store %arg9[%c5, %c0_48], %70 {strides = array<i32>} : memref<32x256xf32, #tpu.memory_space<vmem>>, vector<1x256xf32>,
    %c0_49 = arith.constant 0 : index
    %c111 = arith.constant 111 : index
    %72 = vector.load %arg7[%c0_49, %c111] : memref<8x512xf32, #tpu.memory_space<vmem>>, vector<8x256xf32>
    %73 = arith.mulf %12, %72 : vector<8x256xf32>
    %cst_50 = arith.constant dense<0.000000e+00> : vector<256xf32>
    %74 = vector.multi_reduction <add>, %73, %cst_50 [0] : vector<8x256xf32> to vector<256xf32>
    %75 = vector.shape_cast %74 : vector<256xf32> to vector<1x256xf32>
    %cst_51 = arith.constant 0.353553385 : f32
    %76 = vector.broadcast %cst_51 : f32 to vector<1x256xf32>
    %77 = arith.mulf %75, %76 : vector<1x256xf32>
    %78 = vector.extract_strided_slice %13 {offsets = [6, 0], sizes = [1, 256], strides = [1, 1]} : vector<32x256xf32> to vector<1x256xf32>
    %79 = arith.mulf %77, %78 : vector<1x256xf32>
    %c6 = arith.constant 6 : index
    %c0_52 = arith.constant 0 : index
    %80 = vector.load %arg9[%c6, %c0_52] : memref<32x256xf32, #tpu.memory_space<vmem>>, vector<1x256xf32>
    tpu.vector_store %arg9[%c6, %c0_52], %79 {strides = array<i32>} : memref<32x256xf32, #tpu.memory_space<vmem>>, vector<1x256xf32>,
    %c0_53 = arith.constant 0 : index
    %c112 = arith.constant 112 : index
    %81 = vector.load %arg7[%c0_53, %c112] : memref<8x512xf32, #tpu.memory_space<vmem>>, vector<8x256xf32>
    %82 = arith.mulf %12, %81 : vector<8x256xf32>
    %cst_54 = arith.constant dense<0.000000e+00> : vector<256xf32>
    %83 = vector.multi_reduction <add>, %82, %cst_54 [0] : vector<8x256xf32> to vector<256xf32>
    %84 = vector.shape_cast %83 : vector<256xf32> to vector<1x256xf32>
    %cst_55 = arith.constant 0.353553385 : f32
    %85 = vector.broadcast %cst_55 : f32 to vector<1x256xf32>
    %86 = arith.mulf %84, %85 : vector<1x256xf32>
    %87 = vector.extract_strided_slice %13 {offsets = [7, 0], sizes = [1, 256], strides = [1, 1]} : vector<32x256xf32> to vector<1x256xf32>
    %88 = arith.mulf %86, %87 : vector<1x256xf32>
    %c7 = arith.constant 7 : index
    %c0_56 = arith.constant 0 : index
    %89 = vector.load %arg9[%c7, %c0_56] : memref<32x256xf32, #tpu.memory_space<vmem>>, vector<1x256xf32>
    tpu.vector_store %arg9[%c7, %c0_56], %88 {strides = array<i32>} : memref<32x256xf32, #tpu.memory_space<vmem>>, vector<1x256xf32>,
    %c0_57 = arith.constant 0 : index
    %c113 = arith.constant 113 : index
    %90 = vector.load %arg7[%c0_57, %c113] : memref<8x512xf32, #tpu.memory_space<vmem>>, vector<8x256xf32>
    %91 = arith.mulf %12, %90 : vector<8x256xf32>
    %cst_58 = arith.constant dense<0.000000e+00> : vector<256xf32>
    %92 = vector.multi_reduction <add>, %91, %cst_58 [0] : vector<8x256xf32> to vector<256xf32>
    %93 = vector.shape_cast %92 : vector<256xf32> to vector<1x256xf32>
    %cst_59 = arith.constant 0.353553385 : f32
    %94 = vector.broadcast %cst_59 : f32 to vector<1x256xf32>
    %95 = arith.mulf %93, %94 : vector<1x256xf32>
    %96 = vector.extract_strided_slice %13 {offsets = [8, 0], sizes = [1, 256], strides = [1, 1]} : vector<32x256xf32> to vector<1x256xf32>
    %97 = arith.mulf %95, %96 : vector<1x256xf32>
    %c8 = arith.constant 8 : index
    %c0_60 = arith.constant 0 : index
    %98 = vector.load %arg9[%c8, %c0_60] : memref<32x256xf32, #tpu.memory_space<vmem>>, vector<1x256xf32>
    tpu.vector_store %arg9[%c8, %c0_60], %97 {strides = array<i32>} : memref<32x256xf32, #tpu.memory_space<vmem>>, vector<1x256xf32>,
    %c0_61 = arith.constant 0 : index
    %c114 = arith.constant 114 : index
    %99 = vector.load %arg7[%c0_61, %c114] : memref<8x512xf32, #tpu.memory_space<vmem>>, vector<8x256xf32>
    %100 = arith.mulf %12, %99 : vector<8x256xf32>
    %cst_62 = arith.constant dense<0.000000e+00> : vector<256xf32>
    %101 = vector.multi_reduction <add>, %100, %cst_62 [0] : vector<8x256xf32> to vector<256xf32>
    %102 = vector.shape_cast %101 : vector<256xf32> to vector<1x256xf32>
    %cst_63 = arith.constant 0.353553385 : f32
    %103 = vector.broadcast %cst_63 : f32 to vector<1x256xf32>
    %104 = arith.mulf %102, %103 : vector<1x256xf32>
    %105 = vector.extract_strided_slice %13 {offsets = [9, 0], sizes = [1, 256], strides = [1, 1]} : vector<32x256xf32> to vector<1x256xf32>
    %106 = arith.mulf %104, %105 : vector<1x256xf32>
    %c9 = arith.constant 9 : index
    %c0_64 = arith.constant 0 : index
    %107 = vector.load %arg9[%c9, %c0_64] : memref<32x256xf32, #tpu.memory_space<vmem>>, vector<1x256xf32>
    tpu.vector_store %arg9[%c9, %c0_64], %106 {strides = array<i32>} : memref<32x256xf32, #tpu.memory_space<vmem>>, vector<1x256xf32>,
    %c0_65 = arith.constant 0 : index
    %c126 = arith.constant 126 : index
    %108 = vector.load %arg7[%c0_65, %c126] : memref<8x512xf32, #tpu.memory_space<vmem>>, vector<8x256xf32>
    %109 = arith.mulf %12, %108 : vector<8x256xf32>
    %cst_66 = arith.constant dense<0.000000e+00> : vector<256xf32>
    %110 = vector.multi_reduction <add>, %109, %cst_66 [0] : vector<8x256xf32> to vector<256xf32>
    %111 = vector.shape_cast %110 : vector<256xf32> to vector<1x256xf32>
    %cst_67 = arith.constant 0.353553385 : f32
    %112 = vector.broadcast %cst_67 : f32 to vector<1x256xf32>
    %113 = arith.mulf %111, %112 : vector<1x256xf32>
    %114 = vector.extract_strided_slice %13 {offsets = [10, 0], sizes = [1, 256], strides = [1, 1]} : vector<32x256xf32> to vector<1x256xf32>
    %115 = arith.mulf %113, %114 : vector<1x256xf32>
    %c10 = arith.constant 10 : index
    %c0_68 = arith.constant 0 : index
    %116 = vector.load %arg9[%c10, %c0_68] : memref<32x256xf32, #tpu.memory_space<vmem>>, vector<1x256xf32>
    tpu.vector_store %arg9[%c10, %c0_68], %115 {strides = array<i32>} : memref<32x256xf32, #tpu.memory_space<vmem>>, vector<1x256xf32>,
    %c0_69 = arith.constant 0 : index
    %c127 = arith.constant 127 : index
    %117 = vector.load %arg7[%c0_69, %c127] : memref<8x512xf32, #tpu.memory_space<vmem>>, vector<8x256xf32>
    %118 = arith.mulf %12, %117 : vector<8x256xf32>
    %cst_70 = arith.constant dense<0.000000e+00> : vector<256xf32>
    %119 = vector.multi_reduction <add>, %118, %cst_70 [0] : vector<8x256xf32> to vector<256xf32>
    %120 = vector.shape_cast %119 : vector<256xf32> to vector<1x256xf32>
    %cst_71 = arith.constant 0.353553385 : f32
    %121 = vector.broadcast %cst_71 : f32 to vector<1x256xf32>
    %122 = arith.mulf %120, %121 : vector<1x256xf32>
    %123 = vector.extract_strided_slice %13 {offsets = [11, 0], sizes = [1, 256], strides = [1, 1]} : vector<32x256xf32> to vector<1x256xf32>
    %124 = arith.mulf %122, %123 : vector<1x256xf32>
    %c11 = arith.constant 11 : index
    %c0_72 = arith.constant 0 : index
    %125 = vector.load %arg9[%c11, %c0_72] : memref<32x256xf32, #tpu.memory_space<vmem>>, vector<1x256xf32>
    tpu.vector_store %arg9[%c11, %c0_72], %124 {strides = array<i32>} : memref<32x256xf32, #tpu.memory_space<vmem>>, vector<1x256xf32>,
    %c0_73 = arith.constant 0 : index
    %c128_74 = arith.constant 128 : index
    %126 = vector.load %arg7[%c0_73, %c128_74] : memref<8x512xf32, #tpu.memory_space<vmem>>, vector<8x256xf32>
    %127 = arith.mulf %12, %126 : vector<8x256xf32>
    %cst_75 = arith.constant dense<0.000000e+00> : vector<256xf32>
    %128 = vector.multi_reduction <add>, %127, %cst_75 [0] : vector<8x256xf32> to vector<256xf32>
    %129 = vector.shape_cast %128 : vector<256xf32> to vector<1x256xf32>
    %cst_76 = arith.constant 0.353553385 : f32
    %130 = vector.broadcast %cst_76 : f32 to vector<1x256xf32>
    %131 = arith.mulf %129, %130 : vector<1x256xf32>
    %132 = vector.extract_strided_slice %13 {offsets = [12, 0], sizes = [1, 256], strides = [1, 1]} : vector<32x256xf32> to vector<1x256xf32>
    %133 = arith.mulf %131, %132 : vector<1x256xf32>
    %c12 = arith.constant 12 : index
    %c0_77 = arith.constant 0 : index
    %134 = vector.load %arg9[%c12, %c0_77] : memref<32x256xf32, #tpu.memory_space<vmem>>, vector<1x256xf32>
    tpu.vector_store %arg9[%c12, %c0_77], %133 {strides = array<i32>} : memref<32x256xf32, #tpu.memory_space<vmem>>, vector<1x256xf32>,
    %c0_78 = arith.constant 0 : index
    %c129 = arith.constant 129 : index
    %135 = vector.load %arg7[%c0_78, %c129] : memref<8x512xf32, #tpu.memory_space<vmem>>, vector<8x256xf32>
    %136 = arith.mulf %12, %135 : vector<8x256xf32>
    %cst_79 = arith.constant dense<0.000000e+00> : vector<256xf32>
    %137 = vector.multi_reduction <add>, %136, %cst_79 [0] : vector<8x256xf32> to vector<256xf32>
    %138 = vector.shape_cast %137 : vector<256xf32> to vector<1x256xf32>
    %cst_80 = arith.constant 0.353553385 : f32
    %139 = vector.broadcast %cst_80 : f32 to vector<1x256xf32>
    %140 = arith.mulf %138, %139 : vector<1x256xf32>
    %141 = vector.extract_strided_slice %13 {offsets = [13, 0], sizes = [1, 256], strides = [1, 1]} : vector<32x256xf32> to vector<1x256xf32>
    %142 = arith.mulf %140, %141 : vector<1x256xf32>
    %c13 = arith.constant 13 : index
    %c0_81 = arith.constant 0 : index
    %143 = vector.load %arg9[%c13, %c0_81] : memref<32x256xf32, #tpu.memory_space<vmem>>, vector<1x256xf32>
    tpu.vector_store %arg9[%c13, %c0_81], %142 {strides = array<i32>} : memref<32x256xf32, #tpu.memory_space<vmem>>, vector<1x256xf32>,
    %c0_82 = arith.constant 0 : index
    %c130 = arith.constant 130 : index
    %144 = vector.load %arg7[%c0_82, %c130] : memref<8x512xf32, #tpu.memory_space<vmem>>, vector<8x256xf32>
    %145 = arith.mulf %12, %144 : vector<8x256xf32>
    %cst_83 = arith.constant dense<0.000000e+00> : vector<256xf32>
    %146 = vector.multi_reduction <add>, %145, %cst_83 [0] : vector<8x256xf32> to vector<256xf32>
    %147 = vector.shape_cast %146 : vector<256xf32> to vector<1x256xf32>
    %cst_84 = arith.constant 0.353553385 : f32
    %148 = vector.broadcast %cst_84 : f32 to vector<1x256xf32>
    %149 = arith.mulf %147, %148 : vector<1x256xf32>
    %150 = vector.extract_strided_slice %13 {offsets = [14, 0], sizes = [1, 256], strides = [1, 1]} : vector<32x256xf32> to vector<1x256xf32>
    %151 = arith.mulf %149, %150 : vector<1x256xf32>
    %c14 = arith.constant 14 : index
    %c0_85 = arith.constant 0 : index
    %152 = vector.load %arg9[%c14, %c0_85] : memref<32x256xf32, #tpu.memory_space<vmem>>, vector<1x256xf32>
    tpu.vector_store %arg9[%c14, %c0_85], %151 {strides = array<i32>} : memref<32x256xf32, #tpu.memory_space<vmem>>, vector<1x256xf32>,
    %c0_86 = arith.constant 0 : index
    %c142 = arith.constant 142 : index
    %153 = vector.load %arg7[%c0_86, %c142] : memref<8x512xf32, #tpu.memory_space<vmem>>, vector<8x256xf32>
    %154 = arith.mulf %12, %153 : vector<8x256xf32>
    %cst_87 = arith.constant dense<0.000000e+00> : vector<256xf32>
    %155 = vector.multi_reduction <add>, %154, %cst_87 [0] : vector<8x256xf32> to vector<256xf32>
    %156 = vector.shape_cast %155 : vector<256xf32> to vector<1x256xf32>
    %cst_88 = arith.constant 0.353553385 : f32
    %157 = vector.broadcast %cst_88 : f32 to vector<1x256xf32>
    %158 = arith.mulf %156, %157 : vector<1x256xf32>
    %159 = vector.extract_strided_slice %13 {offsets = [15, 0], sizes = [1, 256], strides = [1, 1]} : vector<32x256xf32> to vector<1x256xf32>
    %160 = arith.mulf %158, %159 : vector<1x256xf32>
    %c15 = arith.constant 15 : index
    %c0_89 = arith.constant 0 : index
    %161 = vector.load %arg9[%c15, %c0_89] : memref<32x256xf32, #tpu.memory_space<vmem>>, vector<1x256xf32>
    tpu.vector_store %arg9[%c15, %c0_89], %160 {strides = array<i32>} : memref<32x256xf32, #tpu.memory_space<vmem>>, vector<1x256xf32>,
    %c0_90 = arith.constant 0 : index
    %c143 = arith.constant 143 : index
    %162 = vector.load %arg7[%c0_90, %c143] : memref<8x512xf32, #tpu.memory_space<vmem>>, vector<8x256xf32>
    %163 = arith.mulf %12, %162 : vector<8x256xf32>
    %cst_91 = arith.constant dense<0.000000e+00> : vector<256xf32>
    %164 = vector.multi_reduction <add>, %163, %cst_91 [0] : vector<8x256xf32> to vector<256xf32>
    %165 = vector.shape_cast %164 : vector<256xf32> to vector<1x256xf32>
    %cst_92 = arith.constant 0.353553385 : f32
    %166 = vector.broadcast %cst_92 : f32 to vector<1x256xf32>
    %167 = arith.mulf %165, %166 : vector<1x256xf32>
    %168 = vector.extract_strided_slice %13 {offsets = [16, 0], sizes = [1, 256], strides = [1, 1]} : vector<32x256xf32> to vector<1x256xf32>
    %169 = arith.mulf %167, %168 : vector<1x256xf32>
    %c16 = arith.constant 16 : index
    %c0_93 = arith.constant 0 : index
    %170 = vector.load %arg9[%c16, %c0_93] : memref<32x256xf32, #tpu.memory_space<vmem>>, vector<1x256xf32>
    tpu.vector_store %arg9[%c16, %c0_93], %169 {strides = array<i32>} : memref<32x256xf32, #tpu.memory_space<vmem>>, vector<1x256xf32>,
    %c0_94 = arith.constant 0 : index
    %c144 = arith.constant 144 : index
    %171 = vector.load %arg7[%c0_94, %c144] : memref<8x512xf32, #tpu.memory_space<vmem>>, vector<8x256xf32>
    %172 = arith.mulf %12, %171 : vector<8x256xf32>
    %cst_95 = arith.constant dense<0.000000e+00> : vector<256xf32>
    %173 = vector.multi_reduction <add>, %172, %cst_95 [0] : vector<8x256xf32> to vector<256xf32>
    %174 = vector.shape_cast %173 : vector<256xf32> to vector<1x256xf32>
    %cst_96 = arith.constant 0.353553385 : f32
    %175 = vector.broadcast %cst_96 : f32 to vector<1x256xf32>
    %176 = arith.mulf %174, %175 : vector<1x256xf32>
    %177 = vector.extract_strided_slice %13 {offsets = [17, 0], sizes = [1, 256], strides = [1, 1]} : vector<32x256xf32> to vector<1x256xf32>
    %178 = arith.mulf %176, %177 : vector<1x256xf32>
    %c17 = arith.constant 17 : index
    %c0_97 = arith.constant 0 : index
    %179 = vector.load %arg9[%c17, %c0_97] : memref<32x256xf32, #tpu.memory_space<vmem>>, vector<1x256xf32>
    tpu.vector_store %arg9[%c17, %c0_97], %178 {strides = array<i32>} : memref<32x256xf32, #tpu.memory_space<vmem>>, vector<1x256xf32>,
    %c0_98 = arith.constant 0 : index
    %c145 = arith.constant 145 : index
    %180 = vector.load %arg7[%c0_98, %c145] : memref<8x512xf32, #tpu.memory_space<vmem>>, vector<8x256xf32>
    %181 = arith.mulf %12, %180 : vector<8x256xf32>
    %cst_99 = arith.constant dense<0.000000e+00> : vector<256xf32>
    %182 = vector.multi_reduction <add>, %181, %cst_99 [0] : vector<8x256xf32> to vector<256xf32>
    %183 = vector.shape_cast %182 : vector<256xf32> to vector<1x256xf32>
    %cst_100 = arith.constant 0.353553385 : f32
    %184 = vector.broadcast %cst_100 : f32 to vector<1x256xf32>
    %185 = arith.mulf %183, %184 : vector<1x256xf32>
    %186 = vector.extract_strided_slice %13 {offsets = [18, 0], sizes = [1, 256], strides = [1, 1]} : vector<32x256xf32> to vector<1x256xf32>
    %187 = arith.mulf %185, %186 : vector<1x256xf32>
    %c18 = arith.constant 18 : index
    %c0_101 = arith.constant 0 : index
    %188 = vector.load %arg9[%c18, %c0_101] : memref<32x256xf32, #tpu.memory_space<vmem>>, vector<1x256xf32>
    tpu.vector_store %arg9[%c18, %c0_101], %187 {strides = array<i32>} : memref<32x256xf32, #tpu.memory_space<vmem>>, vector<1x256xf32>,
    %c0_102 = arith.constant 0 : index
    %c146 = arith.constant 146 : index
    %189 = vector.load %arg7[%c0_102, %c146] : memref<8x512xf32, #tpu.memory_space<vmem>>, vector<8x256xf32>
    %190 = arith.mulf %12, %189 : vector<8x256xf32>
    %cst_103 = arith.constant dense<0.000000e+00> : vector<256xf32>
    %191 = vector.multi_reduction <add>, %190, %cst_103 [0] : vector<8x256xf32> to vector<256xf32>
    %192 = vector.shape_cast %191 : vector<256xf32> to vector<1x256xf32>
    %cst_104 = arith.constant 0.353553385 : f32
    %193 = vector.broadcast %cst_104 : f32 to vector<1x256xf32>
    %194 = arith.mulf %192, %193 : vector<1x256xf32>
    %195 = vector.extract_strided_slice %13 {offsets = [19, 0], sizes = [1, 256], strides = [1, 1]} : vector<32x256xf32> to vector<1x256xf32>
    %196 = arith.mulf %194, %195 : vector<1x256xf32>
    %c19 = arith.constant 19 : index
    %c0_105 = arith.constant 0 : index
    %197 = vector.load %arg9[%c19, %c0_105] : memref<32x256xf32, #tpu.memory_space<vmem>>, vector<1x256xf32>
    tpu.vector_store %arg9[%c19, %c0_105], %196 {strides = array<i32>} : memref<32x256xf32, #tpu.memory_space<vmem>>, vector<1x256xf32>,
    %c0_106 = arith.constant 0 : index
    %c158 = arith.constant 158 : index
    %198 = vector.load %arg7[%c0_106, %c158] : memref<8x512xf32, #tpu.memory_space<vmem>>, vector<8x256xf32>
    %199 = arith.mulf %12, %198 : vector<8x256xf32>
    %cst_107 = arith.constant dense<0.000000e+00> : vector<256xf32>
    %200 = vector.multi_reduction <add>, %199, %cst_107 [0] : vector<8x256xf32> to vector<256xf32>
    %201 = vector.shape_cast %200 : vector<256xf32> to vector<1x256xf32>
    %cst_108 = arith.constant 0.353553385 : f32
    %202 = vector.broadcast %cst_108 : f32 to vector<1x256xf32>
    %203 = arith.mulf %201, %202 : vector<1x256xf32>
    %204 = vector.extract_strided_slice %13 {offsets = [20, 0], sizes = [1, 256], strides = [1, 1]} : vector<32x256xf32> to vector<1x256xf32>
    %205 = arith.mulf %203, %204 : vector<1x256xf32>
    %c20 = arith.constant 20 : index
    %c0_109 = arith.constant 0 : index
    %206 = vector.load %arg9[%c20, %c0_109] : memref<32x256xf32, #tpu.memory_space<vmem>>, vector<1x256xf32>
    tpu.vector_store %arg9[%c20, %c0_109], %205 {strides = array<i32>} : memref<32x256xf32, #tpu.memory_space<vmem>>, vector<1x256xf32>,
    %c0_110 = arith.constant 0 : index
    %c159 = arith.constant 159 : index
    %207 = vector.load %arg7[%c0_110, %c159] : memref<8x512xf32, #tpu.memory_space<vmem>>, vector<8x256xf32>
    %208 = arith.mulf %12, %207 : vector<8x256xf32>
    %cst_111 = arith.constant dense<0.000000e+00> : vector<256xf32>
    %209 = vector.multi_reduction <add>, %208, %cst_111 [0] : vector<8x256xf32> to vector<256xf32>
    %210 = vector.shape_cast %209 : vector<256xf32> to vector<1x256xf32>
    %cst_112 = arith.constant 0.353553385 : f32
    %211 = vector.broadcast %cst_112 : f32 to vector<1x256xf32>
    %212 = arith.mulf %210, %211 : vector<1x256xf32>
    %213 = vector.extract_strided_slice %13 {offsets = [21, 0], sizes = [1, 256], strides = [1, 1]} : vector<32x256xf32> to vector<1x256xf32>
    %214 = arith.mulf %212, %213 : vector<1x256xf32>
    %c21 = arith.constant 21 : index
    %c0_113 = arith.constant 0 : index
    %215 = vector.load %arg9[%c21, %c0_113] : memref<32x256xf32, #tpu.memory_space<vmem>>, vector<1x256xf32>
    tpu.vector_store %arg9[%c21, %c0_113], %214 {strides = array<i32>} : memref<32x256xf32, #tpu.memory_space<vmem>>, vector<1x256xf32>,
    %c0_114 = arith.constant 0 : index
    %c160 = arith.constant 160 : index
    %216 = vector.load %arg7[%c0_114, %c160] : memref<8x512xf32, #tpu.memory_space<vmem>>, vector<8x256xf32>
    %217 = arith.mulf %12, %216 : vector<8x256xf32>
    %cst_115 = arith.constant dense<0.000000e+00> : vector<256xf32>
    %218 = vector.multi_reduction <add>, %217, %cst_115 [0] : vector<8x256xf32> to vector<256xf32>
    %219 = vector.shape_cast %218 : vector<256xf32> to vector<1x256xf32>
    %cst_116 = arith.constant 0.353553385 : f32
    %220 = vector.broadcast %cst_116 : f32 to vector<1x256xf32>
    %221 = arith.mulf %219, %220 : vector<1x256xf32>
    %222 = vector.extract_strided_slice %13 {offsets = [22, 0], sizes = [1, 256], strides = [1, 1]} : vector<32x256xf32> to vector<1x256xf32>
    %223 = arith.mulf %221, %222 : vector<1x256xf32>
    %c22 = arith.constant 22 : index
    %c0_117 = arith.constant 0 : index
    %224 = vector.load %arg9[%c22, %c0_117] : memref<32x256xf32, #tpu.memory_space<vmem>>, vector<1x256xf32>
    tpu.vector_store %arg9[%c22, %c0_117], %223 {strides = array<i32>} : memref<32x256xf32, #tpu.memory_space<vmem>>, vector<1x256xf32>,
    %c0_118 = arith.constant 0 : index
    %c161 = arith.constant 161 : index
    %225 = vector.load %arg7[%c0_118, %c161] : memref<8x512xf32, #tpu.memory_space<vmem>>, vector<8x256xf32>
    %226 = arith.mulf %12, %225 : vector<8x256xf32>
    %cst_119 = arith.constant dense<0.000000e+00> : vector<256xf32>
    %227 = vector.multi_reduction <add>, %226, %cst_119 [0] : vector<8x256xf32> to vector<256xf32>
    %228 = vector.shape_cast %227 : vector<256xf32> to vector<1x256xf32>
    %cst_120 = arith.constant 0.353553385 : f32
    %229 = vector.broadcast %cst_120 : f32 to vector<1x256xf32>
    %230 = arith.mulf %228, %229 : vector<1x256xf32>
    %231 = vector.extract_strided_slice %13 {offsets = [23, 0], sizes = [1, 256], strides = [1, 1]} : vector<32x256xf32> to vector<1x256xf32>
    %232 = arith.mulf %230, %231 : vector<1x256xf32>
    %c23 = arith.constant 23 : index
    %c0_121 = arith.constant 0 : index
    %233 = vector.load %arg9[%c23, %c0_121] : memref<32x256xf32, #tpu.memory_space<vmem>>, vector<1x256xf32>
    tpu.vector_store %arg9[%c23, %c0_121], %232 {strides = array<i32>} : memref<32x256xf32, #tpu.memory_space<vmem>>, vector<1x256xf32>,
    %c0_122 = arith.constant 0 : index
    %c162 = arith.constant 162 : index
    %234 = vector.load %arg7[%c0_122, %c162] : memref<8x512xf32, #tpu.memory_space<vmem>>, vector<8x256xf32>
    %235 = arith.mulf %12, %234 : vector<8x256xf32>
    %cst_123 = arith.constant dense<0.000000e+00> : vector<256xf32>
    %236 = vector.multi_reduction <add>, %235, %cst_123 [0] : vector<8x256xf32> to vector<256xf32>
    %237 = vector.shape_cast %236 : vector<256xf32> to vector<1x256xf32>
    %cst_124 = arith.constant 0.353553385 : f32
    %238 = vector.broadcast %cst_124 : f32 to vector<1x256xf32>
    %239 = arith.mulf %237, %238 : vector<1x256xf32>
    %240 = vector.extract_strided_slice %13 {offsets = [24, 0], sizes = [1, 256], strides = [1, 1]} : vector<32x256xf32> to vector<1x256xf32>
    %241 = arith.mulf %239, %240 : vector<1x256xf32>
    %c24 = arith.constant 24 : index
    %c0_125 = arith.constant 0 : index
    %242 = vector.load %arg9[%c24, %c0_125] : memref<32x256xf32, #tpu.memory_space<vmem>>, vector<1x256xf32>
    tpu.vector_store %arg9[%c24, %c0_125], %241 {strides = array<i32>} : memref<32x256xf32, #tpu.memory_space<vmem>>, vector<1x256xf32>,
    %c0_126 = arith.constant 0 : index
    %c0_127 = arith.constant 0 : index
    %243 = vector.load %arg9[%c0_126, %c0_127] : memref<32x256xf32, #tpu.memory_space<vmem>>, vector<32x256xf32>
    %cst_128 = arith.constant dense<0xFF800000> : vector<256xf32>
    %244 = vector.multi_reduction <maximumf>, %243, %cst_128 [0] : vector<32x256xf32> to vector<256xf32>
    %245 = vector.shape_cast %244 : vector<256xf32> to vector<1x256xf32>
    %246 = vector.broadcast %245 : vector<1x256xf32> to vector<32x256xf32>
    %247 = arith.subf %243, %246 : vector<32x256xf32>
    %248 = math.exp %247 : vector<32x256xf32>
    %cst_129 = arith.constant dense<0.000000e+00> : vector<256xf32>
    %249 = vector.multi_reduction <add>, %248, %cst_129 [0] : vector<32x256xf32> to vector<256xf32>
    %250 = vector.shape_cast %249 : vector<256xf32> to vector<1x256xf32>
    %cst_130 = arith.constant 1.000000e+00 : f32
    %251 = vector.broadcast %cst_130 : f32 to vector<1x256xf32>
    %252 = arith.divf %251, %250 : vector<1x256xf32>
    %253 = vector.broadcast %252 : vector<1x256xf32> to vector<32x256xf32>
    %254 = arith.mulf %248, %253 : vector<32x256xf32>
    %cst_131 = arith.constant 0.353553385 : f32
    %255 = vector.broadcast %cst_131 : f32 to vector<32x256xf32>
    %256 = arith.mulf %15, %255 : vector<32x256xf32>
    %257 = arith.addf %254, %256 : vector<32x256xf32>
    %258 = arith.mulf %257, %13 : vector<32x256xf32>
    %cst_132 = arith.constant 0.000000e+00 : f32
    %259 = vector.broadcast %cst_132 : f32 to vector<8x256xf32>
    %260 = vector.extract_strided_slice %258 {offsets = [0, 0], sizes = [1, 256], strides = [1, 1]} : vector<32x256xf32> to vector<1x256xf32>
    %c0_133 = arith.constant 0 : index
    %c94_134 = arith.constant 94 : index
    %261 = vector.load %arg8[%c0_133, %c94_134] : memref<8x512xf32, #tpu.memory_space<vmem>>, vector<8x256xf32>
    %262 = vector.broadcast %260 : vector<1x256xf32> to vector<8x256xf32>
    %263 = arith.mulf %262, %261 : vector<8x256xf32>
    %264 = arith.addf %259, %263 : vector<8x256xf32>
    %265 = vector.extract_strided_slice %258 {offsets = [1, 0], sizes = [1, 256], strides = [1, 1]} : vector<32x256xf32> to vector<1x256xf32>
    %c0_135 = arith.constant 0 : index
    %c95_136 = arith.constant 95 : index
    %266 = vector.load %arg8[%c0_135, %c95_136] : memref<8x512xf32, #tpu.memory_space<vmem>>, vector<8x256xf32>
    %267 = vector.broadcast %265 : vector<1x256xf32> to vector<8x256xf32>
    %268 = arith.mulf %267, %266 : vector<8x256xf32>
    %269 = arith.addf %264, %268 : vector<8x256xf32>
    %270 = vector.extract_strided_slice %258 {offsets = [2, 0], sizes = [1, 256], strides = [1, 1]} : vector<32x256xf32> to vector<1x256xf32>
    %c0_137 = arith.constant 0 : index
    %c96_138 = arith.constant 96 : index
    %271 = vector.load %arg8[%c0_137, %c96_138] : memref<8x512xf32, #tpu.memory_space<vmem>>, vector<8x256xf32>
    %272 = vector.broadcast %270 : vector<1x256xf32> to vector<8x256xf32>
    %273 = arith.mulf %272, %271 : vector<8x256xf32>
    %274 = arith.addf %269, %273 : vector<8x256xf32>
    %275 = vector.extract_strided_slice %258 {offsets = [3, 0], sizes = [1, 256], strides = [1, 1]} : vector<32x256xf32> to vector<1x256xf32>
    %c0_139 = arith.constant 0 : index
    %c97_140 = arith.constant 97 : index
    %276 = vector.load %arg8[%c0_139, %c97_140] : memref<8x512xf32, #tpu.memory_space<vmem>>, vector<8x256xf32>
    %277 = vector.broadcast %275 : vector<1x256xf32> to vector<8x256xf32>
    %278 = arith.mulf %277, %276 : vector<8x256xf32>
    %279 = arith.addf %274, %278 : vector<8x256xf32>
    %280 = vector.extract_strided_slice %258 {offsets = [4, 0], sizes = [1, 256], strides = [1, 1]} : vector<32x256xf32> to vector<1x256xf32>
    %c0_141 = arith.constant 0 : index
    %c98_142 = arith.constant 98 : index
    %281 = vector.load %arg8[%c0_141, %c98_142] : memref<8x512xf32, #tpu.memory_space<vmem>>, vector<8x256xf32>
    %282 = vector.broadcast %280 : vector<1x256xf32> to vector<8x256xf32>
    %283 = arith.mulf %282, %281 : vector<8x256xf32>
    %284 = arith.addf %279, %283 : vector<8x256xf32>
    %285 = vector.extract_strided_slice %258 {offsets = [5, 0], sizes = [1, 256], strides = [1, 1]} : vector<32x256xf32> to vector<1x256xf32>
    %c0_143 = arith.constant 0 : index
    %c110_144 = arith.constant 110 : index
    %286 = vector.load %arg8[%c0_143, %c110_144] : memref<8x512xf32, #tpu.memory_space<vmem>>, vector<8x256xf32>
    %287 = vector.broadcast %285 : vector<1x256xf32> to vector<8x256xf32>
    %288 = arith.mulf %287, %286 : vector<8x256xf32>
    %289 = arith.addf %284, %288 : vector<8x256xf32>
    %290 = vector.extract_strided_slice %258 {offsets = [6, 0], sizes = [1, 256], strides = [1, 1]} : vector<32x256xf32> to vector<1x256xf32>
    %c0_145 = arith.constant 0 : index
    %c111_146 = arith.constant 111 : index
    %291 = vector.load %arg8[%c0_145, %c111_146] : memref<8x512xf32, #tpu.memory_space<vmem>>, vector<8x256xf32>
    %292 = vector.broadcast %290 : vector<1x256xf32> to vector<8x256xf32>
    %293 = arith.mulf %292, %291 : vector<8x256xf32>
    %294 = arith.addf %289, %293 : vector<8x256xf32>
    %295 = vector.extract_strided_slice %258 {offsets = [7, 0], sizes = [1, 256], strides = [1, 1]} : vector<32x256xf32> to vector<1x256xf32>
    %c0_147 = arith.constant 0 : index
    %c112_148 = arith.constant 112 : index
    %296 = vector.load %arg8[%c0_147, %c112_148] : memref<8x512xf32, #tpu.memory_space<vmem>>, vector<8x256xf32>
    %297 = vector.broadcast %295 : vector<1x256xf32> to vector<8x256xf32>
    %298 = arith.mulf %297, %296 : vector<8x256xf32>
    %299 = arith.addf %294, %298 : vector<8x256xf32>
    %300 = vector.extract_strided_slice %258 {offsets = [8, 0], sizes = [1, 256], strides = [1, 1]} : vector<32x256xf32> to vector<1x256xf32>
    %c0_149 = arith.constant 0 : index
    %c113_150 = arith.constant 113 : index
    %301 = vector.load %arg8[%c0_149, %c113_150] : memref<8x512xf32, #tpu.memory_space<vmem>>, vector<8x256xf32>
    %302 = vector.broadcast %300 : vector<1x256xf32> to vector<8x256xf32>
    %303 = arith.mulf %302, %301 : vector<8x256xf32>
    %304 = arith.addf %299, %303 : vector<8x256xf32>
    %305 = vector.extract_strided_slice %258 {offsets = [9, 0], sizes = [1, 256], strides = [1, 1]} : vector<32x256xf32> to vector<1x256xf32>
    %c0_151 = arith.constant 0 : index
    %c114_152 = arith.constant 114 : index
    %306 = vector.load %arg8[%c0_151, %c114_152] : memref<8x512xf32, #tpu.memory_space<vmem>>, vector<8x256xf32>
    %307 = vector.broadcast %305 : vector<1x256xf32> to vector<8x256xf32>
    %308 = arith.mulf %307, %306 : vector<8x256xf32>
    %309 = arith.addf %304, %308 : vector<8x256xf32>
    %310 = vector.extract_strided_slice %258 {offsets = [10, 0], sizes = [1, 256], strides = [1, 1]} : vector<32x256xf32> to vector<1x256xf32>
    %c0_153 = arith.constant 0 : index
    %c126_154 = arith.constant 126 : index
    %311 = vector.load %arg8[%c0_153, %c126_154] : memref<8x512xf32, #tpu.memory_space<vmem>>, vector<8x256xf32>
    %312 = vector.broadcast %310 : vector<1x256xf32> to vector<8x256xf32>
    %313 = arith.mulf %312, %311 : vector<8x256xf32>
    %314 = arith.addf %309, %313 : vector<8x256xf32>
    %315 = vector.extract_strided_slice %258 {offsets = [11, 0], sizes = [1, 256], strides = [1, 1]} : vector<32x256xf32> to vector<1x256xf32>
    %c0_155 = arith.constant 0 : index
    %c127_156 = arith.constant 127 : index
    %316 = vector.load %arg8[%c0_155, %c127_156] : memref<8x512xf32, #tpu.memory_space<vmem>>, vector<8x256xf32>
    %317 = vector.broadcast %315 : vector<1x256xf32> to vector<8x256xf32>
    %318 = arith.mulf %317, %316 : vector<8x256xf32>
    %319 = arith.addf %314, %318 : vector<8x256xf32>
    %320 = vector.extract_strided_slice %258 {offsets = [12, 0], sizes = [1, 256], strides = [1, 1]} : vector<32x256xf32> to vector<1x256xf32>
    %c0_157 = arith.constant 0 : index
    %c128_158 = arith.constant 128 : index
    %321 = vector.load %arg8[%c0_157, %c128_158] : memref<8x512xf32, #tpu.memory_space<vmem>>, vector<8x256xf32>
    %322 = vector.broadcast %320 : vector<1x256xf32> to vector<8x256xf32>
    %323 = arith.mulf %322, %321 : vector<8x256xf32>
    %324 = arith.addf %319, %323 : vector<8x256xf32>
    %325 = vector.extract_strided_slice %258 {offsets = [13, 0], sizes = [1, 256], strides = [1, 1]} : vector<32x256xf32> to vector<1x256xf32>
    %c0_159 = arith.constant 0 : index
    %c129_160 = arith.constant 129 : index
    %326 = vector.load %arg8[%c0_159, %c129_160] : memref<8x512xf32, #tpu.memory_space<vmem>>, vector<8x256xf32>
    %327 = vector.broadcast %325 : vector<1x256xf32> to vector<8x256xf32>
    %328 = arith.mulf %327, %326 : vector<8x256xf32>
    %329 = arith.addf %324, %328 : vector<8x256xf32>
    %330 = vector.extract_strided_slice %258 {offsets = [14, 0], sizes = [1, 256], strides = [1, 1]} : vector<32x256xf32> to vector<1x256xf32>
    %c0_161 = arith.constant 0 : index
    %c130_162 = arith.constant 130 : index
    %331 = vector.load %arg8[%c0_161, %c130_162] : memref<8x512xf32, #tpu.memory_space<vmem>>, vector<8x256xf32>
    %332 = vector.broadcast %330 : vector<1x256xf32> to vector<8x256xf32>
    %333 = arith.mulf %332, %331 : vector<8x256xf32>
    %334 = arith.addf %329, %333 : vector<8x256xf32>
    %335 = vector.extract_strided_slice %258 {offsets = [15, 0], sizes = [1, 256], strides = [1, 1]} : vector<32x256xf32> to vector<1x256xf32>
    %c0_163 = arith.constant 0 : index
    %c142_164 = arith.constant 142 : index
    %336 = vector.load %arg8[%c0_163, %c142_164] : memref<8x512xf32, #tpu.memory_space<vmem>>, vector<8x256xf32>
    %337 = vector.broadcast %335 : vector<1x256xf32> to vector<8x256xf32>
    %338 = arith.mulf %337, %336 : vector<8x256xf32>
    %339 = arith.addf %334, %338 : vector<8x256xf32>
    %340 = vector.extract_strided_slice %258 {offsets = [16, 0], sizes = [1, 256], strides = [1, 1]} : vector<32x256xf32> to vector<1x256xf32>
    %c0_165 = arith.constant 0 : index
    %c143_166 = arith.constant 143 : index
    %341 = vector.load %arg8[%c0_165, %c143_166] : memref<8x512xf32, #tpu.memory_space<vmem>>, vector<8x256xf32>
    %342 = vector.broadcast %340 : vector<1x256xf32> to vector<8x256xf32>
    %343 = arith.mulf %342, %341 : vector<8x256xf32>
    %344 = arith.addf %339, %343 : vector<8x256xf32>
    %345 = vector.extract_strided_slice %258 {offsets = [17, 0], sizes = [1, 256], strides = [1, 1]} : vector<32x256xf32> to vector<1x256xf32>
    %c0_167 = arith.constant 0 : index
    %c144_168 = arith.constant 144 : index
    %346 = vector.load %arg8[%c0_167, %c144_168] : memref<8x512xf32, #tpu.memory_space<vmem>>, vector<8x256xf32>
    %347 = vector.broadcast %345 : vector<1x256xf32> to vector<8x256xf32>
    %348 = arith.mulf %347, %346 : vector<8x256xf32>
    %349 = arith.addf %344, %348 : vector<8x256xf32>
    %350 = vector.extract_strided_slice %258 {offsets = [18, 0], sizes = [1, 256], strides = [1, 1]} : vector<32x256xf32> to vector<1x256xf32>
    %c0_169 = arith.constant 0 : index
    %c145_170 = arith.constant 145 : index
    %351 = vector.load %arg8[%c0_169, %c145_170] : memref<8x512xf32, #tpu.memory_space<vmem>>, vector<8x256xf32>
    %352 = vector.broadcast %350 : vector<1x256xf32> to vector<8x256xf32>
    %353 = arith.mulf %352, %351 : vector<8x256xf32>
    %354 = arith.addf %349, %353 : vector<8x256xf32>
    %355 = vector.extract_strided_slice %258 {offsets = [19, 0], sizes = [1, 256], strides = [1, 1]} : vector<32x256xf32> to vector<1x256xf32>
    %c0_171 = arith.constant 0 : index
    %c146_172 = arith.constant 146 : index
    %356 = vector.load %arg8[%c0_171, %c146_172] : memref<8x512xf32, #tpu.memory_space<vmem>>, vector<8x256xf32>
    %357 = vector.broadcast %355 : vector<1x256xf32> to vector<8x256xf32>
    %358 = arith.mulf %357, %356 : vector<8x256xf32>
    %359 = arith.addf %354, %358 : vector<8x256xf32>
    %360 = vector.extract_strided_slice %258 {offsets = [20, 0], sizes = [1, 256], strides = [1, 1]} : vector<32x256xf32> to vector<1x256xf32>
    %c0_173 = arith.constant 0 : index
    %c158_174 = arith.constant 158 : index
    %361 = vector.load %arg8[%c0_173, %c158_174] : memref<8x512xf32, #tpu.memory_space<vmem>>, vector<8x256xf32>
    %362 = vector.broadcast %360 : vector<1x256xf32> to vector<8x256xf32>
    %363 = arith.mulf %362, %361 : vector<8x256xf32>
    %364 = arith.addf %359, %363 : vector<8x256xf32>
    %365 = vector.extract_strided_slice %258 {offsets = [21, 0], sizes = [1, 256], strides = [1, 1]} : vector<32x256xf32> to vector<1x256xf32>
    %c0_175 = arith.constant 0 : index
    %c159_176 = arith.constant 159 : index
    %366 = vector.load %arg8[%c0_175, %c159_176] : memref<8x512xf32, #tpu.memory_space<vmem>>, vector<8x256xf32>
    %367 = vector.broadcast %365 : vector<1x256xf32> to vector<8x256xf32>
    %368 = arith.mulf %367, %366 : vector<8x256xf32>
    %369 = arith.addf %364, %368 : vector<8x256xf32>
    %370 = vector.extract_strided_slice %258 {offsets = [22, 0], sizes = [1, 256], strides = [1, 1]} : vector<32x256xf32> to vector<1x256xf32>
    %c0_177 = arith.constant 0 : index
    %c160_178 = arith.constant 160 : index
    %371 = vector.load %arg8[%c0_177, %c160_178] : memref<8x512xf32, #tpu.memory_space<vmem>>, vector<8x256xf32>
    %372 = vector.broadcast %370 : vector<1x256xf32> to vector<8x256xf32>
    %373 = arith.mulf %372, %371 : vector<8x256xf32>
    %374 = arith.addf %369, %373 : vector<8x256xf32>
    %375 = vector.extract_strided_slice %258 {offsets = [23, 0], sizes = [1, 256], strides = [1, 1]} : vector<32x256xf32> to vector<1x256xf32>
    %c0_179 = arith.constant 0 : index
    %c161_180 = arith.constant 161 : index
    %376 = vector.load %arg8[%c0_179, %c161_180] : memref<8x512xf32, #tpu.memory_space<vmem>>, vector<8x256xf32>
    %377 = vector.broadcast %375 : vector<1x256xf32> to vector<8x256xf32>
    %378 = arith.mulf %377, %376 : vector<8x256xf32>
    %379 = arith.addf %374, %378 : vector<8x256xf32>
    %380 = vector.extract_strided_slice %258 {offsets = [24, 0], sizes = [1, 256], strides = [1, 1]} : vector<32x256xf32> to vector<1x256xf32>
    %c0_181 = arith.constant 0 : index
    %c162_182 = arith.constant 162 : index
    %381 = vector.load %arg8[%c0_181, %c162_182] : memref<8x512xf32, #tpu.memory_space<vmem>>, vector<8x256xf32>
    %382 = vector.broadcast %380 : vector<1x256xf32> to vector<8x256xf32>
    %383 = arith.mulf %382, %381 : vector<8x256xf32>
    %384 = arith.addf %379, %383 : vector<8x256xf32>
    %c0_183 = arith.constant 0 : index
    %c0_184 = arith.constant 0 : index
    %c0_185 = arith.constant 0 : index
    %385 = vector.load %arg6[%c0_183, %c0_184, %c0_185] : memref<1x8x256xf32, #tpu.memory_space<vmem>>, vector<1x8x256xf32>
    %386 = vector.shape_cast %385 : vector<1x8x256xf32> to vector<8x256xf32>
    %387 = vector.shape_cast %384 : vector<8x256xf32> to vector<1x8x256xf32>
    tpu.vector_store %arg6[%c0_183, %c0_184, %c0_185], %387 {strides = array<i32>} : memref<1x8x256xf32, #tpu.memory_space<vmem>>, vector<1x8x256xf32>,
    return
  }
  func.func @transform_0(%arg0: i32) -> (i32, i32, i32) {
    %c0_i32 = arith.constant 0 : i32
    %c0_i32_0 = arith.constant 0 : i32
    %c0_i32_1 = arith.constant 0 : i32
    return %arg0, %c0_i32, %c0_i32_0 : i32, i32, i32
  }
  func.func @transform_1(%arg0: i32) -> (i32, i32, i32) {
    %c0_i32 = arith.constant 0 : i32
    %c0_i32_0 = arith.constant 0 : i32
    %c0_i32_1 = arith.constant 0 : i32
    return %arg0, %c0_i32, %c0_i32_0 : i32, i32, i32
  }
  func.func @transform_2(%arg0: i32) -> (i32, i32, i32) {
    %c0_i32 = arith.constant 0 : i32
    %c0_i32_0 = arith.constant 0 : i32
    %c0_i32_1 = arith.constant 0 : i32
    %c0_i32_2 = arith.constant 0 : i32
    return %c0_i32, %c0_i32_0, %c0_i32_1 : i32, i32, i32
  }
  func.func @transform_3(%arg0: i32) -> (i32, i32, i32) {
    %c0_i32 = arith.constant 0 : i32
    %c0_i32_0 = arith.constant 0 : i32
    %c0_i32_1 = arith.constant 0 : i32
    return %arg0, %c0_i32, %c0_i32_0 : i32, i32, i32
  }
  func.func @transform_4(%arg0: i32) -> (i32, i32) {
    %c0_i32 = arith.constant 0 : i32
    %c0_i32_0 = arith.constant 0 : i32
    %c0_i32_1 = arith.constant 0 : i32
    return %c0_i32, %c0_i32_0 : i32, i32
  }
  func.func @transform_5(%arg0: i32) -> (i32, i32, i32) {
    %c0_i32 = arith.constant 0 : i32
    %c0_i32_0 = arith.constant 0 : i32
    %c0_i32_1 = arith.constant 0 : i32
    return %arg0, %c0_i32, %c0_i32_0 : i32, i32, i32
  }
}

</mosaic_0001>

<bundles_post_ra>
// kernel: tpu_custom_call.1
= control target key start
LH: loop header
LB: loop body
LE: loop exit
PB: predicated region body
PF: predicated region fallthrough
CT: control target
= control target key end

     0   :  { %s4549_s0 = inlined_call_operand.hbm [shape: f32[2,8,256], index: 0, kind: input, shape index: {}]   ;;  %s4550_s1 = inlined_call_operand.hbm [shape: f32[2,8,256], index: 1, kind: input, shape index: {}]   ;;  %s4551_s2 = inlined_call_operand.hbm [shape: f32[1,32,256], index: 2, kind: input, shape index: {}]   ;;  %s4552_s3 = inlined_call_operand.hbm [shape: bf16[2,8,256], index: 3, kind: input, shape index: {}]   ;;  %s4553_s4 = inlined_call_operand.hbm [shape: f32[32,256], index: 4, kind: input, shape index: {}]   ;;  %s4554_s5 = inlined_call_operand.hbm [shape: f32[2,8,256], index: 5, kind: output, shape index: {}]  }
   0x1   :  { %4595 = sst [smem:[#allocation40_spill]] %s4549_s0 }
   0x2   :  { %4596 = sst [smem:[#allocation41_spill]] %s4551_s2 }
   0x3   :  { %4597 = sst [smem:[#allocation42_spill]] %s4553_s4 }
   0x4   :  { %10 = vsyncpa [#allocation6], 0 }
   0x5   :  { %12 = vsyncpa [#allocation6 + $0x1], 0 }
   0x6   :  { %13 = vsyncpa [#allocation9], 0 }
   0x7   :  { %15 = vsyncpa [#allocation9 + $0x1], 0 }
   0x8   :  { %16 = vsyncpa [#allocation12], 0 }
   0x9   :  { %18 = vsyncpa [#allocation12 + $0x1], 0 }
   0xa   :  { %19 = vsyncpa [#allocation7], 0 }
   0xb   :  { %21 = vsyncpa [#allocation7 + $0x1], 0  ;;  %s3186_s18 = smov 0   ;;  %s3188_s19 = smov 0  }
   0xc   :  { %s3190_s20 = smov 0   ;;  %s3192_s21 = smov 0  }
   0xd LB: > { %s3207_s22 = sadd.s32 4294967295, %s3119_s21   ;;  %s2607_s23 = sadd.s32 4294967294, %s3119_s21   ;;  %s3119_s21 = sphi %s3192_s21, %s4693_s21   ;;  %s3115_s20 = sphi %s3190_s20, %s4692_s20   ;;  %s3111_s19 = sphi %s3188_s19, %s4691_s19   ;;  %s3107_s18 = sphi %s3186_s18, %s4690_s18  }
   0xe   : > { %p47_p0 = scmp.ne.s32.totalorder %s3111_s19, %s3107_s18  ;;  %p4555_p1 = scmp.eq.s32.totalorder %s3207_s22, 0 }
   0xf   : > { %p171_p3 = scmp.eq.s32.totalorder %s2607_s23, 1  ;;  %p2608_p5 = scmp.ge.s32.totalorder %s3119_s21, 1 }
  0x10   : > { %p3216_p4 = por %p4555_p1, %p47_p0  ;;  %p178_p7 = scmp.lt.s32.totalorder %s3119_s21, 3 }
  0x11   : > { %p3221_p6 = por %p171_p3, %p47_p0  ;;  %s3121_s27 = smov [#allocation10]  }
  0x12   : > { %s4598_s24 = scalar_select %p3216_p4, 1, 0 }
  0x13   : > { %s4599_s25 = scalar_select %p3221_p6, 1, 0 }
  0x14   : > { %p3226_p8 = pnand %p2608_p5, %p178_p7  ;;  %s190_s28 = sshll.u32 %s3121_s27, 4  ;;  %s3230_s28 = int_to_ptr.vmem [resolvable:$true] %s190_s28 }
  0x15   : > { %s3122_s30 = smov [#allocation13]   ;;  %s4602_s2 = sld [smem:[#allocation41_spill]] }
  0x16   : > { %s4600_s26 = scalar_select %p3226_p8, 1, 0 }
  0x17   : > { %p2653_p9 = pneg %p3226_p8  ;;  %s203_s6 = sshll.u32 %s3122_s30, 4  ;;  %s3241_s6 = int_to_ptr.vmem [resolvable:$true] %s203_s6 }
  0x19   : > { %p3237_p11 = pnand %p2653_p9, %p4555_p1 }
  0x1b   : > { %s2891_s9 = scalar_lea.hbm %s4602_s2, 1024  ;;  %p2893_p13 = pneg %p3237_p11 }
  0x1c   : > { %p2892_p12 = scmp.ne.s32.totalorder %s4602_s2, %s2891_s9  ;;  %p2898_p5 = scmp.lt.u32.totalorder %s2891_s9, %s4602_s2 }
  0x1e   : > { %p2894_p0 = pnand %p2893_p13, %p2892_p12 }
  0x20   : > { %p2895_p3 = pneg %p2894_p0 }
  0x22   : > { %p2900_p7 = pnand %p2898_p5, %p2895_p3 }
  0x24   : > { %2903 = shalt.err (!%p2900_p7)
}
  0x25   : > { %s2904_s14 = scalar_lea.vmem %s3230_s28, 1024  ;;  %p2912_p2 = scmp.lt.s32.totalorder %s3230_s28, %s3230_s28 }
  0x26   : > { %p2905_p9 = scmp.ne.s32.totalorder %s3230_s28, %s2904_s14  ;;  %p2913_p12 = scmp.lt.s32.totalorder %s2904_s14, %s2904_s14 }
  0x28   : > { %p2907_p10 = pnand %p2905_p9, %p2893_p13  ;;  %p2914_p0 = por %p2913_p12, %p2912_p2 }
  0x2a   : > { %p2908_p1 = pneg %p2907_p10 }
  0x2c   : > { %p2915_p6 = pnand %p2914_p0, %p2908_p1 }
  0x2e   : > { %2918 = shalt.err (!%p2915_p6)
}
  0x2f   : > { %s3123_s15 = smov 256   ;;  %s3124_s16 = smov 16  }
  0x30   : > { %2656 = dma.hbm_to_vmem [thread:$0]  (!%p3237_p11), %s4602_s2, 1024, %s3230_s28, [#allocation9], %s3123_s15, %s3123_s15, %s3124_s16  }
  0x31   : > { %s4603_s4 = sld [smem:[#allocation42_spill]] }
  0x37   : > { %s2919_s7 = scalar_lea.hbm %s4603_s4, 1024 }
  0x38   : > { %p2920_p2 = scmp.ne.s32.totalorder %s4603_s4, %s2919_s7  ;;  %p2926_p10 = scmp.lt.u32.totalorder %s2919_s7, %s4603_s4 }
  0x3a   : > { %p2922_p1 = pnand %p2920_p2, %p2893_p13 }
  0x3c   : > { %p2923_p6 = pneg %p2922_p1 }
  0x3e   : > { %p2928_p3 = pnand %p2926_p10, %p2923_p6 }
  0x40   : > { %2931 = shalt.err (!%p2928_p3)
}
  0x41   : > { %s2932_s28 = scalar_lea.vmem %s3241_s6, 1024  ;;  %p2940_p12 = scmp.lt.s32.totalorder %s3241_s6, %s3241_s6 }
  0x42   : > { %p2933_p5 = scmp.ne.s32.totalorder %s3241_s6, %s2932_s28  ;;  %p2941_p0 = scmp.lt.s32.totalorder %s2932_s28, %s2932_s28 }
  0x44   : > { %p2935_p7 = pnand %p2933_p5, %p2893_p13  ;;  %p2942_p2 = por %p2941_p0, %p2940_p12 }
  0x46   : > { %p2936_p9 = pneg %p2935_p7 }
  0x48   : > { %p2943_p1 = pnand %p2942_p2, %p2936_p9 }
  0x4a   : > { %2946 = shalt.err (!%p2943_p1)
}
  0x4b   : > { %2659 = dma.hbm_to_vmem [thread:$0]  (!%p3237_p11), %s4603_s4, 1024, %s3241_s6, [#allocation12], %s3123_s15, %s3123_s15, %s3124_s16  }
  0x4c   : > { %s3296_s14 = sadd.s32 1, %s3119_s21   ;;  %s34_s29 = sadd.s32 1, %s3115_s20 }
  0x4d   : > { %s31_s17 = ssub.s32 %s3119_s21, %s3296_s14  ;;  %p41_p13 = scmp.ne.s32.totalorder %s3115_s20, %s3111_s19 }
  0x4e   : > { %p32_p6 = scmp.eq.s32.totalorder %s31_s17, 0  ;;  %p42_p10 = scmp.eq.s32.totalorder %s3119_s21, 0 }
  0x4f   : > { %p4604_p3 = scmp.eq.s32.totalorder %s3207_s22, 1  ;;  %p2676_p7 = scmp.lt.s32.totalorder %s3119_s21, 2 }
  0x50   : > { %s3312_s27 = scalar_select %p32_p6, %s3115_s20, %s34_s29  }
  0x51   : > { %p3306_p5 = por %p4604_p3, %p41_p13  ;;  %p43_p9 = por %p42_p10, %p41_p13 }
  0x52   : > { %4606 = sst [smem:[#allocation21_spill]] %s3312_s27  ;;  %s3315_s30 = sand.u32 1, %s3115_s20  }
  0x53   : > { %s4605_s23 = scalar_select %p3306_p5, 1, 0 }
  0x54   : > { %s4556_s6 = sshll.u32 %s3315_s30, 4  ;;  %s2633_s15 = sshll.u32 %s3119_s21, 8 }
  0x55   : > { %s4607_s0 = sld [smem:[#allocation40_spill]]  ;;  %s221_s9 = scalar_lea.vmem [#allocation5], %s4556_s6 }
  0x56   : > { %s229_s10 = sshll.u32 %s221_s9, 4  ;;  %p3328_p11 = pnand %p2676_p7, %p43_p9  ;;  %s3326_s10 = int_to_ptr.vmem [resolvable:$true] %s229_s10 }
  0x57   : > { %s3335_s13 = scalar_lea.hbm %s4550_s1, %s2633_s15  ;;  %s218_s17 = scalar_lea.sflag [#allocation6], %s3315_s30 }
  0x58   : > { %s4608_s11 = scalar_select %p3328_p11, 1, 0 }
  0x59   : > { %p3343_p0 = pneg %p3328_p11 }
  0x5b   : > { %s3322_s8 = scalar_lea.hbm %s4607_s0, %s2633_s15  ;;  %s2952_s28 = scalar_lea.hbm %s4607_s0, 512 }
  0x5c   : > { %s2947_s16 = scalar_lea.hbm %s3322_s8, 256  ;;  %p2953_p13 = scmp.lt.u32.totalorder %s3322_s8, %s4607_s0 }
  0x5d   : > { %p2948_p12 = scmp.ne.s32.totalorder %s3322_s8, %s2947_s16  ;;  %p2954_p6 = scmp.lt.u32.totalorder %s2952_s28, %s2947_s16 }
  0x5e   : > { %p2956_p3 = scmp.lt.u32.totalorder %s2947_s16, %s3322_s8 }
  0x5f   : > { %p2950_p2 = pnand %p3343_p0, %p2948_p12  ;;  %p2955_p10 = por %p2954_p6, %p2953_p13 }
  0x61   : > { %p2951_p1 = pneg %p2950_p2  ;;  %p2957_p7 = por %p2956_p3, %p2955_p10 }
  0x63   : > { %p2958_p9 = pnand %p2957_p7, %p2951_p1 }
  0x65   : > { %2961 = shalt.err (!%p2958_p9)
}
  0x66   : > { %s2962_s29 = scalar_lea.vmem %s3326_s10, 256  ;;  %s3125_s6 = smov [#allocation5]  }
  0x67   : > { %p2963_p12 = scmp.ne.s32.totalorder %s3326_s10, %s2962_s29  ;;  %s2967_s9 = sshll.u32 %s3125_s6, 4  ;;  %s2968_s9 = int_to_ptr.vmem [resolvable:$false] %s2967_s9 }
  0x68   : > { %s2969_s12 = scalar_lea.vmem %s2968_s9, 512  ;;  %p2970_p4 = scmp.lt.s32.totalorder %s3326_s10, %s2968_s9 }
  0x69   : > { %p2965_p2 = pnand %p2963_p12, %p3343_p0  ;;  %p2971_p8 = scmp.lt.s32.totalorder %s2969_s12, %s2962_s29 }
  0x6b   : > { %p2966_p5 = pneg %p2965_p2  ;;  %p2972_p13 = por %p2971_p8, %p2970_p4 }
  0x6d   : > { %p2973_p6 = pnand %p2972_p13, %p2966_p5 }
  0x6f   : > { %2976 = shalt.err (!%p2973_p6)
}
  0x70   : > { %2663 = dma.hbm_to_vmem [thread:$0]  (!%p3328_p11), %s3322_s8, 256, %s3326_s10, %s218_s17  }
  0x71   : > { %s4610_s16 = sshll.u32 %s3315_s30, 4  ;;  %s4611_s29 = sand.u32 1, %s3119_s21  }
  0x72   : > { %s240_s28 = scalar_lea.vmem [#allocation8], %s4610_s16  ;;  %s237_s6 = scalar_lea.sflag [#allocation9], %s4611_s29 }
  0x73   : > { %s248_s15 = sshll.u32 %s240_s28, 4  ;;  %s2977_s9 = scalar_lea.hbm %s3335_s13, 256  ;;  %s249_s15 = int_to_ptr.vmem [resolvable:$true] %s248_s15 }
  0x74   : > { %p2978_p4 = scmp.ne.s32.totalorder %s3335_s13, %s2977_s9  ;;  %s2982_s2 = scalar_lea.hbm %s4550_s1, 512 }
  0x75   : > { %p2983_p1 = scmp.lt.u32.totalorder %s3335_s13, %s4550_s1  ;;  %p2984_p10 = scmp.lt.u32.totalorder %s2982_s2, %s2977_s9 }
  0x76   : > { %p2980_p8 = pnand %p2978_p4, %p3343_p0  ;;  %p2986_p7 = scmp.lt.u32.totalorder %s2977_s9, %s3335_s13 }
  0x77   : > { %p2985_p3 = por %p2984_p10, %p2983_p1 }
  0x78   : > { %p2981_p5 = pneg %p2980_p8 }
  0x79   : > { %p2987_p9 = por %p2986_p7, %p2985_p3 }
  0x7b   : > { %p2988_p12 = pnand %p2987_p9, %p2981_p5 }
  0x7d   : > { %2991 = shalt.err (!%p2988_p12)
}
  0x7e   : > { %s2992_s8 = scalar_lea.vmem %s249_s15, 256  ;;  %s3126_s10 = smov [#allocation8]  }
  0x7f   : > { %p2993_p2 = scmp.ne.s32.totalorder %s249_s15, %s2992_s8  ;;  %s2997_s17 = sshll.u32 %s3126_s10, 4  ;;  %s2998_s17 = int_to_ptr.vmem [resolvable:$false] %s2997_s17 }
  0x80   : > { %s2999_s0 = scalar_lea.vmem %s2998_s17, 512  ;;  %p3000_p4 = scmp.lt.s32.totalorder %s249_s15, %s2998_s17 }
  0x81   : > { %p2995_p13 = pnand %p2993_p2, %p3343_p0  ;;  %p3001_p8 = scmp.lt.s32.totalorder %s2999_s0, %s2992_s8 }
  0x83   : > { %p2996_p6 = pneg %p2995_p13  ;;  %p3002_p11 = por %p3001_p8, %p3000_p4 }
  0x85   : > { %p3003_p1 = pnand %p3002_p11, %p2996_p6 }
  0x87   : > { %3006 = shalt.err (!%p3003_p1)
}
  0x88   : > { %p4612_p10 = scmp.ne.s32.totalorder %s4608_s11, 0  ;;  %s2618_s2 = sshll.u32 %s3315_s30, 3 }
  0x89   : > { %s2635_s4 = sshll.u32 %s3119_s21, 7  ;;  %s259_s29 = scalar_lea.vmem [#allocation11], %s2618_s2 }
  0x8a   : > { %2666 = dma.hbm_to_vmem [thread:$0]  (!%p4612_p10), %s3335_s13, 256, %s249_s15, %s237_s6  }
  0x8b   : > { %s3392_s28 = scalar_lea.hbm %s4552_s3, %s2635_s4  ;;  %s267_s9 = sshll.u32 %s259_s29, 4  ;;  %s268_s9 = int_to_ptr.vmem [resolvable:$true] %s267_s9 }
  0x8c   : > { %s4613_s12 = sand.u32 1, %s3119_s21   ;;  %s3007_s10 = scalar_lea.hbm %s3392_s28, 128 }
  0x8d   : > { %s256_s8 = scalar_lea.sflag [#allocation12], %s4613_s12  ;;  %p3008_p11 = scmp.ne.s32.totalorder %s3392_s28, %s3007_s10 }
  0x8e   : > { %s3012_s15 = scalar_lea.hbm %s4552_s3, 256  ;;  %p3013_p7 = scmp.lt.u32.totalorder %s3392_s28, %s4552_s3 }
  0x8f   : > { %p3010_p5 = pnand %p3008_p11, %p3343_p0  ;;  %p3014_p9 = scmp.lt.u32.totalorder %s3012_s15, %s3007_s10 }
  0x90   : > { %p3016_p2 = scmp.lt.u32.totalorder %s3007_s10, %s3392_s28 }
  0x91   : > { %p3011_p3 = pneg %p3010_p5  ;;  %p3015_p12 = por %p3014_p9, %p3013_p7 }
  0x93   : > { %p3017_p13 = por %p3016_p2, %p3015_p12 }
  0x95   : > { %p3018_p6 = pnand %p3017_p13, %p3011_p3 }
  0x97   : > { %3021 = shalt.err (!%p3018_p6)
}
  0x98   : > { %s3022_s0 = scalar_lea.vmem %s268_s9, 128  ;;  %s3127_s2 = smov [#allocation11]  }
  0x99   : > { %p3023_p4 = scmp.ne.s32.totalorder %s268_s9, %s3022_s0  ;;  %s3027_s4 = sshll.u32 %s3127_s2, 4  ;;  %s3028_s4 = int_to_ptr.vmem [resolvable:$false] %s3027_s4 }
  0x9a   : > { %s3029_s27 = scalar_lea.vmem %s3028_s4, 256  ;;  %p3030_p11 = scmp.lt.s32.totalorder %s268_s9, %s3028_s4 }
  0x9b   : > { %p3025_p8 = pnand %p3023_p4, %p3343_p0  ;;  %p3031_p5 = scmp.lt.s32.totalorder %s3029_s27, %s3022_s0 }
  0x9d   : > { %p3026_p1 = pneg %p3025_p8  ;;  %p3032_p10 = por %p3031_p5, %p3030_p11 }
  0x9f   : > { %p3033_p7 = pnand %p3032_p10, %p3026_p1 }
  0xa1   : > { %3036 = shalt.err (!%p3033_p7)
}
  0xa2   : > { %p4614_p9 = scmp.ne.s32.totalorder %s4608_s11, 0  ;;  %p4615_p3 = scmp.ne.s32.totalorder %s4600_s26, 0 }
  0xa4   : > { %2669 = dma.hbm_to_vmem [thread:$0]  (!%p4614_p9), %s3392_s28, 128, %s268_s9, %s256_s8  }
  0xa5   : > { %276 = sbr.rel (%p4615_p3) target bundleno = 619 (0x26b), region = 40 }
  0xac   : > { %s3416_s7 = sand.u32 1, %s3111_s19   ;;  %p4616_p0 = scmp.ne.s32.totalorder %s4598_s24, 0 }
  0xad   : > { %s3419_s16 = sshll.u32 %s3416_s7, 4  ;;  %s279_s29 = scalar_lea.sflag [#allocation6], %s3416_s7 }
  0xae   : > { %s3423_s12 = scalar_lea.vmem [#allocation5], %s3419_s16 }
  0xaf   : > { %3082 = dma.done.wait (%p4616_p0), %s279_s29, 256  }
  0xb0   : > { %3084 = vsyncadd (%p4616_p0), %s279_s29, 4294967040  ;;  %s287_s26 = sand.u32 1, %s3207_s22   ;;  %s291_s28 = scalar_lea.vmem [#allocation8], %s3419_s16 }
  0xb1   : > { %s288_s11 = scalar_lea.sflag [#allocation9], %s287_s26 }
  0xb2   : > { %3086 = dma.done.wait (%p4616_p0), %s288_s11, 256  }
  0xb3   : > { %3088 = vsyncadd (%p4616_p0), %s288_s11, 4294967040  ;;  %p4617_p10 = scmp.eq.s32.totalorder %s3207_s22, 0 }
  0xb5   : > { %3090 = dma.done.wait (%p4617_p10), [#allocation9], 1024   ;;  %p4618_p12 = pmov %p4617_p10 }
  0xb6   : > { %s2625_s9 = sshll.u32 %s3416_s7, 3  ;;  %s301_s8 = scalar_lea.sflag [#allocation12], %s287_s26 }
  0xb7   : > { %3092 = vsyncadd (%p4618_p12), [#allocation9], 4294966272  ;;  %s3440_s10 = scalar_lea.vmem [#allocation11], %s2625_s9 }
  0xb8   : > { %3094 = dma.done.wait (%p4616_p0), %s301_s8, 128  }
  0xb9   : > { %3096 = vsyncadd (%p4616_p0), %s301_s8, 4294967168  ;;  %p4619_p2 = pmov %p4617_p10 }
  0xbb   : > { %3098 = dma.done.wait (%p4619_p2), [#allocation12], 1024   ;;  %p4620_p13 = pmov %p4619_p2 }
  0xbc   : > { %v3128_v0 = vmov 0.0   ;;  %s3129_s30 = smov 33   ;;  %s3130_s13 = smov 34   ;;  %v3131_v1 = vmov -1e+30   ;;  %v3454_v2 = vld [vmem:[%s291_s28 + $0x8] sm:$0xff]  ;;  %v429_v18 = vlaneseq }
  0xbd   : > { %3100 = vsyncadd (%p4620_p13), [#allocation12], 4294966272  ;;  %453 = vrot.lane.b32.xlu1 %v3128_v0, %s3129_s30  ;;  %394 = vrot.lane.b32.xlu0 %v3128_v0, %s3130_s13  ;;  %380 = vst [vmem:[#allocation4] sm:$0xff] %v3131_v1  ;;  %v3456_v3 = vld [vmem:[%s291_s28] sm:$0xff]  ;;  %s3132_s24 = smov 32   ;;  %s3133_s15 = smov 31  }
  0xbe   : > { %381 = vst [vmem:[#allocation4 + $0x8] sm:$0xff] %v3131_v1  ;;  %382 = vst [vmem:[#allocation4 + $0x10] sm:$0xff] %v3131_v1  ;;  %s3134_s6 = smov 30   ;;  %s3135_s17 = smov 18   ;;  %v3551_v4 = vld [vmem:[%s3423_s12] sm:$0xff]  ;;  %v3554_v5 = vld [vmem:[%s3423_s12 + $0x8] sm:$0xff] }
  0xbf   : > { %383 = vst [vmem:[#allocation4 + $0x18] sm:$0xff] %v3131_v1  ;;  %384 = vst [vmem:[#allocation4 + $0x20] sm:$0xff] %v3131_v1  ;;  %s3136_s0 = smov 17   ;;  %s3137_s2 = smov 16   ;;  %v1078_v6 = vmul.f32 %v3554_v5, %v3454_v2  ;;  %v1077_v7 = vmul.f32 %v3551_v4, %v3456_v3  ;;  %v3148_v16 = vmov 1966171168  }
  0xc0   : > { %385 = vst [vmem:[#allocation4 + $0x28] sm:$0xff] %v3131_v1  ;;  %386 = vst [vmem:[#allocation4 + $0x30] sm:$0xff] %v3131_v1  ;;  %s3138_s4 = smov 15   ;;  %s3139_s27 = smov 14   ;;  %v427_v17 = vunpack.c.l.s4 %v3148_v16  ;;  %v3576_v24 = vshrl.u32 %v429_v18, 7  ;;  %v3578_v27 = vld [vmem:[#allocation13 + $0x10] sm:$0xff] }
  0xc1   : > { %387 = vst [vmem:[#allocation4 + $0x38] sm:$0xff] %v3131_v1  ;;  %398 = vrot.lane.b32.xlu1 %v3454_v2, %s3130_s13  ;;  %396 = vrot.lane.b32.xlu0 %v3456_v3, %s3130_s13  ;;  %s3140_s29 = smov 2   ;;  %s3141_s26 = smov 1   ;;  %v1085_v8 = vrot.slane %v1078_v6, 4  ;;  %v1079_v9 = vrot.slane %v1077_v7, 4  ;;  %v3580_v28 = vld [vmem:[#allocation13 + $0x18] sm:$0xff] }
  0xc2   : > { %s4566_s11 = smov 114   ;;  %s3143_s28 = smov 127   ;;  %v428_v23 = vunpack.c.0.s8 %v427_v17  ;;  %vm400_vm0 = vcmask 277504   ;;  %vm3597_vm1 = vcmp.lt.s32.totalorder %v429_v18, 256  ;;  %v357_v40 = vld [vmem:[%s3440_s10] sm:$0xff]  ;;  %vm459_vm2 = vcmask 269312  }
  0xc3   : > { %s4562_s9 = smov 110   ;;  %s4564_s8 = smov 95   ;;  %v1086_v10 = vadd.f32 %v1085_v8, %v1078_v6  ;;  %v1080_v11 = vadd.f32 %v1079_v9, %v1077_v7  ;;  %v3612_v45 = vunpack.c.l.bf16 %v357_v40  ;;  %vm516_vm3 = vcmask 261120  }
  0xc4   : > { %v3589_v33 = vsub.s32 %v428_v23, %v3576_v24  ;;  %s3152_s10 = smov 113   ;;  %vm573_vm4 = vcmask 252928   ;;  %v3622_v56 = vunpack.c.h.bf16 %v357_v40  ;;  %vm631_vm5 = vcmask 244736   ;;  %v3635_v23 = vld [vmem:[#allocation13 + $0x8] sm:$0xff]  ;;  %p4686_p4 = scmp.ne.s32.totalorder %s4605_s23, 0 }
  0xc5   : > { %457 = vrot.lane.b32.xlu1 %v3454_v2, %s3129_s30  ;;  %455 = vrot.lane.b32.xlu0 %v3456_v3, %s3129_s30  ;;  %v1087_v12 = vrot.slane %v1086_v10, 2  ;;  %v1081_v13 = vrot.slane %v1080_v11, 2  ;;  %4623 = vst [vmem:[#allocation22_spill] sm:$0xff] %v3612_v45  ;;  %vm687_vm6 = vcmask 146432   ;;  %vm744_vm7 = vcmask 138240  }
  0xc6   : > { %4624 = vst [vmem:[#allocation23_spill] sm:$0xff] %v3622_v56  ;;  %vm801_vm8 = vcmask 130048   ;;  %vm859_vm9 = vcmask 121856   ;;  %vm915_vm10 = vcmask 113664   ;;  %vm972_vm11 = vcmask 15360  }
  0xc7   : > { %v1088_v14 = vadd.f32 %v1087_v12, %v1086_v10  ;;  %v1082_v15 = vadd.f32 %v1081_v13, %v1080_v11  ;;  %vm1029_vm12 = vcmask 7168   ;;  %vm4576_vm13 = vcmask 932864  }
  0xc8   : > { %vm4577_vm14 = vcmask 900096   ;;  %vm4578_vm15 = vcmask 777216  }
  0xc9   : > { %512 = vrot.lane.b32.xlu1 %v3456_v3, %s3132_s24  ;;  %510 = vrot.lane.b32.xlu0 %v3128_v0, %s3132_s24  ;;  %v1089_v19 = vrot.slane %v1088_v14, 1  ;;  %v1083_v20 = vrot.slane %v1082_v15, 1 }
  0xcb   : > { %v1090_v21 = vadd.f32 %v1089_v19, %v1088_v14  ;;  %v1084_v22 = vadd.f32 %v1083_v20, %v1082_v15 }
  0xcd   : > { %567 = vrot.lane.b32.xlu1 %v3128_v0, %s3133_s15  ;;  %514 = vrot.lane.b32.xlu0 %v3454_v2, %s3132_s24  ;;  %v1092_v25 = vmul.f32 0.35355338, %v1090_v21  ;;  %v1091_v26 = vmul.f32 0.35355338, %v1084_v22  ;;  %v3633_v22 = vld [vmem:[#allocation13] sm:$0xff] }
  0xcf   : > { %v1094_v29 = vmul.f32 %v1092_v25, %v3580_v28  ;;  %v1093_v30 = vmul.f32 %v1091_v26, %v3578_v27 }
  0xd1   : > { %571 = vrot.lane.b32.xlu1 %v3454_v2, %s3133_s15  ;;  %569 = vrot.lane.b32.xlu0 %v3456_v3, %s3133_s15  ;;  %v1097_v34 = vcombine.high %v1093_v30, %v1094_v29 }
  0xd3   : > { %v1104_v35 = vrot.slane %v1097_v34, %v3589_v33 }
  0xd5   : > { %627 = vrot.lane.b32.xlu1 %v3456_v3, %s3134_s6  ;;  %625 = vrot.lane.b32.xlu0 %v3128_v0, %s3134_s6  ;;  %v1111_v36 = vrot.slane %v1104_v35, %v3589_v33 }
  0xd7   : > { %1114 = vst.msk [vmem:[#allocation4 + $0x14] ss:$8 sm:$0x3] %vm3597_vm1, %v1111_v36 }
  0xd9   : > { %681 = vrot.lane.b32.xlu1 %v3128_v0, %s3135_s17  ;;  %629 = vrot.lane.b32.xlu0 %v3454_v2, %s3134_s6 }
  0xdd   : > { %685 = vrot.lane.b32.xlu1 %v3454_v2, %s3135_s17  ;;  %683 = vrot.lane.b32.xlu0 %v3456_v3, %s3135_s17 }
  0xe1   : > { %740 = vrot.lane.b32.xlu1 %v3456_v3, %s3136_s0  ;;  %738 = vrot.lane.b32.xlu0 %v3128_v0, %s3136_s0 }
  0xe5   : > { %795 = vrot.lane.b32.xlu1 %v3128_v0, %s3137_s2  ;;  %742 = vrot.lane.b32.xlu0 %v3454_v2, %s3136_s0 }
  0xe9   : > { %799 = vrot.lane.b32.xlu1 %v3454_v2, %s3137_s2  ;;  %797 = vrot.lane.b32.xlu0 %v3456_v3, %s3137_s2 }
  0xed   : > { %855 = vrot.lane.b32.xlu1 %v3456_v3, %s3138_s4  ;;  %853 = vrot.lane.b32.xlu0 %v3128_v0, %s3138_s4 }
  0xf1   : > { %909 = vrot.lane.b32.xlu1 %v3128_v0, %s3139_s27  ;;  %857 = vrot.lane.b32.xlu0 %v3454_v2, %s3138_s4 }
  0xf5   : > { %913 = vrot.lane.b32.xlu1 %v3454_v2, %s3139_s27  ;;  %911 = vrot.lane.b32.xlu0 %v3456_v3, %s3139_s27 }
  0xf9   : > { %968 = vrot.lane.b32.xlu1 %v3456_v3, %s3140_s29  ;;  %966 = vrot.lane.b32.xlu0 %v3128_v0, %s3140_s29 }
  0xfd   : > { %1023 = vrot.lane.b32.xlu1 %v3128_v0, %s3141_s26  ;;  %970 = vrot.lane.b32.xlu0 %v3454_v2, %s3140_s29 }
 0x101   : > { %1027 = vrot.lane.b32.xlu1 %v3454_v2, %s3141_s26  ;;  %1025 = vrot.lane.b32.xlu0 %v3456_v3, %s3141_s26 }
 0x105   : > { %1236 = vrot.lane.b32.xlu1 %v3456_v3, %s4566_s11  ;;  %1122 = vrot.lane.b32.xlu0 %v3456_v3, %s3143_s28 }
 0x109   : > { %1240 = vrot.lane.b32.xlu1 %v3128_v0, %s4566_s11  ;;  %1238 = vrot.lane.b32.xlu0 %v3454_v2, %s4566_s11  ;;  %s4574_s11 = smov 111  }
 0x10d   : > { %1466 = vrot.lane.b32.xlu1 %v3454_v2, %s4562_s9  ;;  %1464 = vrot.lane.b32.xlu0 %v3456_v3, %s4562_s9 }
 0x111   : > { %1692 = vrot.lane.b32.xlu1 %v3456_v3, %s4564_s8  ;;  %1468 = vrot.lane.b32.xlu0 %v3128_v0, %s4562_s9  ;;  %s3146_s9 = smov 126  }
 0x115   : > { %1696 = vrot.lane.b32.xlu1 %v3128_v0, %s4564_s8  ;;  %1694 = vrot.lane.b32.xlu0 %v3454_v2, %s4564_s8  ;;  %s4568_s8 = smov 112  }
 0x119   : > { %1126 = vrot.lane.b32.xlu1 %v3128_v0, %s3143_s28  ;;  %1124 = vrot.lane.b32.xlu0 %v3454_v2, %s3143_s28 }
 0x11d   : > { %1181 = vrot.lane.b32.xlu1 %v3454_v2, %s3146_s9  ;;  %1179 = vrot.lane.b32.xlu0 %v3456_v3, %s3146_s9 }
 0x121   : > { %1350 = vrot.lane.b32.xlu1 %v3456_v3, %s4568_s8  ;;  %1183 = vrot.lane.b32.xlu0 %v3128_v0, %s3146_s9 }
 0x125   : > { %1354 = vrot.lane.b32.xlu1 %v3128_v0, %s4568_s8  ;;  %1352 = vrot.lane.b32.xlu0 %v3454_v2, %s4568_s8  ;;  %s4570_s8 = smov 97  }
 0x129   : > { %1409 = vrot.lane.b32.xlu1 %v3454_v2, %s4574_s11  ;;  %1407 = vrot.lane.b32.xlu0 %v3456_v3, %s4574_s11 }
 0x12d   : > { %1578 = vrot.lane.b32.xlu1 %v3456_v3, %s4570_s8  ;;  %1411 = vrot.lane.b32.xlu0 %v3128_v0, %s4574_s11  ;;  %s3154_s11 = smov 94  }
 0x12f   : > { %v454_v31 = vpop.permute.xlu1 %453  ;;  %v395_v32 = vpop.permute.xlu0 %394 }
 0x131   : > { %1582 = vrot.lane.b32.xlu1 %v3128_v0, %s4570_s8  ;;  %1580 = vrot.lane.b32.xlu0 %v3454_v2, %s4570_s8  ;;  %s4572_s8 = smov 96  }
 0x133   : > { %v399_v38 = vpop.permute.xlu1 %398  ;;  %v397_v39 = vpop.permute.xlu0 %396 }
 0x134   : > { %v401_v41 = vsel %vm400_vm0, %v395_v32, %v397_v39  ;;  %v402_v42 = vsel %vm400_vm0, %v397_v39, %v399_v38 }
 0x135   : > { %v405_v43 = vmul.f32 %v401_v41, %v3551_v4  ;;  %v406_v44 = vmul.f32 %v402_v42, %v3554_v5  ;;  %1637 = vrot.lane.b32.xlu1 %v3454_v2, %s4572_s8  ;;  %1635 = vrot.lane.b32.xlu0 %v3456_v3, %s4572_s8 }
 0x137   : > { %v407_v46 = vrot.slane %v405_v43, 4  ;;  %v413_v47 = vrot.slane %v406_v44, 4  ;;  %v458_v48 = vpop.permute.xlu1 %457  ;;  %v456_v49 = vpop.permute.xlu0 %455 }
 0x138   : > { %v460_v50 = vsel %vm459_vm2, %v454_v31, %v456_v49  ;;  %v461_v51 = vsel %vm459_vm2, %v456_v49, %v458_v48 }
 0x139   : > { %v408_v52 = vadd.f32 %v407_v46, %v405_v43  ;;  %v414_v53 = vadd.f32 %v413_v47, %v406_v44  ;;  %v464_v54 = vmul.f32 %v460_v50, %v3551_v4  ;;  %v465_v55 = vmul.f32 %v461_v51, %v3554_v5  ;;  %1294 = vrot.lane.b32.xlu1 %v3456_v3, %s3152_s10 }
 0x13a   : > { %1639 = vrot.lane.b32.xlu0 %v3128_v0, %s4572_s8  ;;  %s3153_s8 = smov 98  }
 0x13b   : > { %v409_v57 = vrot.slane %v408_v52, 2  ;;  %v415_v58 = vrot.slane %v414_v53, 2  ;;  %v466_v59 = vrot.slane %v464_v54, 4  ;;  %v472_v60 = vrot.slane %v465_v55, 4  ;;  %v513_v61 = vpop.permute.xlu1 %512  ;;  %v511_v62 = vpop.permute.xlu0 %510 }
 0x13c   : > { %v517_v63 = vsel %vm516_vm3, %v511_v62, %v513_v61 }
 0x13d   : > { %v410_v1 = vadd.f32 %v409_v57, %v408_v52  ;;  %v416_v6 = vadd.f32 %v415_v58, %v414_v53  ;;  %v467_v7 = vadd.f32 %v466_v59, %v464_v54  ;;  %v473_v8 = vadd.f32 %v472_v60, %v465_v55  ;;  %1298 = vrot.lane.b32.xlu1 %v3128_v0, %s3152_s10 }
 0x13e   : > { %v521_v9 = vmul.f32 %v517_v63, %v3551_v4  ;;  %1296 = vrot.lane.b32.xlu0 %v3454_v2, %s3152_s10  ;;  %v3652_v55 = vpack.i.bf16 %v3622_v56, %v3612_v45 }
 0x13f   : > { %v411_v10 = vrot.slane %v410_v1, 1  ;;  %v417_v11 = vrot.slane %v416_v6, 1  ;;  %v468_v12 = vrot.slane %v467_v7, 2  ;;  %v474_v13 = vrot.slane %v473_v8, 2  ;;  %v568_v14 = vpop.permute.xlu1 %567  ;;  %v515_v15 = vpop.permute.xlu0 %514 }
 0x140   : > { %v523_v16 = vrot.slane %v521_v9, 4  ;;  %v518_v17 = vsel %vm516_vm3, %v513_v61, %v515_v15 }
 0x141   : > { %v412_v18 = vadd.f32 %v411_v10, %v410_v1  ;;  %v418_v19 = vadd.f32 %v417_v11, %v416_v6  ;;  %v469_v20 = vadd.f32 %v468_v12, %v467_v7  ;;  %v475_v21 = vadd.f32 %v474_v13, %v473_v8  ;;  %1524 = vrot.lane.b32.xlu1 %v3454_v2, %s3153_s8 }
 0x142   : > { %v524_v25 = vadd.f32 %v523_v16, %v521_v9  ;;  %v522_v26 = vmul.f32 %v518_v17, %v3554_v5  ;;  %1522 = vrot.lane.b32.xlu0 %v3456_v3, %s3153_s8 }
 0x143   : > { %v419_v29 = vmul.f32 0.35355338, %v412_v18  ;;  %v420_v30 = vmul.f32 0.35355338, %v418_v19  ;;  %v470_v31 = vrot.slane %v469_v20, 1  ;;  %v476_v32 = vrot.slane %v475_v21, 1  ;;  %v572_v34 = vpop.permute.xlu1 %571  ;;  %v570_v35 = vpop.permute.xlu0 %569 }
 0x144   : > { %v525_v36 = vrot.slane %v524_v25, 2  ;;  %v529_v38 = vrot.slane %v522_v26, 4  ;;  %v574_v39 = vsel %vm573_vm4, %v568_v14, %v570_v35  ;;  %v575_v40 = vsel %vm573_vm4, %v570_v35, %v572_v34 }
 0x145   : > { %v421_v41 = vmul.f32 %v419_v29, %v3633_v22  ;;  %v422_v42 = vmul.f32 %v420_v30, %v3635_v23  ;;  %v471_v43 = vadd.f32 %v470_v31, %v469_v20  ;;  %v477_v44 = vadd.f32 %v476_v32, %v475_v21  ;;  %1750 = vrot.lane.b32.xlu1 %v3456_v3, %s3154_s11 }
 0x146   : > { %v526_v46 = vadd.f32 %v525_v36, %v524_v25  ;;  %v530_v47 = vadd.f32 %v529_v38, %v522_v26  ;;  %v578_v48 = vmul.f32 %v574_v39, %v3551_v4  ;;  %v579_v49 = vmul.f32 %v575_v40, %v3554_v5  ;;  %1526 = vrot.lane.b32.xlu0 %v3128_v0, %s3153_s8 }
 0x147   : > { %v425_v50 = vcombine.low %v421_v41, %v422_v42  ;;  %v478_v51 = vmul.f32 0.35355338, %v471_v43  ;;  %v479_v52 = vmul.f32 0.35355338, %v477_v44  ;;  %v628_v53 = vpop.permute.xlu1 %627  ;;  %v626_v54 = vpop.permute.xlu0 %625 }
 0x148   : > { %v527_v3 = vrot.slane %v526_v46, 1  ;;  %v531_v57 = vrot.slane %v530_v47, 2  ;;  %v580_v58 = vrot.slane %v578_v48, 4  ;;  %v586_v59 = vrot.slane %v579_v49, 4 }
 0x149   : > { %v432_v60 = vrot.slane %v425_v50, %v3589_v33  ;;  %v480_v61 = vmul.f32 %v478_v51, %v3633_v22  ;;  %v481_v62 = vmul.f32 %v479_v52, %v3635_v23  ;;  %v632_v63 = vsel %vm631_vm5, %v626_v54, %v628_v53  ;;  %1754 = vrot.lane.b32.xlu1 %v3128_v0, %s3154_s11 }
 0x14a   : > { %v528_v1 = vadd.f32 %v527_v3, %v526_v46  ;;  %v532_v6 = vadd.f32 %v531_v57, %v530_v47  ;;  %v581_v7 = vadd.f32 %v580_v58, %v578_v48  ;;  %v587_v8 = vadd.f32 %v586_v59, %v579_v49  ;;  %1752 = vrot.lane.b32.xlu0 %v3454_v2, %s3154_s11 }
 0x14b   : > { %v439_v9 = vrot.slane %v432_v60, %v3589_v33  ;;  %v484_v10 = vcombine.low %v480_v61, %v481_v62  ;;  %v636_v11 = vmul.f32 %v632_v63, %v3551_v4  ;;  %v682_v12 = vpop.permute.xlu1 %681  ;;  %v630_v13 = vpop.permute.xlu0 %629 }
 0x14c   : > { %v535_v14 = vmul.f32 0.35355338, %v528_v1  ;;  %v533_v15 = vrot.slane %v532_v6, 1  ;;  %v582_v16 = vrot.slane %v581_v7, 2  ;;  %v588_v17 = vrot.slane %v587_v8, 2 }
 0x14d   : > { %445 = vst.msk [vmem:[#allocation4] ss:$8 sm:$0x3] %vm3597_vm1, %v439_v9  ;;  %v491_v18 = vrot.slane %v484_v10, %v3589_v33  ;;  %v638_v19 = vrot.slane %v636_v11, 4  ;;  %v633_v2 = vsel %vm631_vm5, %v628_v53, %v630_v13  ;;  %1922 = vrot.lane.b32.xlu1 %v3622_v56, %s3130_s13 }
 0x14e   : > { %v534_v20 = vadd.f32 %v533_v15, %v532_v6  ;;  %v583_v21 = vadd.f32 %v582_v16, %v581_v7  ;;  %v589_v25 = vadd.f32 %v588_v17, %v587_v8  ;;  %2744 = vrot.lane.b32.xlu0 %v3612_v45, %s3130_s13  ;;  %v537_v29 = vmul.f32 %v535_v14, %v3633_v22  ;;  %s4626_s13 = smov 112  }
 0x14f   : > { %v492_v26 = vcombine.high %v491_v18, %v491_v18  ;;  %v639_v30 = vadd.f32 %v638_v19, %v636_v11  ;;  %v637_v31 = vmul.f32 %v633_v2, %v3554_v5  ;;  %v686_v32 = vpop.permute.xlu1 %685  ;;  %v684_v34 = vpop.permute.xlu0 %683 }
 0x150   : > { %v536_v35 = vmul.f32 0.35355338, %v534_v20  ;;  %v584_v36 = vrot.slane %v583_v21, 1  ;;  %v590_v38 = vrot.slane %v589_v25, 1  ;;  %v688_v39 = vsel %vm687_vm6, %v682_v12, %v684_v34 }
 0x151   : > { %v499_v40 = vrot.slane %v492_v26, %v3589_v33  ;;  %v640_v41 = vrot.slane %v639_v30, 2  ;;  %v644_v42 = vrot.slane %v637_v31, 4  ;;  %v689_v43 = vsel %vm687_vm6, %v684_v34, %v686_v32  ;;  %1944 = vrot.lane.b32.xlu1 %v3622_v56, %s3129_s30 }
 0x152   : > { %v538_v44 = vmul.f32 %v536_v35, %v3635_v23  ;;  %v585_v46 = vadd.f32 %v584_v36, %v583_v21  ;;  %v591_v47 = vadd.f32 %v590_v38, %v589_v25  ;;  %v692_v48 = vmul.f32 %v688_v39, %v3551_v4  ;;  %2749 = vrot.lane.b32.xlu0 %v3612_v45, %s3129_s30  ;;  %s4625_s30 = smov 114  }
 0x153   : > { %502 = vst.msk [vmem:[#allocation4 + $0x1] ss:$8 sm:$0x3] %vm3597_vm1, %v499_v40  ;;  %v641_v49 = vadd.f32 %v640_v41, %v639_v30  ;;  %v645_v50 = vadd.f32 %v644_v42, %v637_v31  ;;  %v693_v51 = vmul.f32 %v689_v43, %v3554_v5  ;;  %v741_v52 = vpop.permute.xlu1 %740  ;;  %v739_v53 = vpop.permute.xlu0 %738 }
 0x154   : > { %v541_v54 = vcombine.low %v537_v29, %v538_v44  ;;  %v592_v3 = vmul.f32 0.35355338, %v585_v46  ;;  %v593_v57 = vmul.f32 0.35355338, %v591_v47  ;;  %v694_v58 = vrot.slane %v692_v48, 4 }
 0x155   : > { %v642_v59 = vrot.slane %v641_v49, 1  ;;  %v646_v60 = vrot.slane %v645_v50, 2  ;;  %v700_v61 = vrot.slane %v693_v51, 4  ;;  %v745_v62 = vsel %vm744_vm7, %v739_v53, %v741_v52  ;;  %1966 = vrot.lane.b32.xlu1 %v3622_v56, %s3132_s24 }
 0x156   : > { %v548_v63 = vrot.slane %v541_v54, %v3589_v33  ;;  %v594_v1 = vmul.f32 %v592_v3, %v3633_v22  ;;  %v595_v6 = vmul.f32 %v593_v57, %v3635_v23  ;;  %v695_v7 = vadd.f32 %v694_v58, %v692_v48  ;;  %2754 = vrot.lane.b32.xlu0 %v3612_v45, %s3132_s24  ;;  %s4627_s24 = smov 111  }
 0x157   : > { %v643_v8 = vadd.f32 %v642_v59, %v641_v49  ;;  %v647_v9 = vadd.f32 %v646_v60, %v645_v50  ;;  %v701_v10 = vadd.f32 %v700_v61, %v693_v51  ;;  %v749_v11 = vmul.f32 %v745_v62, %v3551_v4  ;;  %v796_v12 = vpop.permute.xlu1 %795  ;;  %v743_v13 = vpop.permute.xlu0 %742 }
 0x158   : > { %v555_v14 = vrot.slane %v548_v63, %v3589_v33  ;;  %v598_v15 = vcombine.low %v594_v1, %v595_v6  ;;  %v696_v16 = vrot.slane %v695_v7, 2  ;;  %v746_v17 = vsel %vm744_vm7, %v741_v52, %v743_v13 }
 0x159   : > { %v650_v18 = vmul.f32 0.35355338, %v643_v8  ;;  %v648_v19 = vrot.slane %v647_v9, 1  ;;  %v702_v2 = vrot.slane %v701_v10, 2  ;;  %v751_v20 = vrot.slane %v749_v11, 4  ;;  %1988 = vrot.lane.b32.xlu1 %v3622_v56, %s3133_s15 }
 0x15a   : > { %v556_v21 = vcombine.high %v555_v14, %v555_v14  ;;  %v605_v25 = vrot.slane %v598_v15, %v3589_v33  ;;  %v697_v26 = vadd.f32 %v696_v16, %v695_v7  ;;  %v750_v29 = vmul.f32 %v746_v17, %v3554_v5  ;;  %2759 = vrot.lane.b32.xlu0 %v3612_v45, %s3133_s15  ;;  %s4629_s15 = smov 97  }
 0x15b   : > { %v652_v30 = vmul.f32 %v650_v18, %v3633_v22  ;;  %v649_v31 = vadd.f32 %v648_v19, %v647_v9  ;;  %v703_v32 = vadd.f32 %v702_v2, %v701_v10  ;;  %v752_v34 = vadd.f32 %v751_v20, %v749_v11  ;;  %v800_v35 = vpop.permute.xlu1 %799  ;;  %v798_v36 = vpop.permute.xlu0 %797 }
 0x15c   : > { %559 = vst.msk [vmem:[#allocation4 + $0x2] ss:$8 sm:$0x3] %vm3597_vm1, %v556_v21  ;;  %v606_v38 = vcombine.high %v605_v25, %v605_v25  ;;  %v698_v39 = vrot.slane %v697_v26, 1  ;;  %v757_v40 = vrot.slane %v750_v29, 4  ;;  %v802_v41 = vsel %vm801_vm8, %v796_v12, %v798_v36 }
 0x15d   : > { %v651_v42 = vmul.f32 0.35355338, %v649_v31  ;;  %v704_v43 = vrot.slane %v703_v32, 1  ;;  %v753_v44 = vrot.slane %v752_v34, 2  ;;  %v803_v46 = vsel %vm801_vm8, %v798_v36, %v800_v35  ;;  %2010 = vrot.lane.b32.xlu1 %v3622_v56, %s3134_s6 }
 0x15e   : > { %v613_v47 = vrot.slane %v606_v38, %v3589_v33  ;;  %v699_v48 = vadd.f32 %v698_v39, %v697_v26  ;;  %v758_v49 = vadd.f32 %v757_v40, %v750_v29  ;;  %v806_v50 = vmul.f32 %v802_v41, %v3551_v4  ;;  %2764 = vrot.lane.b32.xlu0 %v3612_v45, %s3134_s6  ;;  %s4631_s6 = smov 96  }
 0x15f   : > { %v653_v51 = vmul.f32 %v651_v42, %v3635_v23  ;;  %v705_v52 = vadd.f32 %v704_v43, %v703_v32  ;;  %v754_v53 = vadd.f32 %v753_v44, %v752_v34  ;;  %v807_v54 = vmul.f32 %v803_v46, %v3554_v5  ;;  %v856_v3 = vpop.permute.xlu1 %855  ;;  %v854_v57 = vpop.permute.xlu0 %853 }
 0x160   : > { %v614_v58 = vcombine.high %v613_v47, %v613_v47  ;;  %v706_v59 = vmul.f32 0.35355338, %v699_v48  ;;  %v759_v60 = vrot.slane %v758_v49, 2  ;;  %v808_v61 = vrot.slane %v806_v50, 4 }
 0x161   : > { %v656_v62 = vcombine.high %v652_v30, %v653_v51  ;;  %v707_v63 = vmul.f32 0.35355338, %v705_v52  ;;  %v755_v1 = vrot.slane %v754_v53, 1  ;;  %v814_v6 = vrot.slane %v807_v54, 4  ;;  %2032 = vrot.lane.b32.xlu1 %v3622_v56, %s3135_s17 }
 0x162   : > { %617 = vst.msk [vmem:[#allocation4 + $0x3] ss:$8 sm:$0x3] %vm3597_vm1, %v614_v58  ;;  %v708_v7 = vmul.f32 %v706_v59, %v3633_v22  ;;  %v760_v8 = vadd.f32 %v759_v60, %v758_v49  ;;  %v809_v9 = vadd.f32 %v808_v61, %v806_v50  ;;  %v860_v10 = vsel %vm859_vm9, %v854_v57, %v856_v3 }
 0x163   : > { %2769 = vrot.lane.b32.xlu0 %v3612_v45, %s3135_s17  ;;  %v663_v11 = vrot.slane %v656_v62, %v3589_v33  ;;  %v709_v12 = vmul.f32 %v707_v63, %v3635_v23  ;;  %v756_v13 = vadd.f32 %v755_v1, %v754_v53  ;;  %v815_v14 = vadd.f32 %v814_v6, %v807_v54  ;;  %v910_v15 = vpop.permute.xlu1 %909  ;;  %v858_v16 = vpop.permute.xlu0 %857  ;;  %s4632_s17 = smov 95  }
 0x164   : > { %v761_v17 = vrot.slane %v760_v8, 1  ;;  %v810_v18 = vrot.slane %v809_v9, 2  ;;  %v864_v19 = vmul.f32 %v860_v10, %v3551_v4  ;;  %v861_v2 = vsel %vm859_vm9, %v856_v3, %v858_v16 }
 0x165   : > { %v670_v20 = vrot.slane %v663_v11, %v3589_v33  ;;  %v712_v21 = vcombine.high %v708_v7, %v709_v12  ;;  %v763_v25 = vmul.f32 0.35355338, %v756_v13  ;;  %v816_v26 = vrot.slane %v815_v14, 2  ;;  %2054 = vrot.lane.b32.xlu1 %v3622_v56, %s3136_s0 }
 0x166   : > { %v762_v29 = vadd.f32 %v761_v17, %v760_v8  ;;  %v811_v30 = vadd.f32 %v810_v18, %v809_v9  ;;  %v866_v31 = vrot.slane %v864_v19, 4  ;;  %v865_v32 = vmul.f32 %v861_v2, %v3554_v5 }
 0x167   : > { %2774 = vrot.lane.b32.xlu0 %v3612_v45, %s3136_s0  ;;  %673 = vst.msk [vmem:[#allocation4 + $0x4] ss:$8 sm:$0x3] %vm3597_vm1, %v670_v20  ;;  %v719_v34 = vrot.slane %v712_v21, %v3589_v33  ;;  %v765_v35 = vmul.f32 %v763_v25, %v3633_v22  ;;  %v817_v36 = vadd.f32 %v816_v26, %v815_v14  ;;  %v914_v38 = vpop.permute.xlu1 %913  ;;  %v912_v39 = vpop.permute.xlu0 %911  ;;  %s2636_s0 = sshll.u32 %s3207_s22, 8 }
 0x168   : > { %v764_v40 = vmul.f32 0.35355338, %v762_v29  ;;  %v812_v41 = vrot.slane %v811_v30, 1  ;;  %v867_v42 = vadd.f32 %v866_v31, %v864_v19  ;;  %v872_v43 = vrot.slane %v865_v32, 4 }
 0x169   : > { %v720_v44 = vcombine.high %v719_v34, %v719_v34  ;;  %v818_v46 = vrot.slane %v817_v36, 1  ;;  %v916_v47 = vsel %vm915_vm10, %v910_v15, %v912_v39  ;;  %v917_v48 = vsel %vm915_vm10, %v912_v39, %v914_v38  ;;  %2076 = vrot.lane.b32.xlu1 %v3622_v56, %s3137_s2 }
 0x16a   : > { %v766_v49 = vmul.f32 %v764_v40, %v3635_v23  ;;  %v813_v50 = vadd.f32 %v812_v41, %v811_v30  ;;  %v868_v51 = vrot.slane %v867_v42, 2  ;;  %v873_v52 = vadd.f32 %v872_v43, %v865_v32 }
 0x16b   : > { %2779 = vrot.lane.b32.xlu0 %v3612_v45, %s3137_s2  ;;  %v727_v53 = vrot.slane %v720_v44, %v3589_v33  ;;  %v819_v54 = vadd.f32 %v818_v46, %v817_v36  ;;  %v920_v3 = vmul.f32 %v916_v47, %v3551_v4  ;;  %v921_v57 = vmul.f32 %v917_v48, %v3554_v5  ;;  %v969_v58 = vpop.permute.xlu1 %968  ;;  %v967_v59 = vpop.permute.xlu0 %966  ;;  %s344_s2 = scalar_lea.vmem [#allocation14], %s3419_s16  ;;  %s3155_s16 = smov [#allocation14]  }
 0x16c   : > { %v769_v60 = vcombine.high %v765_v35, %v766_v49  ;;  %v820_v61 = vmul.f32 0.35355338, %v813_v50  ;;  %v869_v62 = vadd.f32 %v868_v51, %v867_v42  ;;  %v874_v63 = vrot.slane %v873_v52, 2 }
 0x16d   : > { %730 = vst.msk [vmem:[#allocation4 + $0x5] ss:$8 sm:$0x3] %vm3597_vm1, %v727_v53  ;;  %v821_v1 = vmul.f32 0.35355338, %v819_v54  ;;  %v922_v6 = vrot.slane %v920_v3, 4  ;;  %v973_v8 = vsel %vm972_vm11, %v967_v59, %v969_v58  ;;  %2098 = vrot.lane.b32.xlu1 %v3622_v56, %s3138_s4 }
 0x16e   : > { %v928_v7 = vrot.slane %v921_v57, 4  ;;  %v776_v9 = vrot.slane %v769_v60, %v3589_v33  ;;  %v822_v10 = vmul.f32 %v820_v61, %v3633_v22  ;;  %v870_v11 = vrot.slane %v869_v62, 1 }
 0x16f   : > { %v875_v12 = vadd.f32 %v874_v63, %v873_v52  ;;  %2784 = vrot.lane.b32.xlu0 %v3612_v45, %s3138_s4  ;;  %v823_v13 = vmul.f32 %v821_v1, %v3635_v23  ;;  %v923_v14 = vadd.f32 %v922_v6, %v920_v3  ;;  %v977_v16 = vmul.f32 %v973_v8, %v3551_v4  ;;  %v1024_v17 = vpop.permute.xlu1 %1023  ;;  %v971_v18 = vpop.permute.xlu0 %970  ;;  %s2473_s4 = sshll.u32 %s344_s2, 4  ;;  %s4507_s4 = int_to_ptr.vmem [resolvable:$true] %s2473_s4 }
 0x170   : > { %v929_v15 = vadd.f32 %v928_v7, %v921_v57  ;;  %v783_v19 = vrot.slane %v776_v9, %v3589_v33  ;;  %v871_v2 = vadd.f32 %v870_v11, %v869_v62  ;;  %v974_v21 = vsel %vm972_vm11, %v969_v58, %v971_v18  ;;  %s3037_s22 = scalar_lea.vmem %s4507_s4, 256 }
 0x171   : > { %v876_v20 = vrot.slane %v875_v12, 1  ;;  %v826_v22 = vcombine.high %v822_v10, %v823_v13  ;;  %v924_v25 = vrot.slane %v923_v14, 2  ;;  %v979_v29 = vrot.slane %v977_v16, 4  ;;  %2120 = vrot.lane.b32.xlu1 %v3622_v56, %s3139_s27  ;;  %p3038_p6 = scmp.ne.s32.totalorder %s4507_s4, %s3037_s22 }
 0x172   : > { %v930_v26 = vrot.slane %v929_v15, 2  ;;  %v784_v23 = vcombine.high %v783_v19, %v783_v19  ;;  %v878_v30 = vmul.f32 0.35355338, %v871_v2  ;;  %v978_v32 = vmul.f32 %v974_v21, %v3554_v5 }
 0x173   : > { %v877_v31 = vadd.f32 %v876_v20, %v875_v12  ;;  %2789 = vrot.lane.b32.xlu0 %v3612_v45, %s3139_s27  ;;  %v833_v34 = vrot.slane %v826_v22, %v3589_v33  ;;  %v925_v35 = vadd.f32 %v924_v25, %v923_v14  ;;  %v980_v38 = vadd.f32 %v979_v29, %v977_v16  ;;  %v1028_v39 = vpop.permute.xlu1 %1027  ;;  %v1026_v40 = vpop.permute.xlu0 %1025  ;;  %p3039_p8 = pnand %p3038_p6, %p4686_p4 }
 0x174   : > { %v931_v36 = vadd.f32 %v930_v26, %v929_v15  ;;  %787 = vst.msk [vmem:[#allocation4 + $0x6] ss:$8 sm:$0x3] %vm3597_vm1, %v784_v23  ;;  %v880_v41 = vmul.f32 %v878_v30, %v3578_v27  ;;  %v985_v43 = vrot.slane %v978_v32, 4  ;;  %v1030_v44 = vsel %vm1029_vm12, %v1024_v17, %v1026_v40 }
 0x175   : > { %v879_v42 = vmul.f32 0.35355338, %v877_v31  ;;  %v834_v46 = vcombine.high %v833_v34, %v833_v34  ;;  %v926_v47 = vrot.slane %v925_v35, 1  ;;  %v981_v49 = vrot.slane %v980_v38, 2  ;;  %2142 = vrot.lane.b32.xlu1 %v3622_v56, %s3140_s29  ;;  %p3040_p1 = pneg %p3039_p8 }
 0x176   : > { %v932_v48 = vrot.slane %v931_v36, 1  ;;  %v986_v51 = vadd.f32 %v985_v43, %v978_v32  ;;  %v1031_v52 = vsel %vm1029_vm12, %v1026_v40, %v1028_v39  ;;  %v1034_v53 = vmul.f32 %v1030_v44, %v3551_v4 }
 0x177   : > { %v881_v50 = vmul.f32 %v879_v42, %v3580_v28  ;;  %2794 = vrot.lane.b32.xlu0 %v3612_v45, %s3140_s29  ;;  %v841_v54 = vrot.slane %v834_v46, %v3589_v33  ;;  %v927_v3 = vadd.f32 %v926_v47, %v925_v35  ;;  %v982_v58 = vadd.f32 %v981_v49, %v980_v38  ;;  %v1237_v59 = vpop.permute.xlu1 %1236  ;;  %v3779_v60 = vpop.permute.xlu0 %1122 }
 0x178   : > { %v933_v57 = vadd.f32 %v932_v48, %v931_v36  ;;  %v987_v62 = vrot.slane %v986_v51, 2  ;;  %v1035_v63 = vmul.f32 %v1031_v52, %v3554_v5  ;;  %v1036_v1 = vrot.slane %v1034_v53, 4 }
 0x179   : > { %v884_v61 = vcombine.low %v880_v41, %v881_v50  ;;  %v842_v6 = vcombine.high %v841_v54, %v841_v54  ;;  %v934_v7 = vmul.f32 0.35355338, %v927_v3  ;;  %v983_v9 = vrot.slane %v982_v58, 1  ;;  %2164 = vrot.lane.b32.xlu1 %v3622_v56, %s3141_s26 }
 0x17a   : > { %v935_v8 = vmul.f32 0.35355338, %v933_v57  ;;  %v988_v11 = vadd.f32 %v987_v62, %v986_v51  ;;  %v1037_v12 = vadd.f32 %v1036_v1, %v1034_v53  ;;  %v1042_v13 = vrot.slane %v1035_v63, 4 }
 0x17b   : > { %v891_v10 = vrot.slane %v884_v61, %v3589_v33  ;;  %2799 = vrot.lane.b32.xlu0 %v3612_v45, %s3141_s26  ;;  %845 = vst.msk [vmem:[#allocation4 + $0x7] ss:$8 sm:$0x3] %vm3597_vm1, %v842_v6  ;;  %v936_v14 = vmul.f32 %v934_v7, %v3578_v27  ;;  %v984_v16 = vadd.f32 %v983_v9, %v982_v58  ;;  %v1241_v17 = vpop.permute.xlu1 %1240  ;;  %v1239_v18 = vpop.permute.xlu0 %1238  ;;  %s4505_s26 = scalar_lea.hbm %s4554_s5, %s2636_s0 }
 0x17c   : > { %v937_v15 = vmul.f32 %v935_v8, %v3580_v28  ;;  %v989_v2 = vrot.slane %v988_v11, 1  ;;  %v1038_v20 = vrot.slane %v1037_v12, 2  ;;  %v1043_v21 = vadd.f32 %v1042_v13, %v1035_v63 }
 0x17d   : > { %v898_v19 = vrot.slane %v891_v10, %v3589_v33  ;;  %v991_v25 = vmul.f32 0.35355338, %v984_v16  ;;  %v1243_v26 = vsel %vm4576_vm13, %v1237_v59, %v1239_v18  ;;  %v1244_v29 = vsel %vm4576_vm13, %v1239_v18, %v1241_v17  ;;  %2204 = vrot.lane.b32.xlu1 %v3128_v0, %s3143_s28 }
 0x17e   : > { %v940_v22 = vcombine.low %v936_v14, %v937_v15  ;;  %v990_v23 = vadd.f32 %v989_v2, %v988_v11  ;;  %v1039_v30 = vadd.f32 %v1038_v20, %v1037_v12  ;;  %v1044_v31 = vrot.slane %v1043_v21, 2 }
 0x17f   : > { %901 = vst.msk [vmem:[#allocation4 + $0x10] ss:$8 sm:$0x3] %vm3597_vm1, %v898_v19  ;;  %v1247_v32 = vmul.f32 %v1243_v26, %v3551_v4  ;;  %2804 = vrot.lane.b32.xlu0 %v3652_v55, %s3143_s28  ;;  %v1248_v35 = vmul.f32 %v1244_v29, %v3554_v5  ;;  %v1467_v36 = vpop.permute.xlu1 %1466  ;;  %v1465_v38 = vpop.permute.xlu0 %1464  ;;  %v993_v44 = vmul.f32 %v991_v25, %v3578_v27  ;;  %vm4579_vm13 = vcmask 1039360   ;;  %s3041_s28 = sshll.u32 %s3155_s16, 4  ;;  %s3042_s28 = int_to_ptr.vmem [resolvable:$false] %s3041_s28 }
 0x180   : > { %v947_v34 = vrot.slane %v940_v22, %v3589_v33  ;;  %v992_v39 = vmul.f32 0.35355338, %v990_v23  ;;  %v1040_v40 = vrot.slane %v1039_v30, 1  ;;  %v1045_v41 = vadd.f32 %v1044_v31, %v1043_v21  ;;  %p3044_p11 = scmp.lt.s32.totalorder %s4507_s4, %s3042_s28 }
 0x181   : > { %v1249_v42 = vrot.slane %v1247_v32, 4  ;;  %v1255_v46 = vrot.slane %v1248_v35, 4  ;;  %v1471_v47 = vsel %vm4577_vm14, %v1465_v38, %v1467_v36  ;;  %2226 = vrot.lane.b32.xlu1 %v3128_v0, %s3146_s9 }
 0x182   : > { %v948_v43 = vcombine.high %v947_v34, %v947_v34  ;;  %v994_v48 = vmul.f32 %v992_v39, %v3580_v28  ;;  %v1041_v49 = vadd.f32 %v1040_v40, %v1039_v30  ;;  %v1046_v50 = vrot.slane %v1045_v41, 1 }
 0x183   : > { %v1250_v51 = vadd.f32 %v1249_v42, %v1247_v32  ;;  %2809 = vrot.lane.b32.xlu0 %v3652_v55, %s3146_s9  ;;  %v1256_v53 = vadd.f32 %v1255_v46, %v1248_v35  ;;  %v1475_v54 = vmul.f32 %v1471_v47, %v3551_v4  ;;  %v1693_v3 = vpop.permute.xlu1 %1692  ;;  %v1469_v57 = vpop.permute.xlu0 %1468  ;;  %s3043_s9 = scalar_lea.vmem %s3042_s28, 512 }
 0x184   : > { %v955_v52 = vrot.slane %v948_v43, %v3589_v33  ;;  %v997_v58 = vcombine.low %v993_v44, %v994_v48  ;;  %v1047_v59 = vadd.f32 %v1046_v50, %v1045_v41  ;;  %v1048_v61 = vmul.f32 0.35355338, %v1041_v49  ;;  %p3045_p5 = scmp.lt.s32.totalorder %s3043_s9, %s3037_s22 }
 0x185   : > { %v1251_v62 = vrot.slane %v1250_v51, 2  ;;  %v1257_v63 = vrot.slane %v1256_v53, 2  ;;  %v1477_v1 = vrot.slane %v1475_v54, 4  ;;  %v1472_v6 = vsel %vm4577_vm14, %v1467_v36, %v1469_v57  ;;  %2248 = vrot.lane.b32.xlu1 %v3128_v0, %s4625_s30 }
 0x186   : > { %958 = vst.msk [vmem:[#allocation4 + $0x11] ss:$8 sm:$0x3] %vm3597_vm1, %v955_v52  ;;  %v1004_v7 = vrot.slane %v997_v58, %v3589_v33  ;;  %v1049_v8 = vmul.f32 0.35355338, %v1047_v59  ;;  %v1050_v9 = vmul.f32 %v1048_v61, %v3578_v27  ;;  %v1476_v13 = vmul.f32 %v1472_v6, %v3554_v5  ;;  %v3848_v58 = vld [vmem:[%s3423_s12] sm:$0xff]  ;;  %p3046_p7 = por %p3045_p5, %p3044_p11 }
 0x187   : > { %v1252_v10 = vadd.f32 %v1251_v62, %v1250_v51  ;;  %2814 = vrot.lane.b32.xlu0 %v3652_v55, %s4625_s30  ;;  %v1258_v11 = vadd.f32 %v1257_v63, %v1256_v53  ;;  %v1478_v12 = vadd.f32 %v1477_v1, %v1475_v54  ;;  %v1697_v14 = vpop.permute.xlu1 %1696  ;;  %v1695_v15 = vpop.permute.xlu0 %1694  ;;  %vm4580_vm14 = vcmask 1031168   ;;  %v3852_v59 = vld [vmem:[%s3423_s12 + $0x8] sm:$0xff]  ;;  %s4628_s12 = smov 110  }
 0x188   : > { %v1011_v16 = vrot.slane %v1004_v7, %v3589_v33  ;;  %v1051_v17 = vmul.f32 %v1049_v8, %v3580_v28  ;;  %v1699_v19 = vsel %vm4578_vm15, %v1693_v3, %v1695_v15  ;;  %v1483_v21 = vrot.slane %v1476_v13, 4  ;;  %v3845_v3 = vld [vmem:[#allocation13 + $0x20] sm:$0xff]  ;;  %p3047_p9 = pnand %p3046_p7, %p3040_p1 }
 0x189   : > { %v1253_v18 = vrot.slane %v1252_v10, 1  ;;  %v1259_v2 = vrot.slane %v1258_v11, 1  ;;  %v1479_v20 = vrot.slane %v1478_v12, 2  ;;  %v1700_v22 = vsel %vm4578_vm15, %v1695_v15, %v1697_v14  ;;  %2270 = vrot.lane.b32.xlu1 %v3128_v0, %s3152_s10 }
 0x18a   : > { %v1012_v25 = vcombine.high %v1011_v16, %v1011_v16  ;;  %v1054_v26 = vcombine.low %v1050_v9, %v1051_v17  ;;  %v1703_v23 = vmul.f32 %v1699_v19, %v3551_v4  ;;  %v1484_v32 = vadd.f32 %v1483_v21, %v1476_v13  ;;  %v3863_v16 = vld [vmem:[#allocation13 + $0x28] sm:$0xff] }
 0x18b   : > { %v1254_v29 = vadd.f32 %v1253_v18, %v1252_v10  ;;  %2819 = vrot.lane.b32.xlu0 %v3652_v55, %s3152_s10  ;;  %v1260_v30 = vadd.f32 %v1259_v2, %v1258_v11  ;;  %v1480_v31 = vadd.f32 %v1479_v20, %v1478_v12  ;;  %v1704_v34 = vmul.f32 %v1700_v22, %v3554_v5  ;;  %v1127_v35 = vpop.permute.xlu1 %1126  ;;  %v1125_v36 = vpop.permute.xlu0 %1124 }
 0x18c   : > { %1015 = vst.msk [vmem:[#allocation4 + $0x12] ss:$8 sm:$0x3] %vm3597_vm1, %v1012_v25  ;;  %v1061_v38 = vrot.slane %v1054_v26, %v3589_v33  ;;  %v1705_v40 = vrot.slane %v1703_v23, 4  ;;  %v1129_v4 = vsel %vm4579_vm13, %v3779_v60, %v1125_v36  ;;  %v1485_v43 = vrot.slane %v1484_v32, 2 }
 0x18d   : > { %v1261_v39 = vmul.f32 0.35355338, %v1254_v29  ;;  %v1262_v41 = vmul.f32 0.35355338, %v1260_v30  ;;  %v1481_v42 = vrot.slane %v1480_v31, 1  ;;  %v1711_v44 = vrot.slane %v1704_v34, 4  ;;  %2292 = vrot.lane.b32.xlu1 %v3128_v0, %s4626_s13 }
 0x18e   : > { %v1062_v5 = vcombine.high %v1061_v38, %v1061_v38  ;;  %v1706_v47 = vadd.f32 %v1705_v40, %v1703_v23  ;;  %v1130_v48 = vsel %vm4579_vm13, %v1125_v36, %v1127_v35  ;;  %v1486_v50 = vadd.f32 %v1485_v43, %v1484_v32 }
 0x18f   : > { %v1263_v46 = vmul.f32 %v1261_v39, %v3578_v27  ;;  %2824 = vrot.lane.b32.xlu0 %v3652_v55, %s4626_s13  ;;  %v1264_v60 = vmul.f32 %v1262_v41, %v3580_v28  ;;  %v1482_v49 = vadd.f32 %v1481_v42, %v1480_v31  ;;  %v1712_v51 = vadd.f32 %v1711_v44, %v1704_v34  ;;  %v1182_v52 = vpop.permute.xlu1 %1181  ;;  %v1180_v53 = vpop.permute.xlu0 %1179 }
 0x190   : > { %v1069_v54 = vrot.slane %v1062_v5, %v3589_v33  ;;  %v1707_v57 = vrot.slane %v1706_v47, 2  ;;  %v1133_v27 = vmul.f32 %v3848_v58, %v1129_v4  ;;  %v1134_v61 = vmul.f32 %v3852_v59, %v1130_v48 }
 0x191   : > { %vm4581_vm15 = vcmask 916480   ;;  %v1267_v28 = vcombine.high %v1263_v46, %v1264_v60  ;;  %v1489_v62 = vmul.f32 0.35355338, %v1482_v49  ;;  %v1487_v63 = vrot.slane %v1486_v50, 1  ;;  %2314 = vrot.lane.b32.xlu1 %v3128_v0, %s4627_s24 }
 0x192   : > { %v1713_v1 = vrot.slane %v1712_v51, 2  ;;  %v1070_v6 = vcombine.high %v1069_v54, %v1069_v54  ;;  %v1708_v7 = vadd.f32 %v1707_v57, %v1706_v47  ;;  %v1135_v8 = vrot.slane %v1133_v27, 4 }
 0x193   : > { %v1141_v9 = vrot.slane %v1134_v61, 4  ;;  %2829 = vrot.lane.b32.xlu0 %v3652_v55, %s4627_s24  ;;  %v1274_v10 = vrot.slane %v1267_v28, %v3589_v33  ;;  %v1491_v11 = vmul.f32 %v1489_v62, %v3845_v3  ;;  %v1488_v12 = vadd.f32 %v1487_v63, %v1486_v50  ;;  %v1351_v14 = vpop.permute.xlu1 %1350  ;;  %v1184_v15 = vpop.permute.xlu0 %1183 }
 0x194   : > { %v1714_v13 = vadd.f32 %v1713_v1, %v1712_v51  ;;  %1073 = vst.msk [vmem:[#allocation4 + $0x13] ss:$8 sm:$0x3] %vm3597_vm1, %v1070_v6  ;;  %v1709_v17 = vrot.slane %v1708_v7, 1  ;;  %v1136_v18 = vadd.f32 %v1135_v8, %v1133_v27  ;;  %v1186_v2 = vsel %vm4580_vm14, %v1180_v53, %v1182_v52 }
 0x195   : > { %v1142_v19 = vadd.f32 %v1141_v9, %v1134_v61  ;;  %v1275_v20 = vcombine.high %v1274_v10, %v1274_v10  ;;  %v1490_v21 = vmul.f32 0.35355338, %v1488_v12  ;;  %v1190_v25 = vmul.f32 %v3848_v58, %v1186_v2  ;;  %2336 = vrot.lane.b32.xlu1 %v3128_v0, %s4628_s12  ;;  %v3897_v2 = vld [vmem:[#allocation13 + $0x18] sm:$0xff] }
 0x196   : > { %v1715_v22 = vrot.slane %v1714_v13, 1  ;;  %v1710_v26 = vadd.f32 %v1709_v17, %v1708_v7  ;;  %v1137_v29 = vrot.slane %v1136_v18, 2  ;;  %v1187_v30 = vsel %vm4580_vm14, %v1182_v52, %v1184_v15  ;;  %4630 = vst [vmem:[#allocation24_spill] sm:$0xff] %v3897_v2 }
 0x197   : > { %v1143_v23 = vrot.slane %v1142_v19, 2  ;;  %2834 = vrot.lane.b32.xlu0 %v3652_v55, %s4628_s12  ;;  %v1282_v31 = vrot.slane %v1275_v20, %v3589_v33  ;;  %v1492_v32 = vmul.f32 %v1490_v21, %v3863_v16  ;;  %v1192_v35 = vrot.slane %v1190_v25, 4  ;;  %v1355_v36 = vpop.permute.xlu1 %1354  ;;  %v1353_v38 = vpop.permute.xlu0 %1352 }
 0x198   : > { %v1716_v34 = vadd.f32 %v1715_v22, %v1714_v13  ;;  %vm4582_vm13 = vcmask 908288   ;;  %v1717_v39 = vmul.f32 0.35355338, %v1710_v26  ;;  %v1138_v40 = vadd.f32 %v1137_v29, %v1136_v18  ;;  %v3894_v18 = vld [vmem:[#allocation13 + $0x10] sm:$0xff] }
 0x199   : > { %v1144_v4 = vadd.f32 %v1143_v23, %v1142_v19  ;;  %v1191_v41 = vmul.f32 %v3852_v59, %v1187_v30  ;;  %v1283_v42 = vcombine.high %v1282_v31, %v1282_v31  ;;  %v1495_v43 = vcombine.low %v1491_v11, %v1492_v32  ;;  %2358 = vrot.lane.b32.xlu1 %v3128_v0, %s3153_s8 }
 0x19a   : > { %v1718_v44 = vmul.f32 0.35355338, %v1716_v34  ;;  %v1193_v5 = vadd.f32 %v1192_v35, %v1190_v25  ;;  %v1719_v46 = vmul.f32 %v1717_v39, %v3845_v3  ;;  %v1139_v47 = vrot.slane %v1138_v40, 1 }
 0x19b   : > { %v1145_v48 = vrot.slane %v1144_v4, 1  ;;  %v1198_v60 = vrot.slane %v1191_v41, 4  ;;  %2839 = vrot.lane.b32.xlu0 %v3652_v55, %s3153_s8  ;;  %1286 = vst.msk [vmem:[#allocation4 + $0x17] ss:$8 sm:$0x3] %vm3597_vm1, %v1283_v42  ;;  %v1502_v49 = vrot.slane %v1495_v43, %v3589_v33  ;;  %v1357_v52 = vsel %vm4581_vm15, %v1351_v14, %v1353_v38  ;;  %v1410_v53 = vpop.permute.xlu1 %1409  ;;  %v1408_v54 = vpop.permute.xlu0 %1407 }
 0x19c   : > { %v1720_v50 = vmul.f32 %v1718_v44, %v3863_v16  ;;  %v1194_v51 = vrot.slane %v1193_v5, 2  ;;  %v1140_v57 = vadd.f32 %v1139_v47, %v1138_v40  ;;  %v1358_v28 = vsel %vm4581_vm15, %v1353_v38, %v1355_v36 }
 0x19d   : > { %v1146_v27 = vadd.f32 %v1145_v48, %v1144_v4  ;;  %v1199_v61 = vadd.f32 %v1198_v60, %v1191_v41  ;;  %vm4583_vm14 = vcmask 793600   ;;  %v1503_v62 = vcombine.high %v1502_v49, %v1502_v49  ;;  %2380 = vrot.lane.b32.xlu1 %v3128_v0, %s4629_s15 }
 0x19e   : > { %v1723_v63 = vcombine.high %v1719_v46, %v1720_v50  ;;  %v1195_v1 = vadd.f32 %v1194_v51, %v1193_v5  ;;  %v1361_v6 = vmul.f32 %v3848_v58, %v1357_v52  ;;  %v1147_v7 = vmul.f32 0.35355338, %v1140_v57 }
 0x19f   : > { %v1148_v8 = vmul.f32 0.35355338, %v1146_v27  ;;  %v1200_v9 = vrot.slane %v1199_v61, 2  ;;  %v1362_v10 = vmul.f32 %v3852_v59, %v1358_v28  ;;  %2844 = vrot.lane.b32.xlu0 %v3652_v55, %s4629_s15  ;;  %v1510_v11 = vrot.slane %v1503_v62, %v3589_v33  ;;  %v1579_v15 = vpop.permute.xlu1 %1578  ;;  %v1412_v17 = vpop.permute.xlu0 %1411 }
 0x1a0   : > { %v1730_v12 = vrot.slane %v1723_v63, %v3589_v33  ;;  %v1196_v13 = vrot.slane %v1195_v1, 1  ;;  %v1363_v14 = vrot.slane %v1361_v6, 4  ;;  %vm4584_vm15 = vcmask 785408  }
 0x1a1   : > { %v1149_v19 = vmul.f32 %v3894_v18, %v1147_v7  ;;  %v1150_v20 = vmul.f32 %v3897_v2, %v1148_v8  ;;  %v1201_v21 = vadd.f32 %v1200_v9, %v1199_v61  ;;  %v1369_v22 = vrot.slane %v1362_v10, 4  ;;  %2402 = vrot.lane.b32.xlu1 %v3128_v0, %s4631_s6 }
 0x1a2   : > { %v1511_v25 = vcombine.high %v1510_v11, %v1510_v11  ;;  %v1731_v26 = vcombine.high %v1730_v12, %v1730_v12  ;;  %v1197_v29 = vadd.f32 %v1196_v13, %v1195_v1  ;;  %v1364_v23 = vadd.f32 %v1363_v14, %v1361_v6 }
 0x1a3   : > { %v1153_v30 = vcombine.high %v1149_v19, %v1150_v20  ;;  %v1202_v31 = vrot.slane %v1201_v21, 1  ;;  %v1370_v32 = vadd.f32 %v1369_v22, %v1362_v10  ;;  %v1414_v34 = vsel %vm4582_vm13, %v1408_v54, %v1410_v53  ;;  %2849 = vrot.lane.b32.xlu0 %v3652_v55, %s4631_s6  ;;  %v1583_v40 = vpop.permute.xlu1 %1582  ;;  %v1581_v4 = vpop.permute.xlu0 %1580 }
 0x1a4   : > { %1514 = vst.msk [vmem:[#allocation4 + $0x23] ss:$8 sm:$0x3] %vm3597_vm1, %v1511_v25  ;;  %v1738_v35 = vrot.slane %v1731_v26, %v3589_v33  ;;  %v1204_v36 = vmul.f32 0.35355338, %v1197_v29  ;;  %v1365_v38 = vrot.slane %v1364_v23, 2  ;;  %v1418_v39 = vmul.f32 %v3848_v58, %v1414_v34 }
 0x1a5   : > { %v1160_v41 = vrot.slane %v1153_v30, %v3589_v33  ;;  %v1203_v42 = vadd.f32 %v1202_v31, %v1201_v21  ;;  %v1371_v43 = vrot.slane %v1370_v32, 2  ;;  %v1415_v44 = vsel %vm4582_vm13, %v1410_v53, %v1412_v17  ;;  %2424 = vrot.lane.b32.xlu1 %v3128_v0, %s4632_s17 }
 0x1a6   : > { %v1739_v5 = vcombine.high %v1738_v35, %v1738_v35  ;;  %v1206_v46 = vmul.f32 %v3894_v18, %v1204_v36  ;;  %v1366_v47 = vadd.f32 %v1365_v38, %v1364_v23  ;;  %v1420_v48 = vrot.slane %v1418_v39, 4 }
 0x1a7   : > { %v1161_v60 = vcombine.high %v1160_v41, %v1160_v41  ;;  %v1205_v49 = vmul.f32 0.35355338, %v1203_v42  ;;  %v1372_v50 = vadd.f32 %v1371_v43, %v1370_v32  ;;  %v1419_v51 = vmul.f32 %v3852_v59, %v1415_v44  ;;  %2854 = vrot.lane.b32.xlu0 %v3652_v55, %s4632_s17  ;;  %v1638_v27 = vpop.permute.xlu1 %1637  ;;  %v1636_v61 = vpop.permute.xlu0 %1635 }
 0x1a8   : > { %1742 = vst.msk [vmem:[#allocation4 + $0x27] ss:$8 sm:$0x3] %vm3597_vm1, %v1739_v5  ;;  %v1367_v52 = vrot.slane %v1366_v47, 1  ;;  %v1421_v53 = vadd.f32 %v1420_v48, %v1418_v39  ;;  %v1585_v54 = vsel %vm4583_vm14, %v1579_v15, %v1581_v4  ;;  %v1586_v57 = vsel %vm4583_vm14, %v1581_v4, %v1583_v40 }
 0x1a9   : > { %vm1300_vm13 = vcmask 924672   ;;  %v1168_v28 = vrot.slane %v1161_v60, %v3589_v33  ;;  %v1207_v62 = vmul.f32 %v3897_v2, %v1205_v49  ;;  %v1373_v63 = vrot.slane %v1372_v50, 1  ;;  %2446 = vrot.lane.b32.xlu1 %v3128_v0, %s3154_s11 }
 0x1aa   : > { %v1426_v1 = vrot.slane %v1419_v51, 4  ;;  %v1368_v6 = vadd.f32 %v1367_v52, %v1366_v47  ;;  %v1422_v7 = vrot.slane %v1421_v53, 2  ;;  %v1589_v8 = vmul.f32 %v3848_v58, %v1585_v54 }
 0x1ab   : > { %v1590_v9 = vmul.f32 %v3852_v59, %v1586_v57  ;;  %1171 = vst.msk [vmem:[#allocation4 + $0x15] ss:$8 sm:$0x3] %vm3597_vm1, %v1168_v28  ;;  %v1210_v10 = vcombine.high %v1206_v46, %v1207_v62  ;;  %v1374_v11 = vadd.f32 %v1373_v63, %v1372_v50  ;;  %v1642_v13 = vsel %vm4584_vm15, %v1636_v61, %v1638_v27  ;;  %v1295_v20 = vpop.permute.xlu1 %1294 }
 0x1ac   : > { %v1427_v12 = vadd.f32 %v1426_v1, %v1419_v51  ;;  %2859 = vrot.lane.b32.xlu0 %v3652_v55, %s3154_s11  ;;  %v1375_v14 = vmul.f32 0.35355338, %v1368_v6  ;;  %v1423_v15 = vadd.f32 %v1422_v7, %v1421_v53  ;;  %v1591_v17 = vrot.slane %v1589_v8, 4  ;;  %v1640_v26 = vpop.permute.xlu0 %1639  ;;  %s2459_s11 = scalar_lea.sflag [#allocation7], %s3416_s7 }
 0x1ad   : > { %v1597_v19 = vrot.slane %v1590_v9, 4  ;;  %v1217_v21 = vrot.slane %v1210_v10, %v3589_v33  ;;  %v1376_v22 = vmul.f32 0.35355338, %v1374_v11  ;;  %v1646_v25 = vmul.f32 %v3848_v58, %v1642_v13 }
 0x1ae   : > { %v1428_v0 = vrot.slane %v1427_v12, 2  ;;  %v1377_v29 = vmul.f32 %v1375_v14, %v3845_v3  ;;  %v1424_v23 = vrot.slane %v1423_v15, 1  ;;  %v1592_v30 = vadd.f32 %v1591_v17, %v1589_v8 }
 0x1af   : > { %v1598_v31 = vadd.f32 %v1597_v19, %v1590_v9  ;;  %vm1528_vm14 = vcmask 801792   ;;  %v1224_v55 = vrot.slane %v1217_v21, %v3589_v33  ;;  %v1378_v32 = vmul.f32 %v1376_v22, %v3863_v16  ;;  %v1299_v4 = vpop.permute.xlu1 %1298 }
 0x1b0   : > { %v1429_v34 = vadd.f32 %v1428_v0, %v1427_v12  ;;  %v1648_v35 = vrot.slane %v1646_v25, 4  ;;  %v1425_v36 = vadd.f32 %v1424_v23, %v1423_v15  ;;  %v1593_v38 = vrot.slane %v1592_v30, 2  ;;  %v1297_v5 = vpop.permute.xlu0 %1296 }
 0x1b1   : > { %v1599_v39 = vrot.slane %v1598_v31, 2  ;;  %v1643_v40 = vsel %vm4584_vm15, %v1638_v27, %v1640_v26  ;;  %v1225_v41 = vcombine.high %v1224_v55, %v1224_v55  ;;  %v1381_v42 = vcombine.low %v1377_v29, %v1378_v32 }
 0x1b2   : > { %v1430_v43 = vrot.slane %v1429_v34, 1  ;;  %v1649_v44 = vadd.f32 %v1648_v35, %v1646_v25  ;;  %v1432_v46 = vmul.f32 0.35355338, %v1425_v36  ;;  %v1594_v47 = vadd.f32 %v1593_v38, %v1592_v30 }
 0x1b3   : > { %v1600_v48 = vadd.f32 %v1599_v39, %v1598_v31  ;;  %v1647_v60 = vmul.f32 %v3852_v59, %v1643_v40  ;;  %1228 = vst.msk [vmem:[#allocation4 + $0x16] ss:$8 sm:$0x3] %vm3597_vm1, %v1225_v41  ;;  %v1388_v49 = vrot.slane %v1381_v42, %v3589_v33  ;;  %v1301_v52 = vsel %vm1300_vm13, %v1295_v20, %v1297_v5  ;;  %v1525_v61 = vpop.permute.xlu1 %1524 }
 0x1b4   : > { %v1431_v50 = vadd.f32 %v1430_v43, %v1429_v34  ;;  %v1650_v51 = vrot.slane %v1649_v44, 2  ;;  %v1434_v53 = vmul.f32 %v1432_v46, %v3845_v3  ;;  %v1595_v54 = vrot.slane %v1594_v47, 1  ;;  %v1523_v6 = vpop.permute.xlu0 %1522 }
 0x1b5   : > { %v1601_v57 = vrot.slane %v1600_v48, 1  ;;  %v1654_v27 = vrot.slane %v1647_v60, 4  ;;  %vm1756_vm15 = vcmask 769024   ;;  %v1389_v28 = vcombine.high %v1388_v49, %v1388_v49 }
 0x1b6   : > { %v1433_v62 = vmul.f32 0.35355338, %v1431_v50  ;;  %v1651_v63 = vadd.f32 %v1650_v51, %v1649_v44  ;;  %v1302_v1 = vsel %vm1300_vm13, %v1297_v5, %v1299_v4  ;;  %v1596_v7 = vadd.f32 %v1595_v54, %v1594_v47 }
 0x1b7   : > { %v1602_v8 = vadd.f32 %v1601_v57, %v1600_v48  ;;  %v1655_v9 = vadd.f32 %v1654_v27, %v1647_v60  ;;  %v1305_v10 = vmul.f32 %v3848_v58, %v1301_v52  ;;  %v1396_v11 = vrot.slane %v1389_v28, %v3589_v33  ;;  %v1751_v21 = vpop.permute.xlu1 %1750 }
 0x1b8   : > { %v1435_v12 = vmul.f32 %v1433_v62, %v3863_v16  ;;  %v1652_v13 = vrot.slane %v1651_v63, 1  ;;  %v1306_v14 = vmul.f32 %v3852_v59, %v1302_v1  ;;  %v1603_v15 = vmul.f32 0.35355338, %v1596_v7  ;;  %v1527_v29 = vpop.permute.xlu0 %1526 }
 0x1b9   : > { %v1604_v17 = vmul.f32 0.35355338, %v1602_v8  ;;  %v1656_v19 = vrot.slane %v1655_v9, 2  ;;  %v1307_v20 = vrot.slane %v1305_v10, 4  ;;  %v1529_v26 = vsel %vm1528_vm14, %v1523_v6, %v1525_v61 }
 0x1ba   : > { %1399 = vst.msk [vmem:[#allocation4 + $0x21] ss:$8 sm:$0x3] %vm3597_vm1, %v1396_v11  ;;  %v1438_v22 = vcombine.low %v1434_v53, %v1435_v12  ;;  %v1653_v0 = vadd.f32 %v1652_v13, %v1651_v63  ;;  %v1313_v25 = vrot.slane %v1306_v14, 4  ;;  %v1605_v23 = vmul.f32 %v1603_v15, %v3845_v3 }
 0x1bb   : > { %v1606_v30 = vmul.f32 %v1604_v17, %v3863_v16  ;;  %v1657_v31 = vadd.f32 %v1656_v19, %v1655_v9  ;;  %v1308_v55 = vadd.f32 %v1307_v20, %v1305_v10  ;;  %v1533_v36 = vmul.f32 %v3848_v58, %v1529_v26  ;;  %v1755_v49 = vpop.permute.xlu1 %1754 }
 0x1bc   : > { %v1445_v32 = vrot.slane %v1438_v22, %v3589_v33  ;;  %v1660_v34 = vmul.f32 0.35355338, %v1653_v0  ;;  %v1314_v35 = vadd.f32 %v1313_v25, %v1306_v14  ;;  %v1530_v4 = vsel %vm1528_vm14, %v1525_v61, %v1527_v29  ;;  %v1753_v5 = vpop.permute.xlu0 %1752 }
 0x1bd   : > { %v1609_v38 = vcombine.high %v1605_v23, %v1606_v30  ;;  %v1658_v39 = vrot.slane %v1657_v31, 1  ;;  %v1309_v40 = vrot.slane %v1308_v55, 2  ;;  %v1535_v44 = vrot.slane %v1533_v36, 4 }
 0x1be   : > { %v1452_v41 = vrot.slane %v1445_v32, %v3589_v33  ;;  %v1662_v42 = vmul.f32 %v1660_v34, %v3845_v3  ;;  %v1315_v43 = vrot.slane %v1314_v35, 2  ;;  %v1534_v60 = vmul.f32 %v3852_v59, %v1530_v4 }
 0x1bf   : > { %v1616_v46 = vrot.slane %v1609_v38, %v3589_v33  ;;  %v1659_v47 = vadd.f32 %v1658_v39, %v1657_v31  ;;  %v1310_v48 = vadd.f32 %v1309_v40, %v1308_v55  ;;  %v1536_v52 = vadd.f32 %v1535_v44, %v1533_v36  ;;  %v3979_v34 = vpop.permute.xlu1 %1922 }
 0x1c0   : > { %v1453_v50 = vcombine.high %v1452_v41, %v1452_v41  ;;  %v1316_v51 = vadd.f32 %v1315_v43, %v1314_v35  ;;  %v1757_v53 = vsel %vm1756_vm15, %v1751_v21, %v1753_v5  ;;  %v1541_v61 = vrot.slane %v1534_v60, 4  ;;  %v3966_v6 = vpop.permute.xlu0 %2744 }
 0x1c1   : > { %v1617_v54 = vcombine.high %v1616_v46, %v1616_v46  ;;  %v1661_v57 = vmul.f32 0.35355338, %v1659_v47  ;;  %v1311_v27 = vrot.slane %v1310_v48, 1  ;;  %v1537_v62 = vrot.slane %v1536_v52, 2 }
 0x1c2   : > { %1456 = vst.msk [vmem:[#allocation4 + $0x22] ss:$8 sm:$0x3] %vm3597_vm1, %v1453_v50  ;;  %v1317_v28 = vrot.slane %v1316_v51, 1  ;;  %v1758_v63 = vsel %vm1756_vm15, %v1753_v5, %v1755_v49  ;;  %v1761_v1 = vmul.f32 %v3848_v58, %v1757_v53  ;;  %v1542_v10 = vadd.f32 %v1541_v61, %v1534_v60  ;;  %v3989_v50 = vld [vmem:[#allocation13 + $0x30] sm:$0xff] }
 0x1c3   : > { %v1624_v7 = vrot.slane %v1617_v54, %v3589_v33  ;;  %v1663_v8 = vmul.f32 %v1661_v57, %v3863_v16  ;;  %v1312_v9 = vadd.f32 %v1311_v27, %v1310_v48  ;;  %v1538_v12 = vadd.f32 %v1537_v62, %v1536_v52  ;;  %4633 = vst [vmem:[#allocation25_spill] sm:$0xff] %v3989_v50  ;;  %v3995_v57 = vld [vmem:[#allocation13 + $0x38] sm:$0xff] }
 0x1c4   : > { %v1318_v11 = vadd.f32 %v1317_v28, %v1316_v51  ;;  %v1762_v13 = vmul.f32 %v3852_v59, %v1758_v63  ;;  %v1763_v14 = vrot.slane %v1761_v1, 4  ;;  %v1543_v19 = vrot.slane %v1542_v10, 2  ;;  %v3975_v29 = vpop.permute.xlu0 %2749  ;;  %v3991_v51 = vpop.permute.xlu1 %1944  ;;  %4634 = vst [vmem:[#allocation26_spill] sm:$0xff] %v3995_v57 }
 0x1c5   : > { %1627 = vst.msk [vmem:[#allocation4 + $0x25] ss:$8 sm:$0x3] %vm3597_vm1, %v1624_v7  ;;  %v1666_v15 = vcombine.high %v1662_v42, %v1663_v8  ;;  %v1319_v17 = vmul.f32 0.35355338, %v1312_v9  ;;  %v1539_v20 = vrot.slane %v1538_v12, 1 }
 0x1c6   : > { %v1320_v58 = vmul.f32 0.35355338, %v1318_v11  ;;  %v1764_v21 = vadd.f32 %v1763_v14, %v1761_v1  ;;  %v1769_v22 = vrot.slane %v1762_v13, 4  ;;  %v1544_v26 = vadd.f32 %v1543_v19, %v1542_v10  ;;  %v1802_v19 = vld [vmem:[#allocation4 + $0x10] sm:$0xff] }
 0x1c7   : > { %v1673_v0 = vrot.slane %v1666_v15, %v3589_v33  ;;  %v1321_v25 = vmul.f32 %v1319_v17, %v3845_v3  ;;  %v1540_v23 = vadd.f32 %v1539_v20, %v1538_v12  ;;  %v1800_v15 = vld [vmem:[#allocation4] sm:$0xff]  ;;  %v1801_v17 = vld [vmem:[#allocation4 + $0x8] sm:$0xff] }
 0x1c8   : > { %v1322_v59 = vmul.f32 %v1320_v58, %v3863_v16  ;;  %v1765_v30 = vrot.slane %v1764_v21, 2  ;;  %v1770_v31 = vadd.f32 %v1769_v22, %v1762_v13  ;;  %v1545_v32 = vrot.slane %v1544_v26, 1  ;;  %v3984_v5 = vpop.permute.xlu0 %2754  ;;  %v4003_v63 = vpop.permute.xlu1 %1966  ;;  %v1803_v58 = vld [vmem:[#allocation4 + $0x18] sm:$0xff] }
 0x1c9   : > { %v1680_v55 = vrot.slane %v1673_v0, %v3589_v33  ;;  %v1547_v40 = vmul.f32 0.35355338, %v1540_v23 }
 0x1ca   : > { %v1325_v35 = vcombine.low %v1321_v25, %v1322_v59  ;;  %v1766_v36 = vadd.f32 %v1765_v30, %v1764_v21  ;;  %v1771_v38 = vrot.slane %v1770_v31, 2  ;;  %v1546_v4 = vadd.f32 %v1545_v32, %v1544_v26 }
 0x1cb   : > { %v1681_v39 = vcombine.high %v1680_v55, %v1680_v55  ;;  %v1549_v60 = vmul.f32 %v1547_v40, %v3845_v3 }
 0x1cc   : > { %v1332_v41 = vrot.slane %v1325_v35, %v3589_v33  ;;  %v1767_v42 = vrot.slane %v1766_v36, 1  ;;  %v1772_v43 = vadd.f32 %v1771_v38, %v1770_v31  ;;  %v1548_v44 = vmul.f32 0.35355338, %v1546_v4  ;;  %v3999_v3 = vpop.permute.xlu0 %2759  ;;  %v4011_v10 = vpop.permute.xlu1 %1988 }
 0x1cd   : > { %1684 = vst.msk [vmem:[#allocation4 + $0x26] ss:$8 sm:$0x3] %vm3597_vm1, %v1681_v39 }
 0x1ce   : > { %v1339_v46 = vrot.slane %v1332_v41, %v3589_v33  ;;  %v1768_v47 = vadd.f32 %v1767_v42, %v1766_v36  ;;  %v1773_v48 = vrot.slane %v1772_v43, 1  ;;  %v1550_v49 = vmul.f32 %v1548_v44, %v3863_v16 }
 0x1d0   : > { %1342 = vst.msk [vmem:[#allocation4 + $0x20] ss:$8 sm:$0x3] %vm3597_vm1, %v1339_v46  ;;  %v1774_v52 = vadd.f32 %v1773_v48, %v1772_v43  ;;  %v1775_v53 = vmul.f32 0.35355338, %v1768_v47  ;;  %v1553_v54 = vcombine.high %v1549_v60, %v1550_v49  ;;  %v4008_v8 = vpop.permute.xlu0 %2764  ;;  %v4017_v14 = vpop.permute.xlu1 %2010 }
 0x1d2   : > { %v1776_v27 = vmul.f32 0.35355338, %v1774_v52  ;;  %v1777_v61 = vmul.f32 %v1775_v53, %v3989_v50  ;;  %v1560_v28 = vrot.slane %v1553_v54, %v3589_v33  ;;  %v377_v50 = vld [vmem:[#allocation10 + $0x28] sm:$0xff] }
 0x1d3   : > { %v4173_v2 = vmul.f32 0.35355338, %v377_v50 }
 0x1d4   : > { %v1778_v16 = vmul.f32 %v1776_v27, %v3995_v57  ;;  %v1567_v62 = vrot.slane %v1560_v28, %v3589_v33  ;;  %v4021_v23 = vpop.permute.xlu1 %2032 }
 0x1d5   : > { %v4015_v11 = vpop.permute.xlu0 %2769  ;;  %4642 = vst [vmem:[#allocation34_spill] sm:$0xff] %v4173_v2 }
 0x1d6   : > { %v1781_v1 = vcombine.low %v1777_v61, %v1778_v16  ;;  %1570 = vst.msk [vmem:[#allocation4 + $0x24] ss:$8 sm:$0x3] %vm3597_vm1, %v1567_v62 }
 0x1d8   : > { %v1788_v7 = vrot.slane %v1781_v1, %v3589_v33  ;;  %v4025_v39 = vpop.permute.xlu1 %2054 }
 0x1d9   : > { %v4019_v26 = vpop.permute.xlu0 %2774 }
 0x1da   : > { %v1795_v9 = vrot.slane %v1788_v7, %v3589_v33 }
 0x1dc   : > { %1798 = vst.msk [vmem:[#allocation4 + $0x30] ss:$8 sm:$0x3] %vm3597_vm1, %v1795_v9  ;;  %v4029_v47 = vpop.permute.xlu1 %2076 }
 0x1dd   : > { %v1804_v12 = vld [vmem:[#allocation4 + $0x20] sm:$0xff]  ;;  %v1805_v13 = vld [vmem:[#allocation4 + $0x28] sm:$0xff]  ;;  %v4023_v35 = vpop.permute.xlu0 %2779 }
 0x1de   : > { %v1808_v22 = vmax.f32 %v1800_v15, %v1804_v12  ;;  %v1817_v0 = vmax.f32 %v1801_v17, %v1805_v13  ;;  %v2782_v57 = vunpack.i.h.bf16 %v4023_v35 }
 0x1e0   : > { %v4195_v50 = vsel %vm801_vm8, %v2782_v57, %v4029_v47 }
 0x1e1   : > { %v4027_v43 = vpop.permute.xlu0 %2784 }
 0x1e3   : > { %v1806_v20 = vld [vmem:[#allocation4 + $0x30] sm:$0xff]  ;;  %v1807_v21 = vld [vmem:[#allocation4 + $0x38] sm:$0xff] }
 0x1e4   : > { %v1809_v33 = vmax.f32 %v1802_v19, %v1806_v20  ;;  %v1818_v25 = vmax.f32 %v1803_v58, %v1807_v21 }
 0x1e5   : > { %v4031_v7 = vpop.permute.xlu0 %2789 }
 0x1e6   : > { %v1810_v37 = vmax.f32 %v1808_v22, %v1809_v33  ;;  %v1819_v59 = vmax.f32 %v1817_v0, %v1818_v25  ;;  %v4033_v0 = vpop.permute.xlu1 %2098 }
 0x1e8   : > { %v1811_v30 = vrot.slane %v1810_v37, 4  ;;  %v1820_v31 = vrot.slane %v1819_v59, 4 }
 0x1ea   : > { %v1812_v55 = vmax.f32 %v1810_v37, %v1811_v30  ;;  %v1821_v32 = vmax.f32 %v1819_v59, %v1820_v31 }
 0x1ec   : > { %v1813_v36 = vrot.slane %v1812_v55, 2  ;;  %v1822_v38 = vrot.slane %v1821_v32, 2 }
 0x1ee   : > { %v1814_v40 = vmax.f32 %v1812_v55, %v1813_v36  ;;  %v1823_v4 = vmax.f32 %v1821_v32, %v1822_v38 }
 0x1f0   : > { %v1815_v41 = vrot.slane %v1814_v40, 1  ;;  %v1824_v42 = vrot.slane %v1823_v4, 1 }
 0x1f2   : > { %v1816_v44 = vmax.f32 %v1814_v40, %v1815_v41  ;;  %v1825_v46 = vmax.f32 %v1823_v4, %v1824_v42 }
 0x1f4   : > { %v1826_v48 = vsub.f32 %v1800_v15, %v1816_v44  ;;  %v1827_v60 = vsub.f32 %v1801_v17, %v1825_v46  ;;  %v1828_v49 = vsub.f32 %v1802_v19, %v1816_v44  ;;  %v1829_v52 = vsub.f32 %v1803_v58, %v1825_v46 }
 0x1f5   : > { %v1830_v53 = vsub.f32 %v1804_v12, %v1816_v44  ;;  %v1831_v54 = vsub.f32 %v1805_v13, %v1825_v46  ;;  %v1832_v27 = vsub.f32 %v1806_v20, %v1816_v44  ;;  %v1833_v62 = vsub.f32 %v1807_v21, %v1825_v46  ;;  %v4035_v12 = vpop.permute.xlu0 %2794  ;;  %v4037_v13 = vpop.permute.xlu1 %2120 }
 0x1f6   : > { %v1834_v61 = vmul.f32 1.442695, %v1826_v48  ;;  %v1836_v28 = vmul.f32 1.442695, %v1827_v60  ;;  %v1838_v16 = vmul.f32 1.442695, %v1828_v49  ;;  %v2747_v49 = vunpack.i.h.bf16 %v3966_v6 }
 0x1f7   : > { %v1840_v1 = vmul.f32 1.442695, %v1829_v52  ;;  %v1842_v9 = vmul.f32 1.442695, %v1830_v53  ;;  %v1844_v22 = vmul.f32 1.442695, %v1831_v54  ;;  %v2746_v52 = vunpack.i.l.bf16 %v3966_v6 }
 0x1f8   : > { %2863 = vpow2.f32 %v1834_v61  ;;  %v1846_v15 = vmul.f32 1.442695, %v1832_v27  ;;  %v1848_v17 = vmul.f32 1.442695, %v1833_v62  ;;  %v372_v60 = vld [vmem:[#allocation10] sm:$0xff]  ;;  %v373_v27 = vld [vmem:[#allocation10 + $0x8] sm:$0xff]  ;;  %v2757_v6 = vunpack.i.h.bf16 %v3984_v5 }
 0x1f9   : > { %2865 = vpow2.f32 %v1836_v28  ;;  %v4043_v20 = vpop.permute.xlu0 %2799  ;;  %v4051_v37 = vpop.permute.xlu1 %2142  ;;  %v4078_v62 = vsub.s32 0, %v3576_v24 }
 0x1fa   : > { %2867 = vpow2.f32 %v1838_v16  ;;  %v4075_v16 = vmul.f32 0.35355338, %v372_v60  ;;  %v4105_v60 = vsub.s32 2, %v3576_v24  ;;  %v2801_v47 = vunpack.i.l.bf16 %v4043_v20 }
 0x1fb   : > { %2869 = vpow2.f32 %v1840_v1  ;;  %v2752_v1 = vunpack.i.h.bf16 %v3975_v29 }
 0x1fc   : > { %2871 = vpow2.f32 %v1842_v9 }
 0x1fd   : > { %2873 = vpow2.f32 %v1844_v22  ;;  %v4066_v4 = vpop.permute.xlu0 %2804  ;;  %v4069_v44 = vpop.permute.xlu1 %2164  ;;  %v4082_v22 = vsel %vm400_vm0, %v2746_v52, %v2747_v49 }
 0x1fe   : > { %2875 = vpow2.f32 %v1846_v15  ;;  %v2751_v15 = vunpack.i.l.bf16 %v3975_v29  ;;  %v2761_v29 = vunpack.i.l.bf16 %v3999_v3 }
 0x1ff   : > { %2877 = vpow2.f32 %v1848_v17 }
 0x201   : > { %v4073_v61 = vpop.permute.xlu0 %2809  ;;  %v4086_v17 = vpop.permute.xlu1 %2204 }
 0x202   : > { %v4039_v19 = vpop.eup %2863 }
 0x203   : > { %v4041_v58 = vpop.eup %2865 }
 0x204   : > { %v4045_v21 = vpop.eup %2867 }
 0x205   : > { %v4047_v33 = vpop.eup %2869  ;;  %v1850_v25 = vadd.f32 %v4045_v21, %v4039_v19 }
 0x206   : > { %v4053_v59 = vpop.eup %2871  ;;  %v1859_v30 = vadd.f32 %v4047_v33, %v4041_v58 }
 0x207   : > { %4635 = vst [vmem:[#allocation27_spill] sm:$0xff] %v4053_v59  ;;  %v4057_v31 = vpop.eup %2873  ;;  %v1851_v55 = vadd.f32 %v4053_v59, %v1850_v25 }
 0x208   : > { %4636 = vst [vmem:[#allocation28_spill] sm:$0xff] %v4057_v31  ;;  %v4060_v32 = vpop.eup %2875  ;;  %v1860_v36 = vadd.f32 %v4057_v31, %v1859_v30  ;;  %v4088_v30 = vmul.f32 0.35355338, %v373_v27  ;;  %v4122_v27 = vsub.s32 3, %v3576_v24  ;;  %v2796_v31 = vunpack.i.l.bf16 %v4035_v12 }
 0x209   : > { %4637 = vst [vmem:[#allocation29_spill] sm:$0xff] %v4060_v32  ;;  %v4063_v38 = vpop.eup %2877  ;;  %v1852_v40 = vadd.f32 %v4060_v32, %v1851_v55  ;;  %v2756_v55 = vunpack.i.l.bf16 %v3984_v5  ;;  %v2767_v5 = vunpack.i.h.bf16 %v4008_v8  ;;  %v2786_v32 = vunpack.i.l.bf16 %v4027_v43 }
 0x20a   : > { %4638 = vst [vmem:[#allocation30_spill] sm:$0xff] %v4063_v38  ;;  %v1861_v41 = vadd.f32 %v4063_v38, %v1860_v36  ;;  %v2762_v36 = vunpack.i.h.bf16 %v3999_v3  ;;  %v2766_v3 = vunpack.i.l.bf16 %v4008_v8  ;;  %v4132_v8 = vsub.s32 4, %v3576_v24  ;;  %v378_v38 = vld [vmem:[#allocation10 + $0x30] sm:$0xff] }
 0x20b   : > { %v1853_v42 = vrot.slane %v1852_v40, 4 }
 0x20c   : > { %v1862_v46 = vrot.slane %v1861_v41, 4 }
 0x20d   : > { %v1854_v48 = vadd.f32 %v1853_v42, %v1852_v40  ;;  %v4097_v42 = vsub.s32 1, %v3576_v24 }
 0x20e   : > { %v1863_v53 = vadd.f32 %v1862_v46, %v1861_v41  ;;  %v4094_v41 = vsel %vm400_vm0, %v2747_v49, %v3979_v34  ;;  %v4113_v34 = vsel %vm516_vm3, %v2757_v6, %v4003_v63  ;;  %v4116_v49 = vpop.permute.xlu0 %2814  ;;  %v4129_v63 = vsel %vm573_vm4, %v2761_v29, %v2762_v36 }
 0x20f   : > { %v1855_v54 = vrot.slane %v1854_v48, 2  ;;  %vm4645_vm0 = vcmask 1039360  }
 0x210   : > { %v1864_v28 = vrot.slane %v1863_v53, 2  ;;  %vm4646_vm1 = vmmov %vm4645_vm0 }
 0x211   : > { %v1856_v9 = vadd.f32 %v1855_v54, %v1854_v48  ;;  %v4102_v48 = vsel %vm459_vm2, %v2752_v1, %v3991_v51  ;;  %v4119_v51 = vsel %vm516_vm3, %v2756_v55, %v2757_v6  ;;  %v4141_v6 = vsel %vm631_vm5, %v2767_v5, %v4017_v14 }
 0x212   : > { %v1865_v25 = vadd.f32 %v1864_v28, %v1863_v53  ;;  %v4109_v53 = vsel %vm459_vm2, %v2751_v15, %v2752_v1  ;;  %v4126_v28 = vsel %vm573_vm4, %v2762_v36, %v4011_v10  ;;  %v374_v1 = vld [vmem:[#allocation10 + $0x10] sm:$0xff]  ;;  %v4137_v15 = vpop.permute.xlu1 %2226  ;;  %4639 = vst [vmem:[#allocation31_spill] sm:$0xff] %v4141_v6  ;;  %v4144_v10 = vsub.s32 6, %v3576_v24  ;;  %v2820_v56 = vpop.permute.xlu0 %2819 }
 0x213   : > { %v1857_v40 = vrot.slane %v1856_v9, 1  ;;  %v4150_v55 = vsel %vm631_vm5, %v2766_v3, %v2767_v5  ;;  %v2772_v36 = vunpack.i.h.bf16 %v4015_v11  ;;  %v4154_v29 = vmul.f32 0.35355338, %v374_v1  ;;  %v379_v5 = vld [vmem:[#allocation10 + $0x38] sm:$0xff] }
 0x214   : > { %v1866_v46 = vrot.slane %v1865_v25, 1  ;;  %v2777_v14 = vunpack.i.h.bf16 %v4019_v26  ;;  %v2787_v3 = vunpack.i.h.bf16 %v4027_v43  ;;  %v2791_v1 = vunpack.i.l.bf16 %v4031_v7 }
 0x215   : > { %v1858_v52 = vadd.f32 %v1857_v40, %v1856_v9  ;;  %v4135_v9 = vsub.s32 5, %v3576_v24  ;;  %v2771_v40 = vunpack.i.l.bf16 %v4015_v11  ;;  %v2792_v11 = vunpack.i.h.bf16 %v4031_v7 }
 0x216   : > { %v1867_v54 = vadd.f32 %v1866_v46, %v1865_v25  ;;  %v4147_v25 = vsub.s32 7, %v3576_v24  ;;  %v375_v46 = vld [vmem:[#allocation10 + $0x18] sm:$0xff]  ;;  %v2781_v24 = vunpack.i.l.bf16 %v4023_v35  ;;  %v4175_v43 = vmul.f32 0.35355338, %v378_v38 }
 0x217   : > { %2879 = vrcp.f32 %v1858_v52  ;;  %v376_v52 = vld [vmem:[#allocation10 + $0x20] sm:$0xff]  ;;  %v4164_v45 = vmul.f32 0.35355338, %v375_v46  ;;  %v4171_v35 = vsel %vm687_vm6, %v2771_v40, %v2772_v36  ;;  %v4177_v6 = vmul.f32 0.35355338, %v379_v5  ;;  %v4222_v5 = vpop.permute.xlu0 %2824 }
 0x218   : > { %2881 = vrcp.f32 %v1867_v54  ;;  %4640 = vst [vmem:[#allocation32_spill] sm:$0xff] %v4147_v25  ;;  %v2776_v54 = vunpack.i.l.bf16 %v4019_v26  ;;  %v2797_v26 = vunpack.i.h.bf16 %v4035_v12  ;;  %v4168_v59 = vmul.f32 0.35355338, %v376_v52  ;;  %v2249_v25 = vpop.permute.xlu1 %2248  ;;  %4643 = vst [vmem:[#allocation35_spill] sm:$0xff] %v4175_v43 }
 0x219   : > { %4644 = vst [vmem:[#allocation36_spill] sm:$0xff] %v4177_v6  ;;  %v4181_v7 = vsel %vm687_vm6, %v2772_v36, %v4021_v23  ;;  %v4188_v12 = vsel %vm744_vm7, %v2777_v14, %v4025_v39  ;;  %v4191_v40 = vsel %vm801_vm8, %v2781_v24, %v2782_v57  ;;  %v4198_v38 = vsel %vm859_vm9, %v2786_v32, %v2787_v3 }
 0x21a   : > { %4641 = vst [vmem:[#allocation33_spill] sm:$0xff] %v4168_v59  ;;  %v4184_v46 = vsel %vm744_vm7, %v2776_v54, %v2777_v14  ;;  %v4202_v23 = vsel %vm859_vm9, %v2787_v3, %v4033_v0  ;;  %v4205_v36 = vsel %vm915_vm10, %v2791_v1, %v2792_v11  ;;  %v4209_v39 = vsel %vm915_vm10, %v2792_v11, %v4037_v13 }
 0x21b   : > { %v4212_v52 = vsel %vm972_vm11, %v2796_v31, %v2797_v26  ;;  %v2802_v57 = vunpack.i.h.bf16 %v4043_v20  ;;  %v2807_v14 = vunpack.i.h.bf16 %v4066_v4  ;;  %v2806_v0 = vunpack.i.l.bf16 %v4066_v4 }
 0x21c   : > { %v2812_v54 = vunpack.i.h.bf16 %v4073_v61  ;;  %v2811_v24 = vunpack.i.l.bf16 %v4073_v61  ;;  %v2817_v3 = vunpack.i.h.bf16 %v4116_v49  ;;  %v2816_v20 = vunpack.i.l.bf16 %v4116_v49  ;;  %v2271_v6 = vpop.permute.xlu1 %2270 }
 0x21d   : > { %v2822_v11 = vunpack.i.h.bf16 %v2820_v56  ;;  %v2821_v4 = vunpack.i.l.bf16 %v2820_v56  ;;  %v2826_v61 = vunpack.i.l.bf16 %v4222_v5  ;;  %v4237_v59 = vsel %vm972_vm11, %v2797_v26, %v4051_v37 }
 0x21e   : > { %v4244_v49 = vsel %vm1029_vm12, %v2802_v57, %v4069_v44  ;;  %v4252_v43 = vsel %vm4646_vm1, %v2807_v14, %v4086_v17  ;;  %vm4647_vm2 = vcmask 1031168   ;;  %vm4649_vm4 = vcmask 932864  }
 0x21f   : > { %v4256_v37 = vsel %vm4647_vm2, %v2812_v54, %v4137_v15  ;;  %vm4648_vm3 = vmmov %vm4647_vm2  ;;  %v4264_v44 = vsel %vm4649_vm4, %v2816_v20, %v2817_v3  ;;  %v4272_v17 = vsel %vm1300_vm13, %v2821_v4, %v2822_v11  ;;  %v4275_v15 = vsel %vm1300_vm13, %v2822_v11, %v2271_v6 }
 0x220   : > { %vm4650_vm5 = vmmov %vm4649_vm4  ;;  %4651 = vst [vmem:[#allocation37_spill] sm:$0xff] %v4272_v17  ;;  %vm4654_vm6 = vcmask 916480   ;;  %v2293_v4 = vpop.permute.xlu1 %2292  ;;  %vm4661_vm8 = vcmask 908288   ;;  %vm4663_vm10 = vcmask 900096   ;;  %vm4684_vm1 = vcmask 777216  }
 0x221   : > { %v4216_v32 = vpop.eup %2879  ;;  %4652 = vst [vmem:[#allocation38_spill] sm:$0xff] %v4275_v15  ;;  %vm4660_vm7 = vmmov %vm4654_vm6 }
 0x222   : > { %v4224_v13 = vpop.eup %2881  ;;  %v1872_v31 = vmul.f32 %v4216_v32, %v4039_v19  ;;  %v4240_v19 = vsel %vm1029_vm12, %v2801_v47, %v2802_v57  ;;  %v4261_v47 = vsel %vm4648_vm3, %v2811_v24, %v2812_v54  ;;  %v2888_v57 = vld [vmem:[#allocation13 + $0x8] sm:$0xff]  ;;  %v2830_v54 = vpop.permute.xlu0 %2829  ;;  %vm4662_vm9 = vmmov %vm4661_vm8  ;;  %vm4671_vm12 = vcmask 793600  }
 0x223   : > { %v1873_v1 = vmul.f32 %v4224_v13, %v4041_v58  ;;  %v4248_v58 = vsel %vm4645_vm0, %v2806_v0, %v2807_v14  ;;  %v2831_v15 = vunpack.i.l.bf16 %v2830_v54  ;;  %vm4666_vm11 = vmmov %vm4663_vm10 }
 0x224   : > { %v1888_v2 = vadd.f32 %v4075_v16, %v1872_v31  ;;  %v2887_v16 = vld [vmem:[#allocation13] sm:$0xff]  ;;  %vm4672_vm13 = vmmov %vm4671_vm12 }
 0x225   : > { %v1889_v56 = vadd.f32 %v4088_v30, %v1873_v1  ;;  %v4267_v30 = vsel %vm4650_vm5, %v2817_v3, %v2249_v25  ;;  %v1874_v3 = vmul.f32 %v4216_v32, %v4045_v21  ;;  %v1875_v1 = vmul.f32 %v4224_v13, %v4047_v33  ;;  %vm4685_vm2 = vmmov %vm4684_vm1 }
 0x226   : > { %v4258_v26 = vmul.f32 %v2887_v16, %v1888_v2  ;;  %v4653_v2 = vunpack.i.h.bf16 %v4222_v5  ;;  %v2832_v16 = vunpack.i.h.bf16 %v2830_v54 }
 0x227   : > { %v4269_v0 = vmul.f32 %v2888_v57, %v1889_v56 }
 0x228   : > { %v4280_v14 = vsel %vm4654_vm6, %v2826_v61, %v4653_v2  ;;  %v1910_v24 = vrot.slane %v4258_v26, %v4078_v62  ;;  %v1935_v25 = vrot.slane %v4258_v26, %v4097_v42  ;;  %v1957_v31 = vrot.slane %v4258_v26, %v4105_v60 }
 0x229   : > { %4655 = vst [vmem:[#allocation39_spill] sm:$0xff] %v4280_v14  ;;  %v1914_v6 = vrot.slane %v4269_v0, %v4078_v62  ;;  %v1939_v20 = vrot.slane %v4269_v0, %v4097_v42  ;;  %v1961_v11 = vrot.slane %v4269_v0, %v4105_v60  ;;  %v1979_v21 = vrot.slane %v4258_v26, %v4122_v27 }
 0x22a   : > { %v1928_v61 = vmul.f32 %v4082_v22, %v1910_v24  ;;  %v1950_v56 = vmul.f32 %v4109_v53, %v1935_v25  ;;  %v1983_v14 = vrot.slane %v4269_v0, %v4122_v27  ;;  %v1972_v33 = vmul.f32 %v4119_v51, %v1957_v31 }
 0x22b   : > { %v1929_v57 = vmul.f32 %v4094_v41, %v1914_v6  ;;  %v1951_v2 = vmul.f32 %v4102_v48, %v1939_v20  ;;  %v2001_v22 = vrot.slane %v4258_v26, %v4132_v8  ;;  %v1890_v53 = vadd.f32 %v4154_v29, %v1874_v3  ;;  %v2835_v6 = vpop.permute.xlu0 %2834 }
 0x22c   : > { %v1952_v17 = vadd.f32 %v1950_v56, %v1928_v61  ;;  %v1973_v25 = vmul.f32 %v4113_v34, %v1961_v11  ;;  %v2005_v41 = vrot.slane %v4269_v0, %v4132_v8  ;;  %v1891_v48 = vadd.f32 %v4164_v45, %v1875_v1  ;;  %v2315_v34 = vpop.permute.xlu1 %2314  ;;  %v4656_v1 = vld [vmem:[#allocation31_spill] sm:$0xff] }
 0x22d   : > { %v1953_v24 = vadd.f32 %v1951_v2, %v1929_v57  ;;  %v1994_v54 = vmul.f32 %v4129_v63, %v1979_v21  ;;  %v2023_v51 = vrot.slane %v4258_v26, %v4135_v9  ;;  %v2837_v31 = vunpack.i.h.bf16 %v2835_v6 }
 0x22e   : > { %v1974_v20 = vadd.f32 %v1972_v33, %v1952_v17  ;;  %v1995_v56 = vmul.f32 %v4126_v28, %v1983_v14  ;;  %v2027_v29 = vrot.slane %v4269_v0, %v4135_v9  ;;  %v2836_v3 = vunpack.i.l.bf16 %v2835_v6  ;;  %v4657_v14 = vld [vmem:[#allocation24_spill] sm:$0xff] }
 0x22f   : > { %v1975_v61 = vadd.f32 %v1973_v25, %v1953_v24  ;;  %v2016_v57 = vmul.f32 %v4150_v55, %v2001_v22  ;;  %v2045_v45 = vrot.slane %v4258_v26, %v4144_v10  ;;  %v4324_v63 = vmul.f32 %v3894_v18, %v1890_v53  ;;  %v4658_v25 = vld [vmem:[#allocation32_spill] sm:$0xff] }
 0x230   : > { %v1996_v11 = vadd.f32 %v1994_v54, %v1974_v20  ;;  %v2017_v21 = vmul.f32 %v4656_v1, %v2005_v41  ;;  %v2049_v28 = vrot.slane %v4269_v0, %v4144_v10  ;;  %v4330_v2 = vmul.f32 %v4657_v14, %v1891_v48  ;;  %v4346_v20 = vpop.permute.xlu0 %2839 }
 0x231   : > { %v1997_v17 = vadd.f32 %v1995_v56, %v1975_v61  ;;  %v2038_v24 = vmul.f32 %v4171_v35, %v2023_v51  ;;  %v2067_v55 = vrot.slane %v4258_v26, %v4658_v25  ;;  %v4659_v22 = vunpack.i.h.bf16 %v4222_v5  ;;  %v2337_v51 = vpop.permute.xlu1 %2336 }
 0x232   : > { %v2018_v33 = vadd.f32 %v2016_v57, %v1996_v11  ;;  %v2039_v41 = vmul.f32 %v4181_v7, %v2027_v29  ;;  %v2071_v6 = vrot.slane %v4269_v0, %v4658_v25  ;;  %v4344_v48 = vsel %vm4661_vm8, %v2831_v15, %v2832_v16 }
 0x233   : > { %v4338_v18 = vsel %vm4660_vm7, %v4659_v22, %v2293_v4  ;;  %v2019_v53 = vadd.f32 %v2017_v21, %v1997_v17  ;;  %v2060_v54 = vmul.f32 %v4184_v46, %v2045_v45  ;;  %v2089_v5 = vrot.slane %v4324_v63, %v4078_v62 }
 0x234   : > { %v2040_v35 = vadd.f32 %v2038_v24, %v2018_v33  ;;  %v4352_v26 = vsel %vm4662_vm9, %v2832_v16, %v2315_v34  ;;  %v2061_v7 = vmul.f32 %v4188_v12, %v2049_v28  ;;  %v2093_v0 = vrot.slane %v4330_v2, %v4078_v62  ;;  %v4665_v28 = vld [vmem:[#allocation28_spill] sm:$0xff]  ;;  %v2845_v33 = vpop.permute.xlu0 %2844 }
 0x235   : > { %v2041_v4 = vadd.f32 %v2039_v41, %v2019_v53  ;;  %v4358_v15 = vsel %vm4663_vm10, %v2836_v3, %v2837_v31  ;;  %v2082_v56 = vmul.f32 %v4191_v40, %v2067_v55  ;;  %v2111_v46 = vrot.slane %v4324_v63, %v4097_v42  ;;  %v4664_v40 = vld [vmem:[#allocation27_spill] sm:$0xff] }
 0x236   : > { %v2062_v61 = vadd.f32 %v2060_v54, %v2040_v35  ;;  %v2842_v29 = vunpack.i.h.bf16 %v4346_v20  ;;  %v2083_v34 = vmul.f32 %v4195_v50, %v2071_v6  ;;  %v2115_v12 = vrot.slane %v4330_v2, %v4097_v42  ;;  %v2359_v35 = vpop.permute.xlu1 %2358 }
 0x237   : > { %v2063_v16 = vadd.f32 %v2061_v7, %v2041_v4  ;;  %v2841_v11 = vunpack.i.l.bf16 %v4346_v20  ;;  %v2104_v3 = vmul.f32 %v4198_v38, %v2089_v5  ;;  %v2133_v45 = vrot.slane %v4324_v63, %v4105_v60 }
 0x238   : > { %v2084_v57 = vadd.f32 %v2082_v56, %v2062_v61  ;;  %v1876_v17 = vmul.f32 %v4216_v32, %v4664_v40  ;;  %v2105_v21 = vmul.f32 %v4202_v23, %v2093_v0  ;;  %v2137_v50 = vrot.slane %v4330_v2, %v4105_v60 }
 0x239   : > { %v2085_v1 = vadd.f32 %v2083_v34, %v2063_v16  ;;  %v1877_v14 = vmul.f32 %v4224_v13, %v4665_v28  ;;  %v2126_v55 = vmul.f32 %v4205_v36, %v2111_v46  ;;  %v2155_v38 = vrot.slane %v4324_v63, %v4122_v27 }
 0x23a   : > { %v2106_v24 = vadd.f32 %v2104_v3, %v2084_v57  ;;  %v4382_v22 = vsel %vm4666_vm11, %v2837_v31, %v2337_v51  ;;  %v2127_v41 = vmul.f32 %v4209_v39, %v2115_v12  ;;  %v2159_v23 = vrot.slane %v4330_v2, %v4122_v27  ;;  %v4667_v31 = vld [vmem:[#allocation33_spill] sm:$0xff]  ;;  %v4668_v51 = vld [vmem:[#allocation34_spill] sm:$0xff] }
 0x23b   : > { %v2107_v53 = vadd.f32 %v2105_v21, %v2085_v1  ;;  %v4390_v6 = vsel %vm1528_vm14, %v2841_v11, %v2842_v29  ;;  %v2148_v36 = vmul.f32 %v4212_v52, %v2133_v45  ;;  %v2177_v5 = vrot.slane %v4324_v63, %v4132_v8  ;;  %v4669_v45 = vld [vmem:[#allocation22_spill] sm:$0xff] }
 0x23c   : > { %v2128_v54 = vadd.f32 %v2126_v55, %v2106_v24  ;;  %v1892_v4 = vadd.f32 %v4667_v31, %v1876_v17  ;;  %v2149_v39 = vmul.f32 %v4237_v59, %v2137_v50  ;;  %v2181_v0 = vrot.slane %v4330_v2, %v4132_v8  ;;  %v4406_v59 = vpop.permute.xlu0 %2849  ;;  %v4670_v50 = vld [vmem:[#allocation23_spill] sm:$0xff] }
 0x23d   : > { %v2129_v7 = vadd.f32 %v2127_v41, %v2107_v53  ;;  %v1893_v61 = vadd.f32 %v4668_v51, %v1877_v14  ;;  %v2170_v46 = vmul.f32 %v4240_v19, %v2155_v38  ;;  %v2192_v16 = vrot.slane %v4324_v63, %v4135_v9  ;;  %v2889_v19 = vld [vmem:[#allocation13 + $0x20] sm:$0xff]  ;;  %v2890_v14 = vld [vmem:[#allocation13 + $0x28] sm:$0xff] }
 0x23e   : > { %v2150_v56 = vadd.f32 %v2148_v36, %v2128_v54  ;;  %v2847_v52 = vunpack.i.h.bf16 %v2845_v33  ;;  %v2171_v12 = vmul.f32 %v4244_v49, %v2159_v23  ;;  %v2196_v11 = vrot.slane %v4330_v2, %v4135_v9 }
 0x23f   : > { %v2151_v34 = vadd.f32 %v2149_v39, %v2129_v7  ;;  %v2846_v57 = vunpack.i.l.bf16 %v2845_v33  ;;  %v2182_v40 = vmul.f32 %v2177_v5, %v4669_v45  ;;  %v2217_v17 = vrot.slane %v4324_v63, %v4144_v10  ;;  %v2381_v33 = vpop.permute.xlu1 %2380  ;;  %v4677_v45 = vld [vmem:[#allocation30_spill] sm:$0xff] }
 0x240   : > { %v2172_v3 = vadd.f32 %v2170_v46, %v2150_v56  ;;  %v4411_v1 = vmul.f32 %v2889_v19, %v1892_v4  ;;  %v2183_v28 = vmul.f32 %v2181_v0, %v4670_v50  ;;  %v2221_v49 = vrot.slane %v4330_v2, %v4144_v10  ;;  %v4436_v0 = vpop.permute.xlu0 %2854  ;;  %v4678_v19 = vld [vmem:[#allocation39_spill] sm:$0xff] }
 0x241   : > { %v2173_v21 = vadd.f32 %v2171_v12, %v2151_v34  ;;  %v4416_v24 = vmul.f32 %v2890_v14, %v1893_v61  ;;  %v2210_v38 = vmul.f32 %v4248_v58, %v2192_v16  ;;  %v2239_v53 = vrot.slane %v4324_v63, %v4658_v25  ;;  %v4674_v34 = vld [vmem:[#allocation37_spill] sm:$0xff] }
 0x242   : > { %v2184_v55 = vadd.f32 %v2182_v40, %v2172_v3  ;;  %v2852_v41 = vunpack.i.h.bf16 %v4406_v59  ;;  %v2211_v54 = vmul.f32 %v4252_v43, %v2196_v11  ;;  %v2243_v36 = vrot.slane %v4330_v2, %v4658_v25  ;;  %v4675_v11 = vld [vmem:[#allocation29_spill] sm:$0xff]  ;;  %v4676_v3 = vld [vmem:[#allocation38_spill] sm:$0xff] }
 0x243   : > { %v2185_v23 = vadd.f32 %v2183_v28, %v2173_v21  ;;  %v2851_v5 = vunpack.i.l.bf16 %v4406_v59  ;;  %v2232_v4 = vmul.f32 %v4261_v47, %v2217_v17  ;;  %v2261_v7 = vrot.slane %v4411_v1, %v4078_v62  ;;  %v2403_v46 = vpop.permute.xlu1 %2402 }
 0x244   : > { %v2212_v31 = vadd.f32 %v2210_v38, %v2184_v55  ;;  %v2361_v58 = vsel %vm1528_vm14, %v2842_v29, %v2359_v35  ;;  %v2233_v39 = vmul.f32 %v4256_v37, %v2221_v49  ;;  %v2265_v43 = vrot.slane %v4416_v24, %v4078_v62 }
 0x245   : > { %v2213_v63 = vadd.f32 %v2211_v54, %v2185_v23  ;;  %v2382_v2 = vsel %vm4671_vm12, %v2846_v57, %v2847_v52  ;;  %v2254_v47 = vmul.f32 %v4264_v44, %v2239_v53  ;;  %v2283_v61 = vrot.slane %v4411_v1, %v4097_v42  ;;  %v4679_v53 = vld [vmem:[#allocation35_spill] sm:$0xff] }
 0x246   : > { %v2234_v51 = vadd.f32 %v2232_v4, %v2212_v31  ;;  %v2383_v20 = vsel %vm4672_vm13, %v2847_v52, %v2381_v33  ;;  %v2255_v29 = vmul.f32 %v4267_v30, %v2243_v36  ;;  %v2287_v37 = vrot.slane %v4416_v24, %v4097_v42  ;;  %v4680_v31 = vld [vmem:[#allocation36_spill] sm:$0xff] }
 0x247   : > { %v2235_v56 = vadd.f32 %v2233_v39, %v2213_v63  ;;  %vm4673_vm14 = vcmask 785408   ;;  %v2276_v12 = vmul.f32 %v4674_v34, %v2261_v7  ;;  %v2305_v44 = vrot.slane %v4411_v1, %v4105_v60 }
 0x248   : > { %v2404_v35 = vsel %vm4673_vm14, %v2851_v5, %v2852_v41  ;;  %v2256_v16 = vadd.f32 %v2254_v47, %v2234_v51  ;;  %v1878_v52 = vmul.f32 %v4216_v32, %v4675_v11  ;;  %v2277_v30 = vmul.f32 %v4676_v3, %v2265_v43  ;;  %v2425_v5 = vpop.permute.xlu1 %2424  ;;  %vm4683_vm0 = vmmov %vm4673_vm14 }
 0x249   : > { %v2257_v57 = vadd.f32 %v2255_v29, %v2235_v56  ;;  %v2309_v42 = vrot.slane %v4416_v24, %v4105_v60  ;;  %v1879_v40 = vmul.f32 %v4224_v13, %v4677_v45  ;;  %v2298_v21 = vmul.f32 %v4678_v19, %v2283_v61  ;;  %v2860_v60 = vpop.permute.xlu0 %2859  ;;  %v4681_v61 = vld [vmem:[#allocation25_spill] sm:$0xff] }
 0x24a   : > { %v2278_v17 = vadd.f32 %v2276_v12, %v2256_v16  ;;  %v2327_v50 = vrot.slane %v4411_v1, %v4122_v27  ;;  %v2857_v28 = vunpack.i.h.bf16 %v4436_v0  ;;  %v2299_v32 = vmul.f32 %v4338_v18, %v2287_v37  ;;  %v4682_v16 = vld [vmem:[#allocation26_spill] sm:$0xff] }
 0x24b   : > { %v2279_v49 = vadd.f32 %v2277_v30, %v2257_v57  ;;  %v2331_v14 = vrot.slane %v4416_v24, %v4122_v27  ;;  %v2856_v33 = vunpack.i.l.bf16 %v4436_v0  ;;  %v2320_v13 = vmul.f32 %v4344_v48, %v2305_v44 }
 0x24c   : > { %v2300_v55 = vadd.f32 %v2298_v21, %v2278_v17  ;;  %v2349_v38 = vrot.slane %v4411_v1, %v4132_v8  ;;  %v1894_v23 = vadd.f32 %v4679_v53, %v1878_v52  ;;  %v2321_v36 = vmul.f32 %v4352_v26, %v2309_v42  ;;  %v2447_v57 = vpop.permute.xlu1 %2446 }
 0x24d   : > { %v2301_v54 = vadd.f32 %v2299_v32, %v2279_v49  ;;  %v2353_v18 = vrot.slane %v4416_v24, %v4132_v8  ;;  %v1895_v27 = vadd.f32 %v4680_v31, %v1879_v40  ;;  %v2342_v7 = vmul.f32 %v4358_v15, %v2327_v50 }
 0x24e   : > { %v2322_v4 = vadd.f32 %v2320_v13, %v2300_v55  ;;  %v2371_v48 = vrot.slane %v4411_v1, %v4135_v9  ;;  %v2862_v63 = vunpack.i.h.bf16 %v2860_v60  ;;  %v2343_v43 = vmul.f32 %v4382_v22, %v2331_v14 }
 0x24f   : > { %v2323_v39 = vadd.f32 %v2321_v36, %v2301_v54  ;;  %v2375_v0 = vrot.slane %v4416_v24, %v4135_v9  ;;  %v2861_v26 = vunpack.i.l.bf16 %v2860_v60  ;;  %v2364_v8 = vmul.f32 %v4390_v6, %v2349_v38 }
 0x250   : > { %v2344_v51 = vadd.f32 %v2342_v7, %v2322_v4  ;;  %v2393_v47 = vrot.slane %v4411_v1, %v4144_v10  ;;  %v1902_v56 = vmul.f32 %v1894_v23, %v4681_v61  ;;  %v2365_v29 = vmul.f32 %v2361_v58, %v2353_v18 }
 0x251   : > { %v2345_v15 = vadd.f32 %v2343_v43, %v2323_v39  ;;  %v2397_v37 = vrot.slane %v4416_v24, %v4144_v10  ;;  %v1903_v34 = vmul.f32 %v1895_v27, %v4682_v16  ;;  %v2386_v12 = vmul.f32 %v2382_v2, %v2371_v48 }
 0x252   : > { %v2366_v22 = vadd.f32 %v2364_v8, %v2344_v51  ;;  %v2405_v9 = vsel %vm4683_vm0, %v2852_v41, %v2403_v46  ;;  %v2415_v6 = vrot.slane %v4411_v1, %v4658_v25  ;;  %v2387_v11 = vmul.f32 %v2383_v20, %v2375_v0 }
 0x253   : > { %v2367_v44 = vadd.f32 %v2365_v29, %v2345_v15  ;;  %v2426_v52 = vsel %vm4684_vm1, %v2856_v33, %v2857_v28  ;;  %v2419_v58 = vrot.slane %v4416_v24, %v4658_v25  ;;  %v2408_v3 = vmul.f32 %v2404_v35, %v2393_v47 }
 0x254   : > { %v2388_v10 = vadd.f32 %v2386_v12, %v2366_v22  ;;  %v2427_v2 = vsel %vm4685_vm2, %v2857_v28, %v2425_v5  ;;  %v2437_v59 = vrot.slane %v1902_v56, %v4078_v62  ;;  %v2409_v46 = vmul.f32 %v2405_v9, %v2397_v37 }
 0x255   : > { %v2389_v41 = vadd.f32 %v2387_v11, %v2367_v44  ;;  %v2448_v1 = vsel %vm1756_vm15, %v2861_v26, %v2862_v63  ;;  %v2441_v20 = vrot.slane %v1903_v34, %v4078_v62  ;;  %v2430_v42 = vmul.f32 %v2426_v52, %v2415_v6 }
 0x256   : > { %v2410_v30 = vadd.f32 %v2408_v3, %v2388_v10  ;;  %v2449_v45 = vsel %vm1756_vm15, %v2862_v63, %v2447_v57  ;;  %v2431_v24 = vmul.f32 %v2427_v2, %v2419_v58  ;;  %v2452_v35 = vmul.f32 %v2448_v1, %v2437_v59 }
 0x257   : > { %v2411_v25 = vadd.f32 %v2409_v46, %v2389_v41  ;;  %v2453_v19 = vmul.f32 %v2449_v45, %v2441_v20 }
 0x258   : > { %v2432_v40 = vadd.f32 %v2430_v42, %v2410_v30 }
 0x259   : > { %v2433_v17 = vadd.f32 %v2431_v24, %v2411_v25 }
 0x25a   : > { %v2454_v21 = vadd.f32 %v2452_v35, %v2432_v40 }
 0x25b   : > { %v2455_v50 = vadd.f32 %v2453_v19, %v2433_v17 }
 0x25c   : > { %2456 = vst [vmem:[%s344_s2] sm:$0xff] %v2454_v21 }
 0x25d   : > { %2457 = vst [vmem:[%s344_s2 + $0x8] sm:$0xff] %v2455_v50 }
 0x25e   : > { %3050 = shalt.err (!%p3047_p9)
}
 0x25f   : > { %s3051_s7 = scalar_lea.hbm %s4505_s26, 256  ;;  %s3055_s30 = scalar_lea.hbm %s4554_s5, 512 }
 0x260   : > { %p3052_p3 = scmp.ne.s32.totalorder %s4505_s26, %s3051_s7  ;;  %p3056_p12 = scmp.lt.u32.totalorder %s4505_s26, %s4554_s5 }
 0x261   : > { %p3057_p2 = scmp.lt.u32.totalorder %s3055_s30, %s3051_s7  ;;  %p3059_p6 = scmp.lt.u32.totalorder %s3051_s7, %s4505_s26 }
 0x262   : > { %p3053_p0 = pnand %p3052_p3, %p4686_p4 }
 0x263   : > { %p3058_p13 = por %p3057_p2, %p3056_p12 }
 0x264   : > { %p3054_p10 = pneg %p3053_p0 }
 0x265   : > { %p3060_p8 = por %p3059_p6, %p3058_p13 }
 0x267   : > { %p3061_p1 = pnand %p3060_p8, %p3054_p10 }
 0x269   : > { %3064 = shalt.err (!%p3061_p1)
}
 0x26a   : > { %2651 = dma.vmem_to_hbm [thread:$0]  (%p4686_p4), %s4507_s4, 256, %s4505_s26, %s2459_s11  }
 0x26b PF: > { %s2485_s12 = sand.u32 1, %s3107_s18   ;;  %p4687_p11 = scmp.ne.s32.totalorder %s4599_s25, 0 }
 0x26c   : > { %p4688_p5 = scmp.ge.s32.totalorder %s3119_s21, 2  ;;  %s2486_s15 = scalar_lea.sflag [#allocation7], %s2485_s12 }
 0x26e   : > { %p2671_p7 = pnand %p4688_p5, %p4687_p11 }
 0x270   : > { %3102 = dma.done.wait (!%p2671_p7), %s2486_s15, 256  }
 0x271   : > { %3104 = vsyncadd (!%p2671_p7), %s2486_s15, 4294967040  ;;  %s4689_s6 = sld [smem:[#allocation21_spill]]  ;;  %p24_p9 = scmp.ge.s32.totalorder %s3296_s14, 4  }
 0x272   : > { %s4690_s18 = smov %s3111_s19  ;;  %s4691_s19 = smov %s3115_s20 }
 0x273   : > { %s4693_s21 = smov %s3296_s14  ;;  %26 = sbr.rel (!%p24_p9) target bundleno = 13 (0xd), region = 143 }
 0x277   : > { %s4692_s20 = smov %s4689_s6 }
 0x27a   :  { %2491 = vsyncpa [#allocation6], 1 }
 0x27b   :  { %2493 = vsyncpa [#allocation6 + $0x1], 1 }
 0x27c   :  { %2494 = vsyncpa [#allocation9], 1 }
 0x27d   :  { %2496 = vsyncpa [#allocation9 + $0x1], 1 }
 0x27e   :  { %2497 = vsyncpa [#allocation12], 1 }
 0x27f   :  { %2499 = vsyncpa [#allocation12 + $0x1], 1 }
 0x280   :  { %2500 = vsyncpa [#allocation7], 1 }
 0x281   :  { %2502 = vsyncpa [#allocation7 + $0x1], 1 }

</bundles_post_ra>
